<compile_context>
chip_gen: v7x
topology: tpu7x:2x2x1
jax: 0.10.0
libtpu: 0.0.40
codegen_flags: <defaults>
</compile_context>

<pallas_src>
import math

import jax
import jax.numpy as jnp
from jax import lax
from jax.experimental import pallas as pl
from jax.experimental.pallas import tpu as pltpu


_INV_SQRT2 = 1.0 / math.sqrt(2.0)


def _round_up(x, m):
    return (x + m - 1) // m * m


def _erf(z):
    # Abramowitz & Stegun 7.1.26 rational approximation, |err| <= 1.5e-7.
    # Used instead of lax.erf so the kernel only needs exp/abs/select/mul/add
    # (all guaranteed Mosaic lowerings); accuracy is within f32 noise of the
    # exact erf used by torch.nn.GELU(approximate='none').
    a1, a2, a3, a4, a5 = (0.254829592, -0.284496736, 1.421413741,
                          -1.453152027, 1.061405429)
    p = 0.3275911
    sgn = jnp.where(z >= 0.0, 1.0, -1.0)
    az = jnp.abs(z)
    t = 1.0 / (1.0 + p * az)
    poly = t * (a1 + t * (a2 + t * (a3 + t * (a4 + t * a5))))
    return sgn * (1.0 - poly * jnp.exp(-az * az))


def _mlp_kernel(x_ref, w1_ref, b1_ref, w2_ref, b2_ref, o_ref, acc_ref):
    # Grid: (row tile i [parallel], hidden chunk k [arbitrary]).
    # x_ref : (tm, C_in)   input row tile (constant across k -> fetched once)
    # w1_ref: (C_in, tk)   fc1 weight columns for this K chunk
    # b1_ref: (1, tk)      fc1 bias chunk
    # w2_ref: (tk, C_out)  fc2 weight rows for this K chunk
    # b2_ref: (1, C_out)   fc2 bias
    # o_ref : (tm, C_out)  output row tile (written only on last k)
    # acc_ref: (tm, C_out) f32 accumulator scratch
    k = pl.program_id(1)

    @pl.when(k == 0)
    def _():
        acc_ref[...] = jnp.zeros_like(acc_ref)

    # fc1 chunk on the MXU, f32 accumulation.
    h = jnp.dot(x_ref[...], w1_ref[...], preferred_element_type=jnp.float32)
    h = h + b1_ref[...].astype(jnp.float32)

    # Exact (erf-form) GELU in f32; matches torch.nn.GELU default.
    h = 0.5 * h * (1.0 + _erf(h * _INV_SQRT2))

    # Dropout(p=0.0) == identity.

    # fc2 chunk, accumulated across K chunks in the f32 VMEM scratch.
    acc_ref[...] += jnp.dot(h.astype(w2_ref.dtype), w2_ref[...],
                            preferred_element_type=jnp.float32)

    @pl.when(k == pl.num_programs(1) - 1)
    def _():
        o_ref[...] = (acc_ref[...] + b2_ref[...].astype(jnp.float32)
                      ).astype(o_ref.dtype)


def mlp_forward(x, w1, b1, w2, b2, *, block_m=256,
                vmem_budget_bytes=48 * 1024 * 1024):
    """Mlp forward, identical semantics to the PyTorch module (drop=0.0).

    x : (..., C_in)
    w1: (C_in, Hf)   == torch fc1.weight.T
    b1: (Hf,)
    w2: (Hf, C_out)  == torch fc2.weight.T
    b2: (C_out,)
    returns (..., C_out)

    Pass bf16 x/w1/w2 for bf16 MXU matmuls (recommended on v5e/v6e/v7x);
    matmul accumulation, biases and the GELU stay in float32 regardless.
    """
    lead_shape = x.shape[:-1]
    C_in = x.shape[-1]
    Hf = w1.shape[1]
    C_out = w2.shape[1]

    M = 1
    for d in lead_shape:
        M *= int(d)
    xm = x.reshape(M, C_in)

    # ---- Row (token) tiling --------------------------------------------
    # Sublane alignment: 8 rows for 4-byte dtypes, 16 for 2-byte (bf16).
    row_align = 8 if jnp.dtype(x.dtype).itemsize >= 4 else 16
    tm = min(block_m, _round_up(M, row_align))
    # Keep at least 2 row tiles so the "parallel" axis can shard across the
    # two TensorCores on v7x (no effect on v5e/v6e correctness).
    if pl.cdiv(M, tm) < 2 and M > row_align:
        tm = _round_up(pl.cdiv(M, 2), row_align)
    num_m = pl.cdiv(M, tm)  # last partial row block is clipped by Pallas

    # ---- Hidden-dim (K) tiling -----------------------------------------
    itemsize = max(jnp.dtype(x.dtype).itemsize,
                   jnp.dtype(w1.dtype).itemsize,
                   jnp.dtype(w2.dtype).itemsize)

    def _vmem_estimate(tk):
        # 2x (double buffering) for each pipelined block, plus the f32
        # accumulator scratch and the f32 hidden chunk the kernel holds.
        blocks = (tm * C_in) + (C_in * tk) + tk + (tk * C_out) + C_out \
                 + (tm * C_out)
        return 2 * blocks * itemsize + tm * C_out * 4 + tm * tk * 4

    tk = Hf
    if _vmem_estimate(Hf) > vmem_budget_bytes:
        # Stream fc1 columns / fc2 rows in K chunks: multiples of 128 that
        # divide Hf exactly (no masking of the contraction needed).
        for cand in (4096, 2048, 1024, 512, 256, 128):
            if Hf % cand == 0:
                tk = cand
                if _vmem_estimate(cand) <= vmem_budget_bytes:
                    break
    num_k = Hf // tk

    b1r = b1.reshape(1, Hf)
    b2r = b2.reshape(1, C_out)
    grid = (num_m, num_k)

    flops = 2 * M * (C_in * Hf + Hf * C_out)
    bytes_accessed = ((M * C_in + C_in * Hf + Hf + Hf * C_out + C_out)
                      * itemsize
                      + M * C_out * jnp.dtype(x.dtype).itemsize)
    cost = pl.CostEstimate(flops=flops, transcendentals=M * Hf,
                           bytes_accessed=bytes_accessed)

    # Explicit scoped-VMEM limit sized from the actual buffers, clamped to
    # 64 MiB (<= physical VMEM on every generation, incl. v7x's 64 MiB/TC).
    vmem_limit = int(min(max(2 * _vmem_estimate(tk), 32 * 1024 * 1024),
                         64 * 1024 * 1024))

    out = pl.pallas_call(
        _mlp_kernel,
        out_shape=jax.ShapeDtypeStruct((M, C_out), x.dtype),
        grid_spec=pltpu.PrefetchScalarGridSpec(
            num_scalar_prefetch=0,
            grid=grid,
            in_specs=[
                pl.BlockSpec((tm, C_in), lambda i, k: (i, 0)),   # x rows
                pl.BlockSpec((C_in, tk), lambda i, k: (0, k)),   # fc1 W cols
                pl.BlockSpec((1, tk), lambda i, k: (0, k)),      # fc1 bias
                pl.BlockSpec((tk, C_out), lambda i, k: (k, 0)),  # fc2 W rows
                pl.BlockSpec((1, C_out), lambda i, k: (0, 0)),   # fc2 bias
            ],
            out_specs=pl.BlockSpec((tm, C_out), lambda i, k: (i, 0)),
            scratch_shapes=[pltpu.VMEM((tm, C_out), jnp.float32)],
        ),
        compiler_params=pltpu.CompilerParams(
            dimension_semantics=("parallel", "arbitrary"),
            vmem_limit_bytes=vmem_limit),
        cost_estimate=cost,
    )(xm, w1, b1r, w2, b2r)

    # NOTE: if a model config has C_out < 128, output stores become masked
    # (partial-lane) vst; folding groups of rows into the lane axis in the
    # wrapper is the recommended fix for that case.
    return out.reshape(lead_shape + (C_out,))


def _reference(x, w1, b1, w2, b2):
    """Pure-JAX reference: Linear -> exact GELU -> Linear (drop=0.0)."""
    hp = jax.lax.Precision.HIGHEST
    h = jnp.dot(x, w1, precision=hp) + b1
    h = 0.5 * h * (1.0 + lax.erf(h / math.sqrt(2.0)))
    o = jnp.dot(h, w2, precision=hp) + b2
    return o


if __name__ == "__main__":
    # Small token-MLP shapes consistent with cpfssr usage: x is (B, N, C).
    # Feature dims chosen lane-dense (multiples of 128).
    B, H, W = 2, 16, 16
    N = H * W
    in_features = 128
    hidden_features = 256
    out_features = 128

    key = jax.random.PRNGKey(0)
    kx, kw1, kb1, kw2, kb2 = jax.random.split(key, 5)

    x = jax.random.normal(kx, (B, N, in_features), dtype=jnp.float32)

    # nn.Linear default init bounds (kaiming-uniform, bound = 1/sqrt(fan_in)).
    bnd1 = 1.0 / math.sqrt(in_features)
    w1 = jax.random.uniform(kw1, (in_features, hidden_features),
                            jnp.float32, -bnd1, bnd1)   # = torch fc1.weight.T
    b1 = jax.random.uniform(kb1, (hidden_features,), jnp.float32, -bnd1, bnd1)

    bnd2 = 1.0 / math.sqrt(hidden_features)
    w2 = jax.random.uniform(kw2, (hidden_features, out_features),
                            jnp.float32, -bnd2, bnd2)   # = torch fc2.weight.T
    b2 = jax.random.uniform(kb2, (out_features,), jnp.float32, -bnd2, bnd2)

    out = mlp_forward(x, w1, b1, w2, b2)
    out = jax.block_until_ready(out)

    ref = _reference(x, w1, b1, w2, b2)
    assert out.shape == (B, N, out_features)
    err = float(jnp.max(jnp.abs(out - ref)))
    # Tolerance covers MXU matmul precision differences vs the XLA reference.
    assert err < 1e-2, err

    print("KERNEL_OK")
</pallas_src>

<mosaic_0001>
module attributes {stable_mosaic.version = 11 : i64} {
  func.func @_mlp_kernel(%arg0: i32, %arg1: i32, %arg2: memref<256x128xf32, #tpu.memory_space<vmem>>, %arg3: memref<128x256xf32, #tpu.memory_space<vmem>>, %arg4: memref<1x256xf32, #tpu.memory_space<vmem>>, %arg5: memref<256x128xf32, #tpu.memory_space<vmem>>, %arg6: memref<1x128xf32, #tpu.memory_space<vmem>>, %arg7: memref<256x128xf32, #tpu.memory_space<vmem>>, %arg8: memref<256x128xf32, #tpu.memory_space<vmem>>) attributes {dimension_semantics = [#tpu.dimension_semantics<parallel>, #tpu.dimension_semantics<arbitrary>], iteration_bounds = array<i64: 2, 1>, scalar_prefetch = 0 : i64, scratch_operands = 1 : i64, tpu.core_type = #tpu.core_type<tc>, window_params = [{transform_indices = @transform_0, window_bounds = array<i64: 256, 128>}, {transform_indices = @transform_1, window_bounds = array<i64: 128, 256>}, {transform_indices = @transform_2, window_bounds = array<i64: 1, 256>}, {transform_indices = @transform_3, window_bounds = array<i64: 256, 128>}, {pipeline_mode = #tpu.pipeline_mode<synchronous>, transform_indices = @transform_4, window_bounds = array<i64: 1, 128>}, {transform_indices = @transform_5, window_bounds = array<i64: 256, 128>}]} {
    %c0_i32 = arith.constant 0 : i32
    %0 = arith.cmpi eq, %arg1, %c0_i32 : i32
    %1 = arith.extui %0 : i1 to i32
    %c0_i32_0 = arith.constant 0 : i32
    %2 = arith.cmpi ne, %1, %c0_i32_0 : i32
    scf.if %2 {
      %cst_31 = arith.constant 0.000000e+00 : f32
      %58 = vector.broadcast %cst_31 : f32 to vector<256x128xf32>
      %c0_32 = arith.constant 0 : index
      %c0_33 = arith.constant 0 : index
      %59 = vector.load %arg8[%c0_32, %c0_33] : memref<256x128xf32, #tpu.memory_space<vmem>>, vector<256x128xf32>
      tpu.vector_store %arg8[%c0_32, %c0_33], %58 {strides = array<i32>} : memref<256x128xf32, #tpu.memory_space<vmem>>, vector<256x128xf32>,
    } else {
    }
    %c0 = arith.constant 0 : index
    %c0_1 = arith.constant 0 : index
    %3 = vector.load %arg2[%c0, %c0_1] : memref<256x128xf32, #tpu.memory_space<vmem>>, vector<256x128xf32>
    %c0_2 = arith.constant 0 : index
    %c0_3 = arith.constant 0 : index
    %4 = vector.load %arg3[%c0_2, %c0_3] : memref<128x256xf32, #tpu.memory_space<vmem>>, vector<128x256xf32>
    %cst = arith.constant dense<0.000000e+00> : vector<256x256xf32>
    %5 = tpu.matmul %3, %4, %cst {dimension_numbers = #tpu.dot_dimension_numbers<[1], [0], [0], [1], [0, 0, 1, 1], [], []>} : vector<256x128xf32>, vector<128x256xf32>, vector<256x256xf32> -> vector<256x256xf32>
    %c0_4 = arith.constant 0 : index
    %c0_5 = arith.constant 0 : index
    %6 = vector.load %arg4[%c0_4, %c0_5] : memref<1x256xf32, #tpu.memory_space<vmem>>, vector<1x256xf32>
    %7 = vector.broadcast %6 : vector<1x256xf32> to vector<256x256xf32>
    %8 = arith.addf %5, %7 : vector<256x256xf32>
    %cst_6 = arith.constant 5.000000e-01 : f32
    %9 = vector.broadcast %cst_6 : f32 to vector<256x256xf32>
    %10 = arith.mulf %9, %8 : vector<256x256xf32>
    %cst_7 = arith.constant 0.707106769 : f32
    %11 = vector.broadcast %cst_7 : f32 to vector<256x256xf32>
    %12 = arith.mulf %8, %11 : vector<256x256xf32>
    %cst_8 = arith.constant 0.000000e+00 : f32
    %13 = vector.broadcast %cst_8 : f32 to vector<256x256xf32>
    %14 = arith.cmpf oge, %12, %13 : vector<256x256xf32>
    %cst_9 = arith.constant 1.000000e+00 : f32
    %cst_10 = arith.constant -1.000000e+00 : f32
    %15 = vector.broadcast %cst_9 : f32 to vector<256x256xf32>
    %16 = vector.broadcast %cst_10 : f32 to vector<256x256xf32>
    %17 = arith.select %14, %15, %16 : vector<256x256xi1>, vector<256x256xf32>
    %18 = math.absf %12 : vector<256x256xf32>
    %cst_11 = arith.constant 0.327591091 : f32
    %19 = vector.broadcast %cst_11 : f32 to vector<256x256xf32>
    %20 = arith.mulf %19, %18 : vector<256x256xf32>
    %cst_12 = arith.constant 1.000000e+00 : f32
    %21 = vector.broadcast %cst_12 : f32 to vector<256x256xf32>
    %22 = arith.addf %21, %20 : vector<256x256xf32>
    %cst_13 = arith.constant 1.000000e+00 : f32
    %23 = vector.broadcast %cst_13 : f32 to vector<256x256xf32>
    %24 = arith.divf %23, %22 : vector<256x256xf32>
    %cst_14 = arith.constant 1.06140542 : f32
    %25 = vector.broadcast %cst_14 : f32 to vector<256x256xf32>
    %26 = arith.mulf %24, %25 : vector<256x256xf32>
    %cst_15 = arith.constant -1.45315206 : f32
    %27 = vector.broadcast %cst_15 : f32 to vector<256x256xf32>
    %28 = arith.addf %27, %26 : vector<256x256xf32>
    %29 = arith.mulf %24, %28 : vector<256x256xf32>
    %cst_16 = arith.constant 1.42141378 : f32
    %30 = vector.broadcast %cst_16 : f32 to vector<256x256xf32>
    %31 = arith.addf %30, %29 : vector<256x256xf32>
    %32 = arith.mulf %24, %31 : vector<256x256xf32>
    %cst_17 = arith.constant -0.284496725 : f32
    %33 = vector.broadcast %cst_17 : f32 to vector<256x256xf32>
    %34 = arith.addf %33, %32 : vector<256x256xf32>
    %35 = arith.mulf %24, %34 : vector<256x256xf32>
    %cst_18 = arith.constant 0.254829586 : f32
    %36 = vector.broadcast %cst_18 : f32 to vector<256x256xf32>
    %37 = arith.addf %36, %35 : vector<256x256xf32>
    %38 = arith.mulf %24, %37 : vector<256x256xf32>
    %cst_19 = arith.constant 0.000000e+00 : f32
    %39 = vector.broadcast %cst_19 : f32 to vector<256x256xf32>
    %40 = arith.subf %39, %18 : vector<256x256xf32>
    %41 = arith.mulf %40, %18 : vector<256x256xf32>
    %42 = math.exp %41 : vector<256x256xf32>
    %43 = arith.mulf %38, %42 : vector<256x256xf32>
    %cst_20 = arith.constant 1.000000e+00 : f32
    %44 = vector.broadcast %cst_20 : f32 to vector<256x256xf32>
    %45 = arith.subf %44, %43 : vector<256x256xf32>
    %46 = arith.mulf %17, %45 : vector<256x256xf32>
    %cst_21 = arith.constant 1.000000e+00 : f32
    %47 = vector.broadcast %cst_21 : f32 to vector<256x256xf32>
    %48 = arith.addf %47, %46 : vector<256x256xf32>
    %49 = arith.mulf %10, %48 : vector<256x256xf32>
    %c0_22 = arith.constant 0 : index
    %c0_23 = arith.constant 0 : index
    %50 = vector.load %arg8[%c0_22, %c0_23] : memref<256x128xf32, #tpu.memory_space<vmem>>, vector<256x128xf32>
    %c0_24 = arith.constant 0 : index
    %c0_25 = arith.constant 0 : index
    %51 = vector.load %arg5[%c0_24, %c0_25] : memref<256x128xf32, #tpu.memory_space<vmem>>, vector<256x128xf32>
    %cst_26 = arith.constant dense<0.000000e+00> : vector<256x128xf32>
    %52 = tpu.matmul %49, %51, %cst_26 {dimension_numbers = #tpu.dot_dimension_numbers<[1], [0], [0], [1], [0, 0, 1, 1], [], []>} : vector<256x256xf32>, vector<256x128xf32>, vector<256x128xf32> -> vector<256x128xf32>
    %53 = arith.addf %50, %52 : vector<256x128xf32>
    %c0_27 = arith.constant 0 : index
    %c0_28 = arith.constant 0 : index
    %54 = vector.load %arg8[%c0_27, %c0_28] : memref<256x128xf32, #tpu.memory_space<vmem>>, vector<256x128xf32>
    tpu.vector_store %arg8[%c0_27, %c0_28], %53 {strides = array<i32>} : memref<256x128xf32, #tpu.memory_space<vmem>>, vector<256x128xf32>,
    %c0_i32_29 = arith.constant 0 : i32
    %55 = arith.cmpi eq, %arg1, %c0_i32_29 : i32
    %56 = arith.extui %55 : i1 to i32
    %c0_i32_30 = arith.constant 0 : i32
    %57 = arith.cmpi ne, %56, %c0_i32_30 : i32
    scf.if %57 {
      %c0_31 = arith.constant 0 : index
      %c0_32 = arith.constant 0 : index
      %58 = vector.load %arg8[%c0_31, %c0_32] : memref<256x128xf32, #tpu.memory_space<vmem>>, vector<256x128xf32>
      %c0_33 = arith.constant 0 : index
      %c0_34 = arith.constant 0 : index
      %59 = vector.load %arg6[%c0_33, %c0_34] : memref<1x128xf32, #tpu.memory_space<vmem>>, vector<1x128xf32>
      %60 = vector.broadcast %59 : vector<1x128xf32> to vector<256x128xf32>
      %61 = arith.addf %58, %60 : vector<256x128xf32>
      %c0_35 = arith.constant 0 : index
      %c0_36 = arith.constant 0 : index
      %62 = vector.load %arg7[%c0_35, %c0_36] : memref<256x128xf32, #tpu.memory_space<vmem>>, vector<256x128xf32>
      tpu.vector_store %arg7[%c0_35, %c0_36], %61 {strides = array<i32>} : memref<256x128xf32, #tpu.memory_space<vmem>>, vector<256x128xf32>,
    } else {
    }
    return
  }
  func.func @transform_0(%arg0: i32, %arg1: i32) -> (i32, i32) {
    %c0_i32 = arith.constant 0 : i32
    %c0_i32_0 = arith.constant 0 : i32
    return %arg0, %c0_i32 : i32, i32
  }
  func.func @transform_1(%arg0: i32, %arg1: i32) -> (i32, i32) {
    %c0_i32 = arith.constant 0 : i32
    %c0_i32_0 = arith.constant 0 : i32
    return %c0_i32, %arg1 : i32, i32
  }
  func.func @transform_2(%arg0: i32, %arg1: i32) -> (i32, i32) {
    %c0_i32 = arith.constant 0 : i32
    %c0_i32_0 = arith.constant 0 : i32
    return %c0_i32, %arg1 : i32, i32
  }
  func.func @transform_3(%arg0: i32, %arg1: i32) -> (i32, i32) {
    %c0_i32 = arith.constant 0 : i32
    %c0_i32_0 = arith.constant 0 : i32
    return %arg1, %c0_i32 : i32, i32
  }
  func.func @transform_4(%arg0: i32, %arg1: i32) -> (i32, i32) {
    %c0_i32 = arith.constant 0 : i32
    %c0_i32_0 = arith.constant 0 : i32
    %c0_i32_1 = arith.constant 0 : i32
    return %c0_i32, %c0_i32_0 : i32, i32
  }
  func.func @transform_5(%arg0: i32, %arg1: i32) -> (i32, i32) {
    %c0_i32 = arith.constant 0 : i32
    %c0_i32_0 = arith.constant 0 : i32
    return %arg0, %c0_i32 : i32, i32
  }
}

</mosaic_0001>

<bundles_post_ra>
// kernel: tpu_custom_call.1
= control target key start
LH: loop header
LB: loop body
LE: loop exit
PB: predicated region body
PF: predicated region fallthrough
CT: control target
= control target key end

     0   :  { %10 = vsyncpa [#allocation4], 0  ;;  %s5608_s0 = inlined_call_operand.hbm [shape: f32[512,128], index: 0, kind: input, shape index: {}]   ;;  %s5609_s1 = inlined_call_operand.hbm [shape: f32[128,256], index: 1, kind: input, shape index: {}]   ;;  %s5610_s2 = inlined_call_operand.vmem [shape: f32[1,256], index: 2, kind: input, shape index: {}]   ;;  %s5611_s3 = inlined_call_operand.hbm [shape: f32[256,128], index: 3, kind: input, shape index: {}]   ;;  %s5612_s4 = inlined_call_operand.vmem [shape: f32[1,128], index: 4, kind: input, shape index: {}]   ;;  %s5613_s5 = inlined_call_operand.hbm [shape: f32[512,128], index: 5, kind: output, shape index: {}]  }
   0x1   :  { %12 = vsyncpa [#allocation4 + $0x1], 0 }
   0x2   :  { %13 = vsyncpa [#allocation7], 0 }
   0x3   :  { %14 = vsyncpa [#allocation5], 0 }
   0x4   :  { %16 = vsyncpa [#allocation5 + $0x1], 0  ;;  %s3709_s18 = smov 0   ;;  %s3711_s19 = smov 0  }
   0x5   :  { %s3713_s20 = smov 0   ;;  %s3715_s21 = smov 0  }
   0x6   :  { %s3717_s22 = smov 0   ;;  %s3719_s23 = smov 0  }
   0x7 LB: > { %s3009_s24 = sadd.s32 4294967295, %s3664_s23   ;;  %s3010_s25 = sadd.s32 4294967294, %s3664_s23   ;;  %s3664_s23 = sphi %s3719_s23, %s22_s23   ;;  %s3660_s22 = sphi %s3717_s22, %s6040_s22   ;;  %s3656_s21 = sphi %s3715_s21, %s6039_s21   ;;  %s3652_s20 = sphi %s3713_s20, %s6038_s20   ;;  %s3648_s19 = sphi %s3711_s19, %s6037_s19   ;;  %s3644_s18 = sphi %s3709_s18, %s6036_s18  }
   0x8   : > { %p54_p0 = scmp.ne.s32.totalorder %s3648_s19, %s3644_s18  ;;  %p3743_p1 = scmp.eq.s32.totalorder %s3009_s24, 0 }
   0x9   : > { %p3747_p2 = scmp.eq.s32.totalorder %s3009_s24, 1  ;;  %p183_p3 = scmp.eq.s32.totalorder %s3010_s25, 1 }
   0xa   : > { %s5652_s26 = scalar_select %p3743_p1, 1, 0 }
   0xb   : > { %p3753_p4 = por %p3743_p1, %p54_p0  ;;  %p3011_p5 = scmp.ge.s32.totalorder %s3664_s23, 1 }
   0xc   : > { %p3758_p6 = por %p183_p3, %p54_p0  ;;  %p190_p7 = scmp.lt.s32.totalorder %s3664_s23, 3 }
   0xd   : > { %s5654_s28 = scalar_select %p3753_p4, 1, 0 }
   0xe   : > { %s5655_s29 = scalar_select %p3758_p6, 1, 0 }
   0xf   : > { %p3763_p8 = pnand %p3011_p5, %p190_p7  ;;  %s3666_s6 = smov [#allocation6]  }
  0x10   : > { %s205_s7 = sshll.u32 %s3666_s6, 4  ;;  %s3667_s9 = smov [#allocation8]   ;;  %s3767_s7 = int_to_ptr.vmem [resolvable:$true] %s205_s7 }
  0x11   : > { %p3156_p9 = pneg %p3763_p8  ;;  %s229_s10 = sshll.u32 %s3667_s9, 4  ;;  %s3778_s10 = int_to_ptr.vmem [resolvable:$true] %s229_s10 }
  0x12   : > { %s3492_s13 = scalar_lea.hbm %s5609_s1, 4096 }
  0x13   : > { %p3774_p11 = pnand %p3156_p9, %p3743_p1  ;;  %p3493_p12 = scmp.ne.s32.totalorder %s5609_s1, %s3492_s13 }
  0x14   : > { %p3499_p5 = scmp.lt.u32.totalorder %s3492_s13, %s5609_s1 }
  0x15   : > { %p3494_p13 = pneg %p3774_p11 }
  0x17   : > { %p3495_p0 = pnand %p3494_p13, %p3493_p12 }
  0x19   : > { %p3496_p3 = pneg %p3495_p0 }
  0x1b   : > { %p3501_p7 = pnand %p3499_p5, %p3496_p3 }
  0x1d   : > { %3504 = shalt.err (!%p3501_p7)
}
  0x1e   : > { %s3505_s24 = scalar_lea.vmem %s3767_s7, 4096  ;;  %p3513_p1 = scmp.lt.s32.totalorder %s3767_s7, %s3767_s7 }
  0x1f   : > { %p3506_p9 = scmp.ne.s32.totalorder %s3767_s7, %s3505_s24  ;;  %p3514_p12 = scmp.lt.s32.totalorder %s3505_s24, %s3505_s24 }
  0x21   : > { %p3508_p10 = pnand %p3506_p9, %p3494_p13  ;;  %p3515_p0 = por %p3514_p12, %p3513_p1 }
  0x23   : > { %p3509_p6 = pneg %p3508_p10 }
  0x25   : > { %p3516_p4 = pnand %p3515_p0, %p3509_p6 }
  0x27   : > { %3519 = shalt.err (!%p3516_p4)
}
  0x28   : > { %s3668_s25 = smov 256   ;;  %s3669_s6 = smov 16  }
  0x29   : > { %3159 = dma.hbm_to_vmem [thread:$0]  (!%p3774_p11), %s5609_s1, 4096, %s3767_s7, [#allocation7], %s3668_s25, %s3668_s25, %s3669_s6  }
  0x2a   : > { %s3520_s14 = scalar_lea.hbm %s5611_s3, 4096 }
  0x2b   : > { %p3521_p1 = scmp.ne.s32.totalorder %s5611_s3, %s3520_s14  ;;  %p3527_p10 = scmp.lt.u32.totalorder %s3520_s14, %s5611_s3 }
  0x2d   : > { %p3523_p4 = pnand %p3521_p1, %p3494_p13 }
  0x2f   : > { %p3524_p6 = pneg %p3523_p4 }
  0x31   : > { %p3529_p3 = pnand %p3527_p10, %p3524_p6 }
  0x33   : > { %3532 = shalt.err (!%p3529_p3)
}
  0x34   : > { %s3533_s7 = scalar_lea.vmem %s3778_s10, 4096  ;;  %p3541_p12 = scmp.lt.s32.totalorder %s3778_s10, %s3778_s10 }
  0x35   : > { %p3534_p5 = scmp.ne.s32.totalorder %s3778_s10, %s3533_s7  ;;  %p3542_p0 = scmp.lt.s32.totalorder %s3533_s7, %s3533_s7 }
  0x37   : > { %p3536_p7 = pnand %p3534_p5, %p3494_p13  ;;  %p3543_p1 = por %p3542_p0, %p3541_p12 }
  0x39   : > { %p3537_p9 = pneg %p3536_p7 }
  0x3b   : > { %p3544_p4 = pnand %p3543_p1, %p3537_p9 }
  0x3d   : > { %3547 = shalt.err (!%p3544_p4)
}
  0x3e   : > { %s5617_s25 = smov 128   ;;  %s3671_s6 = smov 8  }
  0x3f   : > { %3162 = dma.hbm_to_vmem [thread:$0]  (!%p3774_p11), %s5611_s3, 4096, %s3778_s10, [#allocation7], %s5617_s25, %s5617_s25, %s3671_s6  }
  0x40   : > { %s34_s12 = sadd.s32 1, %s3660_s22  ;;  %s41_s13 = sadd.s32 1, %s3652_s20 }
  0x41   : > { %p36_p13 = scmp.ge.s32.totalorder %s34_s12, 2  ;;  %p48_p6 = scmp.ne.s32.totalorder %s3652_s20, %s3648_s19 }
  0x42   : > { %p49_p10 = scmp.eq.s32.totalorder %s3664_s23, 0  ;;  %p3173_p3 = scmp.lt.s32.totalorder %s3664_s23, 2 }
  0x43   : > { %s6042_s12 = smov (%p36_p13, %s34_s12), 0  ;;  %p3845_p7 = por %p3747_p2, %p48_p6 }
  0x44   : > { %p50_p5 = por %p49_p10, %p48_p6  ;;  %s38_s14 = ssub.s32 %s3660_s22, %s6042_s12 }
  0x45   : > { %s5658_s8 = scalar_select %p3845_p7, 1, 0 }
  0x46   : > { %s246_s15 = sand.u32 1, %s3652_s20   ;;  %p39_p9 = scmp.eq.s32.totalorder %s38_s14, 0 }
  0x47   : > { %s3016_s10 = sshll.u32 %s246_s15, 8  ;;  %s3030_s16 = sshll.u32 %s3660_s22, 12 }
  0x48   : > { %s3854_s17 = scalar_select %p39_p9, %s3652_s20, %s41_s13  }
  0x49   : > { %s3859_s9 = scalar_lea.hbm %s5608_s0, %s3030_s16  ;;  %s250_s27 = scalar_lea.vmem [#allocation3], %s3016_s10 }
  0x4a   : > { %s257_s11 = sshll.u32 %s250_s27, 4  ;;  %p3863_p2 = pnand %p3173_p3, %p50_p5  ;;  %s3867_s11 = int_to_ptr.vmem [resolvable:$true] %s257_s11 }
  0x4b   : > { %s3869_s13 = scalar_lea.sflag [#allocation4], %s246_s15  ;;  %s3548_s14 = scalar_lea.hbm %s3859_s9, 4096 }
  0x4c   : > { %p3549_p11 = scmp.ne.s32.totalorder %s3859_s9, %s3548_s14  ;;  %p3550_p12 = pneg %p3863_p2 }
  0x4d   : > { %s3553_s24 = scalar_lea.hbm %s5608_s0, 8192  ;;  %p3554_p4 = scmp.lt.u32.totalorder %s3859_s9, %s5608_s0 }
  0x4e   : > { %p3551_p0 = pnand %p3550_p12, %p3549_p11  ;;  %p3555_p13 = scmp.lt.u32.totalorder %s3553_s24, %s3548_s14 }
  0x4f   : > { %p3557_p10 = scmp.lt.u32.totalorder %s3548_s14, %s3859_s9 }
  0x50   : > { %p3552_p1 = pneg %p3551_p0  ;;  %p3556_p6 = por %p3555_p13, %p3554_p4 }
  0x52   : > { %p3558_p3 = por %p3557_p10, %p3556_p6 }
  0x54   : > { %p3559_p5 = pnand %p3558_p3, %p3552_p1 }
  0x56   : > { %3562 = shalt.err (!%p3559_p5)
}
  0x57   : > { %s3563_s15 = scalar_lea.vmem %s3867_s11, 4096  ;;  %s3672_s10 = smov [#allocation3]  }
  0x58   : > { %p3564_p9 = scmp.ne.s32.totalorder %s3867_s11, %s3563_s15  ;;  %s3568_s16 = sshll.u32 %s3672_s10, 4  ;;  %s3569_s16 = int_to_ptr.vmem [resolvable:$false] %s3568_s16 }
  0x59   : > { %s3570_s7 = scalar_lea.vmem %s3569_s16, 8192  ;;  %p3571_p7 = scmp.lt.s32.totalorder %s3867_s11, %s3569_s16 }
  0x5a   : > { %p3566_p11 = pnand %p3564_p9, %p3550_p12  ;;  %p3572_p4 = scmp.lt.s32.totalorder %s3570_s7, %s3563_s15 }
  0x5c   : > { %p3567_p0 = pneg %p3566_p11  ;;  %p3573_p13 = por %p3572_p4, %p3571_p7 }
  0x5e   : > { %p3574_p6 = pnand %p3573_p13, %p3567_p0 }
  0x60   : > { %3577 = shalt.err (!%p3574_p6)
}
  0x61   : > { %s5660_s14 = smov 128   ;;  %269 = sbr.rel (%p3763_p8) target bundleno = 1039 (0x40f), region = 40 }
  0x62   : > { %3166 = dma.hbm_to_vmem [thread:$0]  (!%p3863_p2), %s3859_s9, 4096, %s3867_s11, %s3869_s13, %s5660_s14, %s5660_s14, %s3671_s6  }
  0x68   : > { %s3903_s24 = sand.u32 1, %s3648_s19   ;;  %p5661_p7 = scmp.ne.s32.totalorder %s5654_s28, 0 }
  0x69   : > { %s3020_s27 = sshll.u32 %s3903_s24, 8  ;;  %s272_s15 = scalar_lea.sflag [#allocation4], %s3903_s24 }
  0x6a   : > { %s3909_s25 = scalar_lea.vmem [#allocation3], %s3020_s27 }
  0x6b   : > { %3631 = dma.done.wait (%p5661_p7), %s272_s15, 4096  }
  0x6c   : > { %3633 = vsyncadd (%p5661_p7), %s272_s15, 4294963200  ;;  %p5662_p2 = scmp.ne.s32.totalorder %s5652_s26, 0 }
  0x6e   : > { %3635 = dma.done.wait (%p5662_p2), [#allocation7], 8192  }
  0x6f   : > { %3637 = vsyncadd (%p5662_p2), [#allocation7], 4294959104  ;;  %v3673_v0 = vmov 0.0   ;;  %v392_v1 = vld [vmem:[#allocation6 + $0x8] sm:$0xff]  ;;  %v394_v2 = vld [vmem:[#allocation6 + $0x18] sm:$0xff]  ;;  %v3674_v53 = vmov 0.0|0.0  }
  0x70   : > { %499 = vmatprep.mubr.f32.mxu0 %v3673_v0  ;;  %v391_v3 = vld [vmem:[#allocation6] sm:$0xff]  ;;  %v3032_v4 = vpack.c.bf16 %v394_v2, %v392_v1  ;;  %v393_v5 = vld [vmem:[#allocation6 + $0x10] sm:$0xff]  ;;  %v396_v6 = vld [vmem:[#allocation6 + $0x28] sm:$0xff]  ;;  %3112 = vmatprep.subr.bf16.mxu1 %v3674_v53  ;;  %s5456_s9 = scalar_lea.vmem [#allocation9], %s3020_s27  ;;  %s3031_s11 = sshll.u32 %s3656_s21, 12 }
  0x71   : > { %v398_v7 = vld [vmem:[#allocation6 + $0x38] sm:$0xff]  ;;  %v3034_v8 = vpack.c.bf16 %v393_v5, %v391_v3  ;;  %v395_v10 = vld [vmem:[#allocation6 + $0x20] sm:$0xff]  ;;  %v397_v11 = vld [vmem:[#allocation6 + $0x30] sm:$0xff]  ;;  %s2893_s13 = sshll.u32 %s5456_s9, 4  ;;  %s5555_s7 = scalar_lea.hbm %s5613_s5, %s3031_s11  ;;  %s5557_s13 = int_to_ptr.vmem [resolvable:$true] %s2893_s13 }
  0x72   : > { %v3036_v9 = vpack.c.bf16 %v398_v7, %v396_v6  ;;  %v400_v12 = vld [vmem:[#allocation6 + $0x48] sm:$0xff]  ;;  %3033 = vmatprep.subr.bf16.mxu0 %v3032_v4  ;;  %v402_v13 = vld [vmem:[#allocation6 + $0x58] sm:$0xff]  ;;  %v3038_v14 = vpack.c.bf16 %v397_v11, %v395_v10  ;;  %v399_v16 = vld [vmem:[#allocation6 + $0x40] sm:$0xff]  ;;  %s2880_s14 = scalar_lea.sflag [#allocation5], %s3903_s24  ;;  %s3578_s27 = scalar_lea.vmem %s5557_s13, 4096 }
  0x73   : > { %3035 = vmatpush1.bf16.msra.mxu0 %v3034_v8  ;;  %v3040_v15 = vpack.c.bf16 %v402_v13, %v400_v12  ;;  %v401_v17 = vld [vmem:[#allocation6 + $0x50] sm:$0xff]  ;;  %v404_v18 = vld [vmem:[#allocation6 + $0x68] sm:$0xff]  ;;  %v406_v19 = vld [vmem:[#allocation6 + $0x78] sm:$0xff]  ;;  %p3579_p8 = scmp.ne.s32.totalorder %s5557_s13, %s3578_s27  ;;  %p6033_p12 = scmp.ne.s32.totalorder %s5658_s8, 0 }
  0x74   : > { %3037 = vmatprep.subr.bf16.mxu0 %v3036_v9  ;;  %v3042_v20 = vpack.c.bf16 %v401_v17, %v399_v16  ;;  %v3044_v21 = vpack.c.bf16 %v406_v19, %v404_v18  ;;  %v403_v22 = vld [vmem:[#allocation6 + $0x60] sm:$0xff]  ;;  %v405_v23 = vld [vmem:[#allocation6 + $0x70] sm:$0xff]  ;;  %v408_v24 = vld [vmem:[#allocation6 + $0x88] sm:$0xff]  ;;  %s3676_s21 = smov [#allocation9]  }
  0x75   : > { %v410_v25 = vld [vmem:[#allocation6 + $0x98] sm:$0xff]  ;;  %v3046_v26 = vpack.c.bf16 %v405_v23, %v403_v22  ;;  %v407_v28 = vld [vmem:[#allocation6 + $0x80] sm:$0xff]  ;;  %v409_v29 = vld [vmem:[#allocation6 + $0x90] sm:$0xff]  ;;  %p3580_p1 = pnand %p3579_p8, %p6033_p12  ;;  %s3582_s15 = sshll.u32 %s3676_s21, 4  ;;  %s3583_s15 = int_to_ptr.vmem [resolvable:$false] %s3582_s15 }
  0x76   : > { %v3048_v27 = vpack.c.bf16 %v410_v25, %v408_v24  ;;  %v412_v30 = vld [vmem:[#allocation6 + $0xa8] sm:$0xff]  ;;  %v414_v31 = vld [vmem:[#allocation6 + $0xb8] sm:$0xff]  ;;  %v3050_v32 = vpack.c.bf16 %v409_v29, %v407_v28  ;;  %v411_v34 = vld [vmem:[#allocation6 + $0xa0] sm:$0xff]  ;;  %p3585_p3 = scmp.lt.s32.totalorder %s5557_s13, %s3583_s15 }
  0x77   : > { %3039 = vmatpush1.bf16.msra.mxu0 %v3038_v14  ;;  %v3052_v33 = vpack.c.bf16 %v414_v31, %v412_v30  ;;  %v413_v35 = vld [vmem:[#allocation6 + $0xb0] sm:$0xff]  ;;  %v416_v36 = vld [vmem:[#allocation6 + $0xc8] sm:$0xff]  ;;  %v418_v37 = vld [vmem:[#allocation6 + $0xd8] sm:$0xff]  ;;  %p3581_p10 = pneg %p3580_p1 }
  0x78   : > { %3041 = vmatprep.subr.bf16.mxu0 %v3040_v15  ;;  %v3054_v38 = vpack.c.bf16 %v413_v35, %v411_v34  ;;  %v3056_v39 = vpack.c.bf16 %v418_v37, %v416_v36  ;;  %v415_v40 = vld [vmem:[#allocation6 + $0xc0] sm:$0xff]  ;;  %v417_v41 = vld [vmem:[#allocation6 + $0xd0] sm:$0xff]  ;;  %v420_v42 = vld [vmem:[#allocation6 + $0xe8] sm:$0xff] }
  0x79   : > { %v422_v43 = vld [vmem:[#allocation6 + $0xf8] sm:$0xff]  ;;  %v3058_v44 = vpack.c.bf16 %v417_v41, %v415_v40  ;;  %v419_v46 = vld [vmem:[#allocation6 + $0xe0] sm:$0xff]  ;;  %v421_v47 = vld [vmem:[#allocation6 + $0xf0] sm:$0xff] }
  0x7a   : > { %v3060_v45 = vpack.c.bf16 %v422_v43, %v420_v42  ;;  %v3062_v48 = vpack.c.bf16 %v421_v47, %v419_v46  ;;  %v2452_v49 = vld [vmem:[#allocation8] sm:$0xff]  ;;  %v2453_v50 = vld [vmem:[#allocation8 + $0x8] sm:$0xff]  ;;  %v2454_v54 = vld [vmem:[#allocation8 + $0x10] sm:$0xff] }
  0x7b   : > { %3043 = vmatpush1.bf16.msra.mxu0 %v3042_v20  ;;  %v359_v51 = vld [vmem:[%s3909_s25] sm:$0xff]  ;;  %v3065_v52 = vpack.c.bf16 %v2453_v50, %v2452_v49  ;;  %v2455_v55 = vld [vmem:[#allocation8 + $0x18] sm:$0xff]  ;;  %v360_v56 = vld [vmem:[%s3909_s25 + $0x8] sm:$0xff] }
  0x7c   : > { %3045 = vmatprep.subr.bf16.mxu0 %v3044_v21  ;;  %v3068_v57 = vpack.c.bf16 %v2455_v55, %v2454_v54  ;;  %v2456_v58 = vld [vmem:[#allocation8 + $0x20] sm:$0xff]  ;;  %v2457_v59 = vld [vmem:[#allocation8 + $0x28] sm:$0xff]  ;;  %v361_v60 = vld [vmem:[%s3909_s25 + $0x10] sm:$0xff] }
  0x7d   : > { %3128 = vmatpush1.bf16.msra.mxu1 %v3065_v52  ;;  %v3071_v61 = vpack.c.bf16 %v2457_v59, %v2456_v58  ;;  %v362_v62 = vld [vmem:[%s3909_s25 + $0x18] sm:$0xff]  ;;  %v363_v63 = vld [vmem:[%s3909_s25 + $0x20] sm:$0xff]  ;;  %v364_v1 = vld [vmem:[%s3909_s25 + $0x28] sm:$0xff] }
  0x7e   : > { %3113 = vmatprep.subr.bf16.mxu1 %v3674_v53  ;;  %v365_v2 = vld [vmem:[%s3909_s25 + $0x30] sm:$0xff]  ;;  %v366_v3 = vld [vmem:[%s3909_s25 + $0x38] sm:$0xff]  ;;  %v367_v4 = vld [vmem:[%s3909_s25 + $0x40] sm:$0xff] }
  0x7f   : > { %3047 = vmatpush1.bf16.msra.mxu0 %v3046_v26  ;;  %v368_v5 = vld [vmem:[%s3909_s25 + $0x48] sm:$0xff]  ;;  %v369_v6 = vld [vmem:[%s3909_s25 + $0x50] sm:$0xff]  ;;  %v370_v7 = vld [vmem:[%s3909_s25 + $0x58] sm:$0xff] }
  0x80   : > { %3049 = vmatprep.subr.bf16.mxu0 %v3048_v27  ;;  %v371_v8 = vld [vmem:[%s3909_s25 + $0x60] sm:$0xff]  ;;  %v372_v9 = vld [vmem:[%s3909_s25 + $0x68] sm:$0xff]  ;;  %v373_v10 = vld [vmem:[%s3909_s25 + $0x70] sm:$0xff] }
  0x81   : > { %3129 = vmatpush1.bf16.msra.mxu1 %v3068_v57  ;;  %v374_v11 = vld [vmem:[%s3909_s25 + $0x78] sm:$0xff]  ;;  %v375_v12 = vld [vmem:[%s3909_s25 + $0x80] sm:$0xff]  ;;  %v376_v13 = vld [vmem:[%s3909_s25 + $0x88] sm:$0xff] }
  0x82   : > { %3114 = vmatprep.subr.bf16.mxu1 %v3674_v53  ;;  %v377_v14 = vld [vmem:[%s3909_s25 + $0x90] sm:$0xff]  ;;  %v378_v15 = vld [vmem:[%s3909_s25 + $0x98] sm:$0xff]  ;;  %v379_v16 = vld [vmem:[%s3909_s25 + $0xa0] sm:$0xff] }
  0x83   : > { %3051 = vmatpush1.bf16.msra.mxu0 %v3050_v32  ;;  %v380_v17 = vld [vmem:[%s3909_s25 + $0xa8] sm:$0xff]  ;;  %v2458_v18 = vld [vmem:[#allocation8 + $0x30] sm:$0xff]  ;;  %v2459_v19 = vld [vmem:[#allocation8 + $0x38] sm:$0xff] }
  0x84   : > { %3053 = vmatprep.subr.bf16.mxu0 %v3052_v33  ;;  %v3074_v20 = vpack.c.bf16 %v2459_v19, %v2458_v18  ;;  %v381_v21 = vld [vmem:[%s3909_s25 + $0xb0] sm:$0xff]  ;;  %v2460_v22 = vld [vmem:[#allocation8 + $0x40] sm:$0xff]  ;;  %v2461_v23 = vld [vmem:[#allocation8 + $0x48] sm:$0xff] }
  0x85   : > { %3130 = vmatpush1.bf16.msra.mxu1 %v3071_v61  ;;  %v382_v24 = vld [vmem:[%s3909_s25 + $0xb8] sm:$0xff]  ;;  %v3077_v25 = vpack.c.bf16 %v2461_v23, %v2460_v22  ;;  %v383_v26 = vld [vmem:[%s3909_s25 + $0xc0] sm:$0xff]  ;;  %v2462_v27 = vld [vmem:[#allocation8 + $0x50] sm:$0xff] }
  0x86   : > { %3115 = vmatprep.subr.bf16.mxu1 %v3674_v53  ;;  %v2463_v28 = vld [vmem:[#allocation8 + $0x58] sm:$0xff]  ;;  %v384_v30 = vld [vmem:[%s3909_s25 + $0xc8] sm:$0xff]  ;;  %v385_v31 = vld [vmem:[%s3909_s25 + $0xd0] sm:$0xff] }
  0x87   : > { %3055 = vmatpush1.bf16.msra.mxu0 %v3054_v38  ;;  %v3080_v29 = vpack.c.bf16 %v2463_v28, %v2462_v27  ;;  %v2464_v32 = vld [vmem:[#allocation8 + $0x60] sm:$0xff]  ;;  %v2465_v33 = vld [vmem:[#allocation8 + $0x68] sm:$0xff]  ;;  %v386_v35 = vld [vmem:[%s3909_s25 + $0xd8] sm:$0xff] }
  0x88   : > { %3057 = vmatprep.subr.bf16.mxu0 %v3056_v39  ;;  %v3083_v34 = vpack.c.bf16 %v2465_v33, %v2464_v32  ;;  %v2466_v36 = vld [vmem:[#allocation8 + $0x70] sm:$0xff]  ;;  %v2467_v37 = vld [vmem:[#allocation8 + $0x78] sm:$0xff]  ;;  %v387_v38 = vld [vmem:[%s3909_s25 + $0xe0] sm:$0xff] }
  0x89   : > { %3131 = vmatpush1.bf16.msra.mxu1 %v3074_v20  ;;  %v3086_v39 = vpack.c.bf16 %v2467_v37, %v2466_v36  ;;  %v388_v40 = vld [vmem:[%s3909_s25 + $0xe8] sm:$0xff]  ;;  %v389_v41 = vld [vmem:[%s3909_s25 + $0xf0] sm:$0xff]  ;;  %v2468_v42 = vld [vmem:[#allocation8 + $0x80] sm:$0xff] }
  0x8a   : > { %3116 = vmatprep.subr.bf16.mxu1 %v3674_v53  ;;  %v2469_v43 = vld [vmem:[#allocation8 + $0x88] sm:$0xff]  ;;  %v2470_v46 = vld [vmem:[#allocation8 + $0x90] sm:$0xff]  ;;  %v2471_v47 = vld [vmem:[#allocation8 + $0x98] sm:$0xff] }
  0x8b   : > { %3059 = vmatpush1.bf16.msra.mxu0 %v3058_v44  ;;  %v3089_v44 = vpack.c.bf16 %v2469_v43, %v2468_v42  ;;  %v2472_v49 = vld [vmem:[#allocation8 + $0xa0] sm:$0xff]  ;;  %v2473_v50 = vld [vmem:[#allocation8 + $0xa8] sm:$0xff]  ;;  %v2478_v58 = vld [vmem:[#allocation8 + $0xd0] sm:$0xff] }
  0x8c   : > { %3061 = vmatprep.subr.bf16.mxu0 %v3060_v45  ;;  %v390_v45 = vld [vmem:[%s3909_s25 + $0xf8] sm:$0xff]  ;;  %v2476_v55 = vld [vmem:[#allocation8 + $0xc0] sm:$0xff]  ;;  %s3584_s25 = scalar_lea.vmem %s3583_s15, 8192 }
  0x8d   : > { %3132 = vmatpush1.bf16.msra.mxu1 %v3077_v25  ;;  %v2479_v59 = vld [vmem:[#allocation8 + $0xd8] sm:$0xff]  ;;  %p3586_p5 = scmp.lt.s32.totalorder %s3584_s25, %s3578_s27 }
  0x8e   : > { %3117 = vmatprep.subr.bf16.mxu1 %v3674_v53 }
  0x8f   : > { %3063 = vmatpush1.bf16.msra.mxu0 %v3062_v48  ;;  %v3092_v48 = vpack.c.bf16 %v2471_v47, %v2470_v46  ;;  %p3587_p9 = por %p3586_p5, %p3585_p3 }
  0x90   : > { %3064 = vmatprep.subr.bf16.mxu0 %v3674_v53 }
  0x91   : > { %3133 = vmatpush1.bf16.msra.mxu1 %v3080_v29  ;;  %p3588_p11 = pnand %p3587_p9, %p3581_p10 }
  0x92   : > { %500 = vmatmul.mubr.f32.vlgmr.msra.gmra.mrb[0].mxu0 %v359_v51  ;;  %3118 = vmatprep.subr.bf16.mxu1 %v3674_v53  ;;  %v2474_v51 = vld [vmem:[#allocation8 + $0xb0] sm:$0xff] }
  0x93   : > { %505 = vmatprep.mubr.f32.mxu0 %v3673_v0  ;;  %3066 = vmatpush1.bf16.msra.mxu0 %v3065_v52  ;;  %v2475_v52 = vld [vmem:[#allocation8 + $0xb8] sm:$0xff] }
  0x94   : > { %3067 = vmatprep.subr.bf16.mxu0 %v3674_v53  ;;  %v3098_v54 = vpack.c.bf16 %v2475_v52, %v2474_v51 }
  0x95   : > { %3134 = vmatpush1.bf16.msra.mxu1 %v3083_v34 }
  0x96   : > { %506 = vmatmul.mubr.f32.gmra.mrb[2].mxu0 %v360_v56  ;;  %3119 = vmatprep.subr.bf16.mxu1 %v3674_v53  ;;  %v2477_v56 = vld [vmem:[#allocation8 + $0xc8] sm:$0xff] }
  0x97   : > { %511 = vmatprep.mubr.f32.mxu0 %v3673_v0  ;;  %3069 = vmatpush1.bf16.msra.mxu0 %v3068_v57  ;;  %v3101_v57 = vpack.c.bf16 %v2477_v56, %v2476_v55 }
  0x98   : > { %3070 = vmatprep.subr.bf16.mxu0 %v3674_v53 }
  0x99   : > { %3135 = vmatpush1.bf16.msra.mxu1 %v3086_v39 }
  0x9a   : > { %512 = vmatmul.mubr.f32.gmra.mrb[4].mxu0 %v361_v60  ;;  %3120 = vmatprep.subr.bf16.mxu1 %v3674_v53  ;;  %v3104_v60 = vpack.c.bf16 %v2479_v59, %v2478_v58 }
  0x9b   : > { %517 = vmatprep.mubr.f32.mxu0 %v3673_v0  ;;  %3072 = vmatpush1.bf16.msra.mxu0 %v3071_v61  ;;  %v2480_v61 = vld [vmem:[#allocation8 + $0xe0] sm:$0xff] }
  0x9c   : > { %3073 = vmatprep.subr.bf16.mxu0 %v3674_v53 }
  0x9d   : > { %3136 = vmatpush1.bf16.msra.mxu1 %v3089_v44 }
  0x9e   : > { %518 = vmatmul.mubr.f32.gmra.mrb[6].mxu0 %v362_v62  ;;  %3121 = vmatprep.subr.bf16.mxu1 %v3674_v53  ;;  %v2481_v62 = vld [vmem:[#allocation8 + $0xe8] sm:$0xff] }
  0x9f   : > { %523 = vmatprep.mubr.f32.mxu0 %v3673_v0  ;;  %3075 = vmatpush1.bf16.msra.mxu0 %v3074_v20 }
  0xa0   : > { %3076 = vmatprep.subr.bf16.mxu0 %v3674_v53 }
  0xa1   : > { %3137 = vmatpush1.bf16.msra.mxu1 %v3092_v48 }
  0xa2   : > { %524 = vmatmul.mubr.f32.gmra.mrb[8].mxu0 %v363_v63  ;;  %3122 = vmatprep.subr.bf16.mxu1 %v3674_v53  ;;  %v3107_v63 = vpack.c.bf16 %v2481_v62, %v2480_v61 }
  0xa3   : > { %529 = vmatprep.mubr.f32.mxu0 %v3673_v0  ;;  %3078 = vmatpush1.bf16.msra.mxu0 %v3077_v25 }
  0xa4   : > { %3079 = vmatprep.subr.bf16.mxu0 %v3674_v53 }
  0xa6   : > { %530 = vmatmul.mubr.f32.gmra.mrb[10].mxu0 %v364_v1  ;;  %v2482_v1 = vld [vmem:[#allocation8 + $0xf0] sm:$0xff] }
  0xa7   : > { %535 = vmatprep.mubr.f32.mxu0 %v3673_v0  ;;  %3081 = vmatpush1.bf16.msra.mxu0 %v3080_v29 }
  0xa8   : > { %3082 = vmatprep.subr.bf16.mxu0 %v3674_v53 }
  0xaa   : > { %536 = vmatmul.mubr.f32.gmra.mrb[12].mxu0 %v365_v2  ;;  %v2483_v2 = vld [vmem:[#allocation8 + $0xf8] sm:$0xff] }
  0xab   : > { %541 = vmatprep.mubr.f32.mxu0 %v3673_v0  ;;  %3084 = vmatpush1.bf16.msra.mxu0 %v3083_v34 }
  0xac   : > { %3085 = vmatprep.subr.bf16.mxu0 %v3674_v53 }
  0xae   : > { %542 = vmatmul.mubr.f32.gmra.mrb[14].mxu0 %v366_v3  ;;  %v3110_v3 = vpack.c.bf16 %v2483_v2, %v2482_v1 }
  0xaf   : > { %547 = vmatprep.mubr.f32.mxu0 %v3673_v0  ;;  %3087 = vmatpush1.bf16.msra.mxu0 %v3086_v39 }
  0xb0   : > { %3088 = vmatprep.subr.bf16.mxu0 %v3674_v53 }
  0xb2   : > { %548 = vmatmul.mubr.f32.gmra.mrb[16].mxu0 %v367_v4  ;;  %v425_v4 = vlaneseq }
  0xb3   : > { %553 = vmatprep.mubr.f32.mxu0 %v3673_v0  ;;  %3090 = vmatpush1.bf16.msra.mxu0 %v3089_v44 }
  0xb4   : > { %3091 = vmatprep.subr.bf16.mxu0 %v3674_v53 }
  0xb6   : > { %554 = vmatmul.mubr.f32.gmra.mrb[18].mxu0 %v368_v5  ;;  %v426_v5 = vshrl.u32 %v425_v4, 7 }
  0xb7   : > { %559 = vmatprep.mubr.f32.mxu0 %v3673_v0  ;;  %3093 = vmatpush1.bf16.msra.mxu0 %v3092_v48 }
  0xb8   : > { %3094 = vmatprep.subr.bf16.mxu0 %v3674_v53 }
  0xba   : > { %560 = vmatmul.mubr.f32.gmra.mrb[20].mxu0 %v369_v6  ;;  %v427_v6 = vsub.s32 0, %v426_v5 }
  0xbb   : > { %565 = vmatprep.mubr.f32.mxu0 %v3673_v0 }
  0xbe   : > { %566 = vmatmul.mubr.f32.gmra.mrb[22].mxu0 %v370_v7  ;;  %v423_v7 = vld [vmem:[%s5610_s2] sm:$0x3] }
  0xbf   : > { %571 = vmatprep.mubr.f32.mxu0 %v3673_v0 }
  0xc2   : > { %572 = vmatmul.mubr.f32.gmra.mrb[24].mxu0 %v371_v8  ;;  %v431_v8 = vsub.s32 1, %v426_v5 }
  0xc3   : > { %577 = vmatprep.mubr.f32.mxu0 %v3673_v0 }
  0xc6   : > { %578 = vmatmul.mubr.f32.gmra.mrb[26].mxu0 %v372_v9  ;;  %v4018_v9 = vrot.slane %v423_v7, %v427_v6 }
  0xc7   : > { %583 = vmatprep.mubr.f32.mxu0 %v3673_v0 }
  0xca   : > { %584 = vmatmul.mubr.f32.gmra.mrb[28].mxu0 %v373_v10  ;;  %v4020_v10 = vrot.slane %v423_v7, %v431_v8 }
  0xcb   : > { %589 = vmatprep.mubr.f32.mxu0 %v3673_v0 }
  0xce   : > { %590 = vmatmul.mubr.f32.gmra.mrb[30].mxu0 %v374_v11 }
  0xcf   : > { %595 = vmatprep.mubr.f32.mxu0 %v3673_v0 }
  0xd2   : > { %596 = vmatmul.mubr.f32.gmra.mrb[32].mxu0 %v375_v12 }
  0xd3   : > { %601 = vmatprep.mubr.f32.mxu0 %v3673_v0 }
  0xd6   : > { %602 = vmatmul.mubr.f32.gmra.mrb[34].mxu0 %v376_v13 }
  0xd7   : > { %607 = vmatprep.mubr.f32.mxu0 %v3673_v0 }
  0xda   : > { %608 = vmatmul.mubr.f32.gmra.mrb[36].mxu0 %v377_v14 }
  0xdb   : > { %613 = vmatprep.mubr.f32.mxu0 %v3673_v0 }
  0xde   : > { %614 = vmatmul.mubr.f32.gmra.mrb[38].mxu0 %v378_v15 }
  0xdf   : > { %619 = vmatprep.mubr.f32.mxu0 %v3673_v0 }
  0xe2   : > { %620 = vmatmul.mubr.f32.gmra.mrb[40].mxu0 %v379_v16 }
  0xe3   : > { %625 = vmatprep.mubr.f32.mxu0 %v3673_v0 }
  0xe6   : > { %626 = vmatmul.mubr.f32.gmra.mrb[42].mxu0 %v380_v17 }
  0xe7   : > { %631 = vmatprep.mubr.f32.mxu0 %v3673_v0 }
  0xea   : > { %632 = vmatmul.mubr.f32.gmra.mrb[44].mxu0 %v381_v21 }
  0xeb   : > { %637 = vmatprep.mubr.f32.mxu0 %v3673_v0 }
  0xee   : > { %638 = vmatmul.mubr.f32.gmra.mrb[46].mxu0 %v382_v24 }
  0xef   : > { %643 = vmatprep.mubr.f32.mxu0 %v3673_v0 }
  0xf2   : > { %644 = vmatmul.mubr.f32.gmra.mrb[48].mxu0 %v383_v26 }
  0xf3   : > { %649 = vmatprep.mubr.f32.mxu0 %v3673_v0 }
  0xf6   : > { %650 = vmatmul.mubr.f32.gmra.mrb[50].mxu0 %v384_v30 }
  0xf7   : > { %655 = vmatprep.mubr.f32.mxu0 %v3673_v0 }
  0xfa   : > { %656 = vmatmul.mubr.f32.gmra.mrb[52].mxu0 %v385_v31 }
  0xfb   : > { %661 = vmatprep.mubr.f32.mxu0 %v3673_v0 }
  0xfe   : > { %662 = vmatmul.mubr.f32.gmra.mrb[54].mxu0 %v386_v35  ;;  %v5619_v35 = vmov -1.0  }
  0xff   : > { %667 = vmatprep.mubr.f32.mxu0 %v3673_v0 }
 0x102   : > { %668 = vmatmul.mubr.f32.gmra.mrb[56].mxu0 %v387_v38 }
 0x103   : > { %673 = vmatprep.mubr.f32.mxu0 %v3673_v0 }
 0x106   : > { %674 = vmatmul.mubr.f32.gmra.mrb[58].mxu0 %v388_v40 }
 0x107   : > { %679 = vmatprep.mubr.f32.mxu0 %v3673_v0 }
 0x10a   : > { %680 = vmatmul.mubr.f32.gmra.mrb[60].mxu0 %v389_v41 }
 0x10b   : > { %685 = vmatprep.mubr.f32.mxu0 %v3673_v0  ;;  %v3095_v0 = vpack.c.bf16 %v2473_v50, %v2472_v49 }
 0x10d   : > { %3096 = vmatpush1.bf16.msra.mxu0 %v3095_v0  ;;  %3138 = vmatpush1.bf16.msra.mxu1 %v3095_v0 }
 0x10e   : > { %686 = vmatmul.mubr.f32.gmra.mrb[62].mxu0 %v390_v45  ;;  %3097 = vmatprep.subr.bf16.mxu0 %v3674_v53 }
 0x10f   : > { %3123 = vmatprep.subr.bf16.mxu1 %v3674_v53 }
 0x111   : > { %3099 = vmatpush1.bf16.msra.mxu0 %v3098_v54  ;;  %3139 = vmatpush1.bf16.msra.mxu1 %v3098_v54 }
 0x112   : > { %3100 = vmatprep.subr.bf16.mxu0 %v3674_v53  ;;  %3124 = vmatprep.subr.bf16.mxu1 %v3674_v53 }
 0x115   : > { %3102 = vmatpush1.bf16.msra.mxu0 %v3101_v57  ;;  %3140 = vmatpush1.bf16.msra.mxu1 %v3101_v57 }
 0x116   : > { %3103 = vmatprep.subr.bf16.mxu0 %v3674_v53  ;;  %3125 = vmatprep.subr.bf16.mxu1 %v3674_v53 }
 0x119   : > { %3105 = vmatpush1.bf16.msra.mxu0 %v3104_v60  ;;  %3141 = vmatpush1.bf16.msra.mxu1 %v3104_v60 }
 0x11a   : > { %3106 = vmatprep.subr.bf16.mxu0 %v3674_v53  ;;  %3126 = vmatprep.subr.bf16.mxu1 %v3674_v53 }
 0x11d   : > { %3108 = vmatpush1.bf16.msra.mxu0 %v3107_v63  ;;  %3142 = vmatpush1.bf16.msra.mxu1 %v3107_v63 }
 0x11e   : > { %3109 = vmatprep.subr.bf16.mxu0 %v3674_v53  ;;  %3127 = vmatprep.subr.bf16.mxu1 %v3674_v53 }
 0x121   : > { %3111 = vmatpush1.bf16.msra.mxu0 %v3110_v3  ;;  %3143 = vmatpush1.bf16.msra.mxu1 %v3110_v3 }
 0x165   : > { %v501_v11 = vpop.f32.mrb[0].mxu0 }
 0x166   : > { %v502_v53 = vadd.f32 %v501_v11, %v4018_v9  ;;  %v503_v12 = vpop.f32.mrb[1].mxu0 }
 0x167   : > { %v504_v13 = vadd.f32 %v503_v12, %v4020_v10 }
 0x168   : > { %v756_v14 = vmul.f32 0.70710677, %v502_v53  ;;  %v4026_v33 = vmul.f32 0.5, %v502_v53 }
 0x169   : > { %v757_v15 = vmul.f32 0.70710677, %v504_v13  ;;  %v507_v16 = vpop.f32.mrb[2].mxu0  ;;  %v4031_v37 = vmul.f32 0.5, %v504_v13 }
 0x16a   : > { %v948_v17 = vand.u32 2147483647, %v756_v14  ;;  %v508_v18 = vadd.f32 %v507_v16, %v4018_v9  ;;  %v509_v19 = vpop.f32.mrb[3].mxu0  ;;  %vm820_vm0 = vcmp.ge.f32.partialorder %v756_v14, 0.0 }
 0x16b   : > { %v949_v20 = vand.u32 2147483647, %v757_v15  ;;  %v510_v21 = vadd.f32 %v509_v19, %v4020_v10  ;;  %vm821_vm1 = vcmp.ge.f32.partialorder %v757_v15, 0.0  ;;  %v4029_v36 = vsel %vm820_vm0, 1.0, %v5619_v35 }
 0x16c   : > { %v1012_v22 = vmul.f32 0.3275911, %v948_v17  ;;  %v1844_v23 = vsub.f32 0.0, %v948_v17  ;;  %v758_v25 = vmul.f32 0.70710677, %v508_v18  ;;  %v4034_v41 = vsel %vm821_vm1, 1.0, %v5619_v35 }
 0x16d   : > { %v1845_v24 = vsub.f32 0.0, %v949_v20  ;;  %v1013_v27 = vmul.f32 0.3275911, %v949_v20  ;;  %v759_v28 = vmul.f32 0.70710677, %v510_v21  ;;  %v513_v29 = vpop.f32.mrb[4].mxu0 }
 0x16e   : > { %v1076_v26 = vadd.f32 1.0, %v1012_v22  ;;  %v1908_v30 = vmul.f32 %v1844_v23, %v948_v17  ;;  %v950_v31 = vand.u32 2147483647, %v758_v25  ;;  %v515_v32 = vpop.f32.mrb[5].mxu0  ;;  %v514_v44 = vadd.f32 %v513_v29, %v4018_v9 }
 0x16f   : > { %v1909_v34 = vmul.f32 %v1845_v24, %v949_v20  ;;  %v1077_v42 = vadd.f32 1.0, %v1013_v27  ;;  %v951_v43 = vand.u32 2147483647, %v759_v28  ;;  %vm822_vm2 = vcmp.ge.f32.partialorder %v758_v25, 0.0 }
 0x170   : > { %3236 = vrcp.f32 %v1076_v26  ;;  %v1014_v38 = vmul.f32 0.3275911, %v950_v31  ;;  %v1846_v39 = vsub.f32 0.0, %v950_v31  ;;  %v1972_v46 = vmul.f32 1.442695, %v1908_v30 }
 0x171   : > { %v519_v40 = vpop.f32.mrb[6].mxu0  ;;  %vm823_vm3 = vcmp.ge.f32.partialorder %v759_v28, 0.0  ;;  %v516_v47 = vadd.f32 %v515_v32, %v4020_v10  ;;  %v1974_v48 = vmul.f32 1.442695, %v1909_v34  ;;  %v1847_v50 = vsub.f32 0.0, %v951_v43 }
 0x172   : > { %v521_v45 = vpop.f32.mrb[7].mxu0  ;;  %v1910_v49 = vmul.f32 %v1846_v39, %v950_v31  ;;  %v760_v0 = vmul.f32 0.70710677, %v514_v44  ;;  %v4038_v51 = vmul.f32 0.5, %v508_v18  ;;  %v1078_v52 = vadd.f32 1.0, %v1014_v38 }
 0x173   : > { %v4040_v54 = vmul.f32 0.5, %v510_v21  ;;  %v761_v55 = vmul.f32 0.70710677, %v516_v47  ;;  %3238 = vrcp.f32 %v1077_v42  ;;  %v4043_v57 = vsel %vm822_vm2, 1.0, %v5619_v35 }
 0x174   : > { %v1015_v58 = vmul.f32 0.3275911, %v951_v43  ;;  %v952_v59 = vand.u32 2147483647, %v760_v0  ;;  %3240 = vpow2.f32 %v1972_v46  ;;  %v4047_v61 = vsel %vm823_vm3, 1.0, %v5619_v35 }
 0x175   : > { %v525_v56 = vpop.f32.mrb[8].mxu0  ;;  %v1911_v62 = vmul.f32 %v1847_v50, %v951_v43  ;;  %v953_v63 = vand.u32 2147483647, %v761_v55  ;;  %3242 = vpow2.f32 %v1974_v48  ;;  %v1976_v1 = vmul.f32 1.442695, %v1910_v49 }
 0x176   : > { %v527_v60 = vpop.f32.mrb[9].mxu0  ;;  %v4049_v2 = vmul.f32 0.5, %v514_v44  ;;  %v1848_v3 = vsub.f32 0.0, %v952_v59  ;;  %3244 = vrcp.f32 %v1078_v52  ;;  %v1016_v4 = vmul.f32 0.3275911, %v952_v59 }
 0x177   : > { %v1849_v5 = vsub.f32 0.0, %v953_v63  ;;  %v520_v6 = vadd.f32 %v519_v40, %v4018_v9  ;;  %v1079_v11 = vadd.f32 1.0, %v1015_v58  ;;  %vm824_vm4 = vcmp.ge.f32.partialorder %v760_v0, 0.0 }
 0x178   : > { %5663 = vst [vmem:[#allocation13_spill] sm:$0xff] %v4049_v2  ;;  %v1017_v53 = vmul.f32 0.3275911, %v953_v63  ;;  %v522_v12 = vadd.f32 %v521_v45, %v4020_v10  ;;  %v1978_v15 = vmul.f32 1.442695, %v1911_v62  ;;  %v1912_v16 = vmul.f32 %v1848_v3, %v952_v59 }
 0x179   : > { %v4052_v7 = vpop.f32.mrb[10].mxu0  ;;  %v4060_v17 = vmul.f32 0.5, %v516_v47  ;;  %3246 = vpow2.f32 %v1976_v1  ;;  %vm825_vm5 = vcmp.ge.f32.partialorder %v761_v55, 0.0  ;;  %v1913_v18 = vmul.f32 %v1849_v5, %v953_v63 }
 0x17a   : > { %v4054_v8 = vpop.eup %3236  ;;  %v4057_v13 = vpop.f32.mrb[11].mxu0  ;;  %v762_v19 = vmul.f32 0.70710677, %v520_v6  ;;  %v4063_v21 = vsel %vm824_vm4, 1.0, %v5619_v35  ;;  %v1080_v22 = vadd.f32 1.0, %v1016_v4  ;;  %3248 = vrcp.f32 %v1079_v11 }
 0x17b   : > { %v1268_v14 = vmul.f32 1.0614054, %v4054_v8  ;;  %v763_v23 = vmul.f32 0.70710677, %v522_v12  ;;  %v1081_v24 = vadd.f32 1.0, %v1017_v53  ;;  %v526_v26 = vadd.f32 %v525_v56, %v4018_v9 }
 0x17c   : > { %v954_v25 = vand.u32 2147483647, %v762_v19  ;;  %3250 = vpow2.f32 %v1978_v15  ;;  %v1980_v29 = vmul.f32 1.442695, %v1912_v16  ;;  %v4068_v30 = vsel %vm825_vm5, 1.0, %v5619_v35 }
 0x17d   : > { %v1332_v20 = vadd.f32 -1.4531521, %v1268_v14  ;;  %v537_v27 = vpop.f32.mrb[12].mxu0  ;;  %v4072_v32 = vpop.eup %3238  ;;  %v1982_v34 = vmul.f32 1.442695, %v1913_v18  ;;  %v4074_v38 = vmul.f32 0.5, %v520_v6  ;;  %3252 = vrcp.f32 %v1080_v22 }
 0x17e   : > { %v4070_v31 = vpop.f32.mrb[13].mxu0  ;;  %v1850_v39 = vsub.f32 0.0, %v954_v25  ;;  %v955_v40 = vand.u32 2147483647, %v763_v23  ;;  %v3241_v42 = vpop.eup %3240  ;;  %v4076_v44 = vmul.f32 0.70710677, %v526_v26  ;;  %v4079_v45 = vadd.f32 %v527_v60, %v4020_v10 }
 0x17f   : > { %v1396_v28 = vmul.f32 %v4054_v8, %v1332_v20  ;;  %5664 = vst [vmem:[#allocation14_spill] sm:$0xff] %v4074_v38  ;;  %v4083_v47 = vpop.eup %3242  ;;  %3254 = vrcp.f32 %v1081_v24  ;;  %vm826_vm6 = vcmp.ge.f32.partialorder %v762_v19, 0.0  ;;  %v1018_v48 = vmul.f32 0.3275911, %v954_v25 }
 0x180   : > { %5665 = vst [vmem:[#allocation15_spill] sm:$0xff] %v4079_v45  ;;  %v1851_v49 = vsub.f32 0.0, %v955_v40  ;;  %v4087_v0 = vpop.eup %3244  ;;  %v1914_v55 = vmul.f32 %v1850_v39, %v954_v25  ;;  %v956_v56 = vand.u32 2147483647, %v4076_v44  ;;  %v4092_v58 = vmul.f32 0.70710677, %v4079_v45 }
 0x181   : > { %v1460_v43 = vadd.f32 1.4214138, %v1396_v28  ;;  %v4081_v46 = vpop.f32.mrb[14].mxu0  ;;  %3256 = vpow2.f32 %v1980_v29  ;;  %v4094_v59 = vmul.f32 0.5, %v522_v12  ;;  %vm827_vm7 = vcmp.ge.f32.partialorder %v763_v23, 0.0 }
 0x182   : > { %v4085_v50 = vpop.f32.mrb[15].mxu0  ;;  %5666 = vst [vmem:[#allocation16_spill] sm:$0xff] %v4092_v58  ;;  %v1019_v60 = vmul.f32 0.3275911, %v955_v40  ;;  %3258 = vpow2.f32 %v1982_v34  ;;  %v4097_v63 = vsel %vm826_vm6, 1.0, %v5619_v35  ;;  %v1852_v1 = vsub.f32 0.0, %v956_v56 }
 0x183   : > { %v1524_v52 = vmul.f32 %v4054_v8, %v1460_v43  ;;  %5667 = vst [vmem:[#allocation17_spill] sm:$0xff] %v4094_v59  ;;  %5668 = vst [vmem:[#allocation18_spill] sm:$0xff] %v4097_v63  ;;  %v4099_v3 = vpop.eup %3246  ;;  %v1082_v4 = vadd.f32 1.0, %v1018_v48  ;;  %v1915_v5 = vmul.f32 %v1851_v49, %v955_v40  ;;  %v957_v6 = vand.u32 2147483647, %v4092_v58 }
 0x184   : > { %v532_v11 = vadd.f32 %v4052_v7, %v4018_v9  ;;  %v1984_v14 = vmul.f32 1.442695, %v1914_v55  ;;  %v4108_v15 = vsel %vm827_vm7, 1.0, %v5619_v35  ;;  %v1020_v16 = vmul.f32 0.3275911, %v956_v56  ;;  %v4112_v19 = vpop.eup %3248 }
 0x185   : > { %v1588_v62 = vadd.f32 -0.28449672, %v1524_v52  ;;  %v4104_v53 = vpop.f32.mrb[16].mxu0  ;;  %5669 = vst [vmem:[#allocation19_spill] sm:$0xff] %v4108_v15  ;;  %v1083_v20 = vadd.f32 1.0, %v1019_v60  ;;  %v1916_v22 = vmul.f32 %v1852_v1, %v956_v56  ;;  %v1853_v24 = vsub.f32 0.0, %v957_v6 }
 0x186   : > { %v4110_v18 = vpop.f32.mrb[17].mxu0  ;;  %v1021_v23 = vmul.f32 0.3275911, %v957_v6  ;;  %v4114_v25 = vpop.eup %3250  ;;  %v4116_v28 = vmul.f32 0.5, %v526_v26  ;;  %vm828_vm8 = vcmp.ge.f32.partialorder %v4076_v44, 0.0  ;;  %3260 = vrcp.f32 %v1082_v4 }
 0x187   : > { %v1652_v12 = vmul.f32 %v4054_v8, %v1588_v62  ;;  %v766_v29 = vmul.f32 0.70710677, %v532_v11  ;;  %v1986_v34 = vmul.f32 1.442695, %v1915_v5  ;;  %v534_v39 = vadd.f32 %v4057_v13, %v4020_v10  ;;  %v4124_v48 = vpop.eup %3252 }
 0x188   : > { %5670 = vst [vmem:[#allocation20_spill] sm:$0xff] %v4116_v28  ;;  %v538_v40 = vadd.f32 %v537_v27, %v4018_v9  ;;  %3262 = vpow2.f32 %v1984_v14  ;;  %v1084_v52 = vadd.f32 1.0, %v1020_v16  ;;  %v1988_v60 = vmul.f32 1.442695, %v1916_v22 }
 0x189   : > { %v1716_v7 = vadd.f32 0.2548296, %v1652_v12  ;;  %v4122_v43 = vpop.f32.mrb[18].mxu0  ;;  %v958_v26 = vand.u32 2147483647, %v766_v29  ;;  %v4129_v56 = vpop.eup %3254  ;;  %3264 = vrcp.f32 %v1083_v20  ;;  %v1085_v62 = vadd.f32 1.0, %v1021_v23 }
 0x18a   : > { %v4127_v55 = vpop.f32.mrb[19].mxu0  ;;  %v1917_v1 = vmul.f32 %v1853_v24, %v957_v6  ;;  %v767_v5 = vmul.f32 0.70710677, %v534_v39  ;;  %3266 = vpow2.f32 %v1986_v34  ;;  %v4140_v16 = vmul.f32 0.5, %v532_v11 }
 0x18b   : > { %v1780_v49 = vmul.f32 %v4054_v8, %v1716_v7  ;;  %v1022_v4 = vmul.f32 0.3275911, %v958_v26  ;;  %v1854_v27 = vsub.f32 0.0, %v958_v26  ;;  %v4133_v35 = vpop.eup %3256  ;;  %v5671_v8 = vmov -1.0  }
 0x18c   : > { %v4138_v14 = vsel %vm828_vm8, 1.0, %v5671_v8  ;;  %5673 = vst [vmem:[#allocation22_spill] sm:$0xff] %v4140_v16  ;;  %v768_v20 = vmul.f32 0.70710677, %v538_v40  ;;  %v4144_v6 = vpop.eup %3258  ;;  %3268 = vrcp.f32 %v1084_v52  ;;  %v540_v24 = vadd.f32 %v4070_v31, %v4020_v10 }
 0x18d   : > { %v2100_v13 = vmul.f32 %v3241_v42, %v1780_v49  ;;  %v4131_v12 = vpop.f32.mrb[20].mxu0  ;;  %5672 = vst [vmem:[#allocation21_spill] sm:$0xff] %v4138_v14  ;;  %v1918_v23 = vmul.f32 %v1854_v27, %v958_v26  ;;  %3270 = vpow2.f32 %v1988_v60  ;;  %v1990_v7 = vmul.f32 1.442695, %v1917_v1 }
 0x18e   : > { %v4142_v22 = vpop.f32.mrb[21].mxu0  ;;  %v959_v34 = vand.u32 2147483647, %v767_v5  ;;  %v960_v49 = vand.u32 2147483647, %v768_v20  ;;  %3272 = vrcp.f32 %v1085_v62  ;;  %vm830_vm9 = vcmp.ge.f32.partialorder %v766_v29, 0.0 }
 0x18f   : > { %v2164_v42 = vsub.f32 1.0, %v2100_v13  ;;  %v1086_v44 = vadd.f32 1.0, %v1022_v4  ;;  %vm831_vm10 = vcmp.ge.f32.partialorder %v767_v5, 0.0  ;;  %v1992_v16 = vmul.f32 1.442695, %v1918_v23 }
 0x190   : > { %v1023_v28 = vmul.f32 0.3275911, %v959_v34  ;;  %v1855_v14 = vsub.f32 0.0, %v959_v34  ;;  %v1856_v38 = vsub.f32 0.0, %v960_v49  ;;  %vm832_vm11 = vcmp.ge.f32.partialorder %v768_v20, 0.0  ;;  %v4153_v60 = vpop.eup %3260 }
 0x191   : > { %v4148_v11 = vpop.f32.mrb[22].mxu0  ;;  %v2228_v52 = vmul.f32 %v2164_v42, %v4029_v36  ;;  %v1024_v26 = vmul.f32 0.3275911, %v960_v49  ;;  %v769_v13 = vmul.f32 0.70710677, %v540_v24  ;;  %3274 = vpow2.f32 %v1990_v7 }
 0x192   : > { %v4151_v31 = vpop.f32.mrb[23].mxu0  ;;  %v4156_v29 = vsel %vm830_vm9, 1.0, %v5671_v8  ;;  %v4158_v62 = vmul.f32 0.5, %v534_v39  ;;  %v4160_v1 = vmul.f32 0.5, %v538_v40  ;;  %v4162_v4 = vpop.eup %3262  ;;  %v1087_v27 = vadd.f32 1.0, %v1023_v28 }
 0x193   : > { %5674 = vst [vmem:[#allocation23_spill] sm:$0xff] %v4156_v29  ;;  %5677 = vst [vmem:[#allocation26_spill] sm:$0xff] %v4162_v4  ;;  %v1919_v23 = vmul.f32 %v1855_v14, %v959_v34  ;;  %v961_v36 = vand.u32 2147483647, %v769_v13  ;;  %v544_v42 = vadd.f32 %v4081_v46, %v4018_v9  ;;  %v4168_v59 = vpop.eup %3264  ;;  %3276 = vrcp.f32 %v1086_v44 }
 0x194   : > { %5675 = vst [vmem:[#allocation24_spill] sm:$0xff] %v4158_v62  ;;  %5676 = vst [vmem:[#allocation25_spill] sm:$0xff] %v4160_v1  ;;  %v4172_v7 = vsel %vm831_vm10, 1.0, %v5671_v8  ;;  %v4176_v39 = vsel %vm832_vm11, 1.0, %v5671_v8  ;;  %v1920_v40 = vmul.f32 %v1856_v38, %v960_v49  ;;  %v2292_v14 = vadd.f32 1.0, %v2228_v52  ;;  %v4180_v1 = vpop.eup %3266 }
 0x195   : > { %v4166_v63 = vpop.f32.mrb[24].mxu0  ;;  %5678 = vst [vmem:[#allocation27_spill] sm:$0xff] %v4172_v7  ;;  %5679 = vst [vmem:[#allocation28_spill] sm:$0xff] %v4176_v39  ;;  %3278 = vpow2.f32 %v1992_v16  ;;  %v1088_v34 = vadd.f32 1.0, %v1024_v26  ;;  %v1857_v46 = vsub.f32 0.0, %v961_v36  ;;  %vm833_vm12 = vcmp.ge.f32.partialorder %v769_v13, 0.0 }
 0x196   : > { %v4178_v28 = vpop.f32.mrb[25].mxu0  ;;  %5680 = vst [vmem:[#allocation29_spill] sm:$0xff] %v4180_v1  ;;  %v1025_v29 = vmul.f32 0.3275911, %v961_v36  ;;  %v770_v44 = vmul.f32 0.70710677, %v544_v42  ;;  %v546_v5 = vadd.f32 %v4085_v50, %v4020_v10  ;;  %v4184_v62 = vpop.eup %3268  ;;  %3280 = vrcp.f32 %v1087_v27 }
 0x197   : > { %5681 = vst [vmem:[#allocation30_spill] sm:$0xff] %v4184_v62  ;;  %v1994_v20 = vmul.f32 1.442695, %v1919_v23  ;;  %v4186_v39 = vmul.f32 0.5, %v540_v24  ;;  %v550_v38 = vadd.f32 %v4104_v53, %v4018_v9  ;;  %v4192_v49 = vpop.eup %3270  ;;  %v1996_v52 = vmul.f32 1.442695, %v1920_v40 }
 0x198   : > { %5683 = vst [vmem:[#allocation32_spill] sm:$0xff] %v4192_v49  ;;  %v1921_v26 = vmul.f32 %v1857_v46, %v961_v36  ;;  %v962_v7 = vand.u32 2147483647, %v770_v44  ;;  %v771_v4 = vmul.f32 0.70710677, %v546_v5  ;;  %v4194_v58 = vpop.eup %3272  ;;  %v4197_v50 = vmul.f32 %v2292_v14, %v4026_v33 }
 0x199   : > { %5682 = vst [vmem:[#allocation31_spill] sm:$0xff] %v4186_v39  ;;  %v4190_v16 = vpop.f32.mrb[26].mxu0  ;;  %3282 = vrcp.f32 %v1088_v34  ;;  %v4201_v24 = vsel %vm833_vm12, 1.0, %v5671_v8  ;;  %v552_v53 = vadd.f32 %v4110_v18, %v4020_v10  ;;  %v1089_v23 = vadd.f32 1.0, %v1025_v29 }
 0x19a   : > { %5684 = vst [vmem:[#allocation33_spill] sm:$0xff] %v4201_v24  ;;  %v4205_v27 = vpop.f32.mrb[27].mxu0  ;;  %v4207_v40 = vmul.f32 0.5, %v544_v42  ;;  %v1858_v36 = vsub.f32 0.0, %v962_v7  ;;  %v963_v46 = vand.u32 2147483647, %v771_v4  ;;  %3284 = vpow2.f32 %v1994_v20 }
 0x19b   : > { %vm834_vm13 = vcmp.ge.f32.partialorder %v770_v44, 0.0  ;;  %v1026_v39 = vmul.f32 0.3275911, %v962_v7  ;;  %v772_v33 = vmul.f32 0.70710677, %v550_v38  ;;  %v4211_v34 = vpop.eup %3274  ;;  %3286 = vpow2.f32 %v1996_v52 }
 0x19c   : > { %5685 = vst [vmem:[#allocation34_spill] sm:$0xff] %v4207_v40  ;;  %5686 = vst [vmem:[#allocation35_spill] sm:$0xff] %v4211_v34  ;;  %v1998_v13 = vmul.f32 1.442695, %v1921_v26  ;;  %v4213_v24 = vmul.f32 0.5, %v546_v5  ;;  %v1859_v18 = vsub.f32 0.0, %v963_v46  ;;  %v1922_v29 = vmul.f32 %v1858_v36, %v962_v7 }
 0x19d   : > { %v4209_v14 = vpop.f32.mrb[28].mxu0  ;;  %vm835_vm14 = vcmp.ge.f32.partialorder %v771_v4, 0.0  ;;  %v964_v42 = vand.u32 2147483647, %v772_v33  ;;  %v773_v40 = vmul.f32 0.70710677, %v552_v53  ;;  %v4217_v15 = vpop.eup %3276  ;;  %3288 = vrcp.f32 %v1089_v23 }
 0x19e   : > { %5687 = vst [vmem:[#allocation36_spill] sm:$0xff] %v4213_v24  ;;  %v4215_v49 = vpop.f32.mrb[29].mxu0  ;;  %5688 = vst [vmem:[#allocation37_spill] sm:$0xff] %v4217_v15  ;;  %v4221_v20 = vsel %vm834_vm13, 1.0, %v5671_v8  ;;  %v1027_v62 = vmul.f32 0.3275911, %v963_v46  ;;  %v556_v52 = vadd.f32 %v4122_v43, %v4018_v9  ;;  %v1923_v24 = vmul.f32 %v1859_v18, %v963_v46 }
 0x19f   : > { %5689 = vst [vmem:[#allocation38_spill] sm:$0xff] %v4221_v20  ;;  %v4225_v5 = vpop.eup %3278  ;;  %v1090_v26 = vadd.f32 1.0, %v1026_v39  ;;  %v4227_v34 = vmul.f32 0.5, %v550_v38  ;;  %v1860_v4 = vsub.f32 0.0, %v964_v42  ;;  %3290 = vpow2.f32 %v1998_v13 }
 0x1a0   : > { %5690 = vst [vmem:[#allocation39_spill] sm:$0xff] %v4225_v5  ;;  %v4232_v23 = vsel %vm835_vm14, 1.0, %v5671_v8  ;;  %v1028_v44 = vmul.f32 0.3275911, %v964_v42  ;;  %v965_v36 = vand.u32 2147483647, %v773_v40  ;;  %v4236_v15 = vpop.eup %3280  ;;  %v562_v45 = vadd.f32 %v4131_v12, %v4018_v9 }
 0x1a1   : > { %5691 = vst [vmem:[#allocation40_spill] sm:$0xff] %v4227_v34  ;;  %v4229_v7 = vpop.f32.mrb[30].mxu0  ;;  %5692 = vst [vmem:[#allocation41_spill] sm:$0xff] %v4232_v23  ;;  %v2000_v43 = vmul.f32 1.442695, %v1922_v29  ;;  %vm836_vm15 = vcmp.ge.f32.partialorder %v772_v33, 0.0  ;;  %v1924_v5 = vmul.f32 %v1860_v4, %v964_v42  ;;  %3292 = vrcp.f32 %v1090_v26 }
 0x1a2   : > { %v4234_v20 = vpop.f32.mrb[31].mxu0  ;;  %5693 = vst [vmem:[#allocation42_spill] sm:$0xff] %v4236_v15  ;;  %v4238_v39 = vmul.f32 0.5, %v552_v53  ;;  %v1091_v38 = vadd.f32 1.0, %v1027_v62  ;;  %v1029_v46 = vmul.f32 0.3275911, %v965_v36  ;;  %v558_v23 = vadd.f32 %v4127_v55, %v4020_v10 }
 0x1a3   : > { %v1861_v18 = vsub.f32 0.0, %v965_v36  ;;  %v774_v34 = vmul.f32 0.70710677, %v556_v52  ;;  %v4240_v2 = vpop.eup %3282  ;;  %v2002_v13 = vmul.f32 1.442695, %v1923_v24  ;;  %v4249_v33 = vsel %vm836_vm15, 1.0, %v5671_v8 }
 0x1a4   : > { %5694 = vst [vmem:[#allocation43_spill] sm:$0xff] %v4238_v39  ;;  %5695 = vst [vmem:[#allocation44_spill] sm:$0xff] %v4240_v2  ;;  %v1092_v53 = vadd.f32 1.0, %v1028_v44  ;;  %vm837_vm0 = vcmp.ge.f32.partialorder %v773_v40, 0.0  ;;  %v4253_v42 = vpop.eup %3284  ;;  %3294 = vpow2.f32 %v2000_v43  ;;  %v2004_v24 = vmul.f32 1.442695, %v1924_v5 }
 0x1a5   : > { %v4246_v15 = vpop.f32.mrb[32].mxu0  ;;  %5696 = vst [vmem:[#allocation45_spill] sm:$0xff] %v4249_v33  ;;  %v966_v62 = vand.u32 2147483647, %v774_v34  ;;  %5697 = vst [vmem:[#allocation46_spill] sm:$0xff] %v4253_v42  ;;  %v1925_v26 = vmul.f32 %v1861_v18, %v965_v36  ;;  %v4255_v55 = vpop.eup %3286  ;;  %3296 = vrcp.f32 %v1091_v38  ;;  %v1093_v12 = vadd.f32 1.0, %v1029_v46 }
 0x1a6   : > { %v4251_v29 = vpop.f32.mrb[33].mxu0  ;;  %v775_v4 = vmul.f32 0.70710677, %v558_v23  ;;  %5698 = vst [vmem:[#allocation47_spill] sm:$0xff] %v4255_v55  ;;  %vm838_vm1 = vcmp.ge.f32.partialorder %v774_v34, 0.0  ;;  %3298 = vpow2.f32 %v2002_v13  ;;  %v4261_v42 = vsel %vm837_vm0, 1.0, %v5671_v8 }
 0x1a7   : > { %v1862_v39 = vsub.f32 0.0, %v966_v62  ;;  %v1030_v2 = vmul.f32 0.3275911, %v966_v62  ;;  %v776_v44 = vmul.f32 0.70710677, %v562_v45  ;;  %v4257_v1 = vpop.eup %3288  ;;  %3300 = vrcp.f32 %v1092_v53  ;;  %5700 = vst [vmem:[#allocation49_spill] sm:$0xff] %v4261_v42 }
 0x1a8   : > { %v967_v33 = vand.u32 2147483647, %v775_v4  ;;  %5699 = vst [vmem:[#allocation48_spill] sm:$0xff] %v4257_v1  ;;  %v4263_v5 = vmul.f32 0.5, %v556_v52  ;;  %3302 = vpow2.f32 %v2004_v24  ;;  %v2006_v38 = vmul.f32 1.442695, %v1925_v26 }
 0x1a9   : > { %v1926_v36 = vmul.f32 %v1862_v39, %v966_v62  ;;  %v4265_v43 = vpop.f32.mrb[34].mxu0  ;;  %v968_v18 = vand.u32 2147483647, %v776_v44  ;;  %v4267_v13 = vpop.eup %3290  ;;  %3304 = vrcp.f32 %v1093_v12  ;;  %v4271_v55 = vsel %vm838_vm1, 1.0, %v5671_v8 }
 0x1aa   : > { %5701 = vst [vmem:[#allocation50_spill] sm:$0xff] %v4263_v5  ;;  %v1863_v46 = vsub.f32 0.0, %v967_v33  ;;  %5702 = vst [vmem:[#allocation51_spill] sm:$0xff] %v4267_v13  ;;  %v1031_v53 = vmul.f32 0.3275911, %v967_v33  ;;  %v564_v40 = vadd.f32 %v4142_v22, %v4020_v10  ;;  %v4275_v52 = vpop.f32.mrb[35].mxu0  ;;  %v568_v34 = vadd.f32 %v4148_v11, %v4018_v9 }
 0x1ab   : > { %5703 = vst [vmem:[#allocation52_spill] sm:$0xff] %v4271_v55  ;;  %v1094_v39 = vadd.f32 1.0, %v1030_v2  ;;  %vm839_vm2 = vcmp.ge.f32.partialorder %v775_v4, 0.0  ;;  %vm840_vm3 = vcmp.ge.f32.partialorder %v776_v44, 0.0  ;;  %v1864_v62 = vsub.f32 0.0, %v968_v18  ;;  %v4283_v55 = vpop.eup %3292 }
 0x1ac   : > { %v2008_v26 = vmul.f32 1.442695, %v1926_v36  ;;  %v1927_v5 = vmul.f32 %v1863_v46, %v967_v33  ;;  %v777_v42 = vmul.f32 0.70710677, %v564_v40  ;;  %5704 = vst [vmem:[#allocation53_spill] sm:$0xff] %v4283_v55  ;;  %3306 = vpow2.f32 %v2006_v38 }
 0x1ad   : > { %v4277_v24 = vpop.f32.mrb[36].mxu0  ;;  %v4285_v22 = vmul.f32 0.5, %v558_v23  ;;  %v4287_v13 = vmul.f32 0.5, %v562_v45  ;;  %v1032_v2 = vmul.f32 0.3275911, %v968_v18  ;;  %v4290_v4 = vsel %vm839_vm2, 1.0, %v5671_v8 }
 0x1ae   : > { %v4281_v12 = vpop.f32.mrb[37].mxu0  ;;  %5707 = vst [vmem:[#allocation56_spill] sm:$0xff] %v4290_v4  ;;  %v1095_v1 = vadd.f32 1.0, %v1031_v53  ;;  %v969_v36 = vand.u32 2147483647, %v777_v42  ;;  %v4292_v46 = vpop.eup %3294  ;;  %3308 = vrcp.f32 %v1094_v39  ;;  %v4296_v11 = vsel %vm840_vm3, 1.0, %v5671_v8 }
 0x1af   : > { %5705 = vst [vmem:[#allocation54_spill] sm:$0xff] %v4285_v22  ;;  %5706 = vst [vmem:[#allocation55_spill] sm:$0xff] %v4287_v13  ;;  %v778_v33 = vmul.f32 0.70710677, %v568_v34  ;;  %v1928_v55 = vmul.f32 %v1864_v62, %v968_v18  ;;  %v570_v23 = vadd.f32 %v4151_v31, %v4020_v10  ;;  %v4302_v38 = vpop.eup %3296  ;;  %3310 = vpow2.f32 %v2008_v26 }
 0x1b0   : > { %5708 = vst [vmem:[#allocation57_spill] sm:$0xff] %v4292_v46  ;;  %5709 = vst [vmem:[#allocation58_spill] sm:$0xff] %v4296_v11  ;;  %v2010_v13 = vmul.f32 1.442695, %v1927_v5  ;;  %v4304_v53 = vmul.f32 0.5, %v564_v40  ;;  %v1865_v22 = vsub.f32 0.0, %v969_v36  ;;  %v4308_v39 = vpop.eup %3298  ;;  %3312 = vrcp.f32 %v1095_v1 }
 0x1b1   : > { %v4300_v45 = vpop.f32.mrb[38].mxu0  ;;  %5711 = vst [vmem:[#allocation60_spill] sm:$0xff] %v4302_v38  ;;  %5714 = vst [vmem:[#allocation63_spill] sm:$0xff] %v4308_v39  ;;  %v1096_v44 = vadd.f32 1.0, %v1032_v2  ;;  %vm841_vm4 = vcmp.ge.f32.partialorder %v777_v42, 0.0  ;;  %v4310_v62 = vpop.eup %3300  ;;  %vm842_vm5 = vcmp.ge.f32.partialorder %v778_v33, 0.0  ;;  %v574_v26 = vadd.f32 %v4166_v63, %v4018_v9 }
 0x1b2   : > { %5710 = vst [vmem:[#allocation59_spill] sm:$0xff] %v4300_v45  ;;  %5712 = vst [vmem:[#allocation61_spill] sm:$0xff] %v4304_v53  ;;  %v4306_v4 = vpop.f32.mrb[39].mxu0  ;;  %v1033_v11 = vmul.f32 0.3275911, %v969_v36  ;;  %v4314_v5 = vpop.eup %3302  ;;  %v4316_v53 = vmul.f32 0.5, %v568_v34  ;;  %v576_v2 = vadd.f32 %v4178_v28, %v4020_v10  ;;  %3314 = vpow2.f32 %v2010_v13 }
 0x1b3   : > { %5713 = vst [vmem:[#allocation62_spill] sm:$0xff] %v4306_v4  ;;  %v970_v18 = vand.u32 2147483647, %v778_v33  ;;  %5715 = vst [vmem:[#allocation64_spill] sm:$0xff] %v4310_v62  ;;  %v779_v31 = vmul.f32 0.70710677, %v570_v23  ;;  %v4322_v38 = vpop.eup %3304  ;;  %v1929_v62 = vmul.f32 %v1865_v22, %v969_v36  ;;  %3316 = vrcp.f32 %v1096_v44 }
 0x1b4   : > { %5716 = vst [vmem:[#allocation65_spill] sm:$0xff] %v4314_v5  ;;  %v2012_v40 = vmul.f32 1.442695, %v1928_v55  ;;  %5717 = vst [vmem:[#allocation66_spill] sm:$0xff] %v4316_v53  ;;  %v4326_v1 = vsel %vm841_vm4, 1.0, %v5671_v8  ;;  %v1097_v5 = vadd.f32 1.0, %v1033_v11 }
 0x1b5   : > { %v1866_v46 = vsub.f32 0.0, %v970_v18  ;;  %v4320_v39 = vpop.f32.mrb[40].mxu0  ;;  %5719 = vst [vmem:[#allocation68_spill] sm:$0xff] %v4322_v38  ;;  %5720 = vst [vmem:[#allocation69_spill] sm:$0xff] %v4326_v1  ;;  %v971_v63 = vand.u32 2147483647, %v779_v31 }
 0x1b6   : > { %5718 = vst [vmem:[#allocation67_spill] sm:$0xff] %v4320_v39  ;;  %v4330_v55 = vsel %vm842_vm5, 1.0, %v5671_v8  ;;  %v1034_v34 = vmul.f32 0.3275911, %v970_v18  ;;  %v4332_v53 = vpop.f32.mrb[41].mxu0  ;;  %vm843_vm6 = vcmp.ge.f32.partialorder %v779_v31, 0.0  ;;  %v4334_v13 = vpop.eup %3306  ;;  %3318 = vpow2.f32 %v2012_v40 }
 0x1b7   : > { %5721 = vst [vmem:[#allocation70_spill] sm:$0xff] %v4330_v55  ;;  %5722 = vst [vmem:[#allocation71_spill] sm:$0xff] %v4332_v53  ;;  %v1930_v28 = vmul.f32 %v1866_v46, %v970_v18  ;;  %v1867_v39 = vsub.f32 0.0, %v971_v63  ;;  %v780_v38 = vmul.f32 0.70710677, %v574_v26  ;;  %v4337_v11 = vmul.f32 0.5, %v570_v23 }
 0x1b8   : > { %5723 = vst [vmem:[#allocation72_spill] sm:$0xff] %v4334_v13  ;;  %v1035_v42 = vmul.f32 0.3275911, %v971_v63  ;;  %v781_v1 = vmul.f32 0.70710677, %v576_v2  ;;  %v4339_v55 = vpop.eup %3308  ;;  %3320 = vrcp.f32 %v1097_v5  ;;  %v1098_v53 = vadd.f32 1.0, %v1034_v34 }
 0x1b9   : > { %v1269_v22 = vmul.f32 1.0614054, %v4072_v32  ;;  %v2014_v36 = vmul.f32 1.442695, %v1929_v62  ;;  %5724 = vst [vmem:[#allocation73_spill] sm:$0xff] %v4337_v11  ;;  %v1931_v33 = vmul.f32 %v1867_v39, %v971_v63  ;;  %5725 = vst [vmem:[#allocation74_spill] sm:$0xff] %v4339_v55  ;;  %v4344_v31 = vpop.eup %3310 }
 0x1ba   : > { %v972_v44 = vand.u32 2147483647, %v780_v38  ;;  %v4342_v46 = vsel %vm843_vm6, 1.0, %v5671_v8  ;;  %v973_v18 = vand.u32 2147483647, %v781_v1  ;;  %5727 = vst [vmem:[#allocation76_spill] sm:$0xff] %v4344_v31  ;;  %v4348_v63 = vpop.eup %3312 }
 0x1bb   : > { %5726 = vst [vmem:[#allocation75_spill] sm:$0xff] %v4342_v46  ;;  %v2016_v40 = vmul.f32 1.442695, %v1930_v28  ;;  %v4346_v13 = vmul.f32 0.5, %v574_v26  ;;  %v1099_v62 = vadd.f32 1.0, %v1035_v42  ;;  %3322 = vpow2.f32 %v2014_v36 }
 0x1bc   : > { %v1036_v4 = vmul.f32 0.3275911, %v972_v44  ;;  %v1868_v45 = vsub.f32 0.0, %v972_v44  ;;  %v1037_v23 = vmul.f32 0.3275911, %v973_v18  ;;  %v1869_v11 = vsub.f32 0.0, %v973_v18  ;;  %v4357_v42 = vpop.eup %3314 }
 0x1bd   : > { %5728 = vst [vmem:[#allocation77_spill] sm:$0xff] %v4346_v13  ;;  %v1333_v39 = vadd.f32 -1.4531521, %v1269_v22  ;;  %v2018_v5 = vmul.f32 1.442695, %v1931_v33  ;;  %v580_v46 = vadd.f32 %v4190_v16, %v4018_v9  ;;  %3324 = vrcp.f32 %v1098_v53  ;;  %v4355_v13 = vpop.f32.mrb[42].mxu0 }
 0x1be   : > { %v1932_v34 = vmul.f32 %v1868_v45, %v972_v44  ;;  %v1100_v55 = vadd.f32 1.0, %v1036_v4  ;;  %v582_v26 = vadd.f32 %v4205_v27, %v4020_v10  ;;  %5729 = vst [vmem:[#allocation78_spill] sm:$0xff] %v4357_v42  ;;  %3326 = vpow2.f32 %v2016_v40  ;;  %v4361_v45 = vpop.eup %3316 }
 0x1bf   : > { %v1397_v28 = vmul.f32 %v4072_v32, %v1333_v39  ;;  %v4359_v22 = vmul.f32 0.5, %v576_v2  ;;  %v1101_v36 = vadd.f32 1.0, %v1037_v23  ;;  %v782_v33 = vmul.f32 0.70710677, %v580_v46  ;;  %5731 = vst [vmem:[#allocation80_spill] sm:$0xff] %v4361_v45  ;;  %v4367_v23 = vpop.f32.mrb[43].mxu0 }
 0x1c0   : > { %3328 = vrcp.f32 %v1099_v62  ;;  %vm844_vm7 = vcmp.ge.f32.partialorder %v780_v38, 0.0  ;;  %v1933_v16 = vmul.f32 %v1869_v11, %v973_v18  ;;  %v2020_v53 = vmul.f32 1.442695, %v1932_v34  ;;  %v4363_v27 = vpop.eup %3318 }
 0x1c1   : > { %5730 = vst [vmem:[#allocation79_spill] sm:$0xff] %v4359_v22  ;;  %v1461_v4 = vadd.f32 1.4214138, %v1397_v28  ;;  %3330 = vpow2.f32 %v2018_v5  ;;  %v974_v44 = vand.u32 2147483647, %v782_v33  ;;  %5732 = vst [vmem:[#allocation81_spill] sm:$0xff] %v4363_v27 }
 0x1c2   : > { %v783_v39 = vmul.f32 0.70710677, %v582_v26  ;;  %3332 = vrcp.f32 %v1100_v55  ;;  %vm845_vm8 = vcmp.ge.f32.partialorder %v781_v1, 0.0  ;;  %v1271_v2 = vmul.f32 1.0614054, %v4112_v19  ;;  %v4372_v18 = vpop.eup %3320 }
 0x1c3   : > { %v1525_v40 = vmul.f32 %v4072_v32, %v1461_v4  ;;  %v4370_v22 = vsel %vm844_vm7, 1.0, %v5671_v8  ;;  %3334 = vrcp.f32 %v1101_v36  ;;  %v1870_v38 = vsub.f32 0.0, %v974_v44 }
 0x1c4   : > { %5733 = vst [vmem:[#allocation82_spill] sm:$0xff] %v4370_v22  ;;  %v975_v11 = vand.u32 2147483647, %v783_v39  ;;  %v2022_v62 = vmul.f32 1.442695, %v1933_v16  ;;  %v586_v1 = vadd.f32 %v4209_v14, %v4018_v9  ;;  %3336 = vpow2.f32 %v2020_v53 }
 0x1c5   : > { %v1589_v5 = vadd.f32 -0.28449672, %v1525_v40  ;;  %v1335_v34 = vadd.f32 -1.4531521, %v1271_v2  ;;  %v4377_v55 = vsel %vm845_vm8, 1.0, %v5671_v8  ;;  %v4379_v28 = vmul.f32 0.5, %v580_v46  ;;  %v4383_v31 = vpop.eup %3322 }
 0x1c6   : > { %5734 = vst [vmem:[#allocation83_spill] sm:$0xff] %v4377_v55  ;;  %v1038_v4 = vmul.f32 0.3275911, %v974_v44  ;;  %vm846_vm9 = vcmp.ge.f32.partialorder %v782_v33, 0.0  ;;  %v784_v27 = vmul.f32 0.70710677, %v586_v1  ;;  %v1934_v16 = vmul.f32 %v1870_v38, %v974_v44 }
 0x1c7   : > { %5735 = vst [vmem:[#allocation84_spill] sm:$0xff] %v4379_v28  ;;  %v1653_v22 = vmul.f32 %v4072_v32, %v1589_v5  ;;  %v1399_v36 = vmul.f32 %v4112_v19, %v1335_v34  ;;  %5736 = vst [vmem:[#allocation85_spill] sm:$0xff] %v4383_v31  ;;  %vm847_vm10 = vcmp.ge.f32.partialorder %v783_v39, 0.0  ;;  %v1039_v40 = vmul.f32 0.3275911, %v975_v11  ;;  %v4385_v14 = vpop.eup %3324  ;;  %v4389_v28 = vpop.f32.mrb[44].mxu0 }
 0x1c8   : > { %v1871_v2 = vsub.f32 0.0, %v975_v11  ;;  %5737 = vst [vmem:[#allocation86_spill] sm:$0xff] %v4385_v14  ;;  %3338 = vpow2.f32 %v2022_v62  ;;  %v4387_v55 = vmul.f32 0.5, %v582_v26  ;;  %v4391_v5 = vpop.eup %3326  ;;  %v4394_v33 = vsel %vm846_vm9, 1.0, %v5671_v8 }
 0x1c9   : > { %v1717_v53 = vadd.f32 0.2548296, %v1653_v22  ;;  %v1463_v46 = vadd.f32 1.4214138, %v1399_v36  ;;  %5739 = vst [vmem:[#allocation88_spill] sm:$0xff] %v4391_v5  ;;  %5740 = vst [vmem:[#allocation89_spill] sm:$0xff] %v4394_v33  ;;  %v588_v44 = vadd.f32 %v4215_v49, %v4020_v10 }
 0x1ca   : > { %5738 = vst [vmem:[#allocation87_spill] sm:$0xff] %v4387_v55  ;;  %v1102_v34 = vadd.f32 1.0, %v1038_v4  ;;  %v976_v31 = vand.u32 2147483647, %v784_v27  ;;  %v4398_v38 = vpop.eup %3328  ;;  %v4403_v26 = vsel %vm847_vm10, 1.0, %v5671_v8  ;;  %v1935_v4 = vmul.f32 %v1871_v2, %v975_v11 }
 0x1cb   : > { %5741 = vst [vmem:[#allocation90_spill] sm:$0xff] %v4398_v38  ;;  %v1781_v62 = vmul.f32 %v4072_v32, %v1717_v53  ;;  %5742 = vst [vmem:[#allocation91_spill] sm:$0xff] %v4403_v26  ;;  %v1527_v22 = vmul.f32 %v4112_v19, %v1463_v46  ;;  %v1270_v36 = vmul.f32 1.0614054, %v4087_v0  ;;  %v4407_v55 = vpop.eup %3330  ;;  %v2024_v33 = vmul.f32 1.442695, %v1934_v16 }
 0x1cc   : > { %5743 = vst [vmem:[#allocation92_spill] sm:$0xff] %v4407_v55  ;;  %v4409_v5 = vmul.f32 0.5, %v586_v1  ;;  %v1872_v14 = vsub.f32 0.0, %v976_v31  ;;  %v4411_v49 = vpop.eup %3332  ;;  %v1103_v32 = vadd.f32 1.0, %v1039_v40  ;;  %3340 = vrcp.f32 %v1102_v34 }
 0x1cd   : > { %v2101_v38 = vmul.f32 %v4083_v47, %v1781_v62  ;;  %v1591_v53 = vadd.f32 -0.28449672, %v1527_v22  ;;  %v1334_v39 = vadd.f32 -1.4531521, %v1270_v36  ;;  %v4414_v45 = vpop.eup %3334  ;;  %v1040_v46 = vmul.f32 0.3275911, %v976_v31 }
 0x1ce   : > { %5744 = vst [vmem:[#allocation93_spill] sm:$0xff] %v4409_v5  ;;  %v785_v26 = vmul.f32 0.70710677, %v588_v44  ;;  %v1273_v42 = vmul.f32 1.0614054, %v4129_v56  ;;  %vm848_vm11 = vcmp.ge.f32.partialorder %v784_v27, 0.0  ;;  %v4419_v16 = vpop.eup %3336  ;;  %3342 = vpow2.f32 %v2024_v33 }
 0x1cf   : > { %v2165_v55 = vsub.f32 1.0, %v2101_v38  ;;  %v1655_v11 = vmul.f32 %v4112_v19, %v1591_v53  ;;  %v1398_v1 = vmul.f32 %v4087_v0, %v1334_v39  ;;  %v2026_v47 = vmul.f32 1.442695, %v1935_v4  ;;  %v4427_v39 = vpop.f32.mrb[45].mxu0 }
 0x1d0   : > { %v1936_v40 = vmul.f32 %v1872_v14, %v976_v31  ;;  %v592_v2 = vadd.f32 %v4229_v7, %v4018_v9  ;;  %v1337_v36 = vadd.f32 -1.4531521, %v1273_v42  ;;  %v4425_v38 = vsel %vm848_vm11, 1.0, %v5671_v8 }
 0x1d1   : > { %v2229_v34 = vmul.f32 %v2165_v55, %v4034_v41  ;;  %v1719_v62 = vadd.f32 0.2548296, %v1655_v11  ;;  %v1462_v22 = vadd.f32 1.4214138, %v1398_v1  ;;  %5745 = vst [vmem:[#allocation94_spill] sm:$0xff] %v4425_v38  ;;  %v1104_v53 = vadd.f32 1.0, %v1040_v46 }
 0x1d2   : > { %vm849_vm12 = vcmp.ge.f32.partialorder %v785_v26, 0.0  ;;  %v977_v27 = vand.u32 2147483647, %v785_v26  ;;  %v4429_v5 = vpop.eup %3338  ;;  %v1401_v41 = vmul.f32 %v4129_v56, %v1337_v36  ;;  %3344 = vrcp.f32 %v1103_v32  ;;  %v4444_v36 = vpop.f32.mrb[46].mxu0 }
 0x1d3   : > { %v2293_v33 = vadd.f32 1.0, %v2229_v34  ;;  %v1783_v31 = vmul.f32 %v4112_v19, %v1719_v62  ;;  %v1526_v7 = vmul.f32 %v4087_v0, %v1462_v22  ;;  %v2028_v55 = vmul.f32 1.442695, %v1936_v40 }
 0x1d4   : > { %v4434_v42 = vmul.f32 0.70710677, %v592_v2  ;;  %v1272_v14 = vmul.f32 1.0614054, %v4124_v48  ;;  %v1465_v1 = vadd.f32 1.4214138, %v1401_v41  ;;  %3346 = vpow2.f32 %v2026_v47 }
 0x1d5   : > { %v2357_v4 = vmul.f32 %v2293_v33, %v4031_v37  ;;  %v2103_v46 = vmul.f32 %v4114_v25, %v1783_v31  ;;  %v1590_v11 = vadd.f32 -0.28449672, %v1526_v7  ;;  %v4439_v34 = vmul.f32 0.5, %v588_v44 }
 0x1d6   : > { %v1041_v19 = vmul.f32 0.3275911, %v977_v27  ;;  %v978_v62 = vand.u32 2147483647, %v4434_v42  ;;  %3348 = vrcp.f32 %v1104_v53  ;;  %v1529_v40 = vmul.f32 %v4129_v56, %v1465_v1  ;;  %v4446_v37 = vpop.eup %3340 }
 0x1d7   : > { %5746 = vst [vmem:[#allocation95_spill] sm:$0xff] %v4439_v34  ;;  %2548 = vmatprep.mubr.f32.mxu0 %v2357_v4  ;;  %v2167_v22 = vsub.f32 1.0, %v2103_v46  ;;  %v1654_v32 = vmul.f32 %v4087_v0, %v1590_v11  ;;  %3350 = vpow2.f32 %v2028_v55  ;;  %v4451_v25 = vsel %vm849_vm12, 1.0, %v5671_v8 }
 0x1d8   : > { %2549 = vmatmul.mubr.f32.vlgmr.msra.gmra.mrb[64].mxu0 %v4197_v50  ;;  %5747 = vst [vmem:[#allocation96_spill] sm:$0xff] %v4451_v25  ;;  %v1873_v44 = vsub.f32 0.0, %v977_v27  ;;  %v1336_v47 = vadd.f32 -1.4531521, %v1272_v14  ;;  %v1593_v31 = vadd.f32 -0.28449672, %v1529_v40  ;;  %v4456_v7 = vadd.f32 %v4234_v20, %v4020_v10  ;;  %v4458_v41 = vpop.eup %3342 }
 0x1d9   : > { %v2231_v33 = vmul.f32 %v2167_v22, %v4047_v61  ;;  %v1718_v53 = vadd.f32 0.2548296, %v1654_v32  ;;  %v1105_v4 = vadd.f32 1.0, %v1041_v19  ;;  %v1874_v46 = vsub.f32 0.0, %v978_v62 }
 0x1da   : > { %v1400_v50 = vmul.f32 %v4124_v48, %v1336_v47  ;;  %v1275_v26 = vmul.f32 1.0614054, %v4168_v59  ;;  %v1657_v14 = vmul.f32 %v4129_v56, %v1593_v31  ;;  %v4464_v61 = vmul.f32 0.5, %v592_v2 }
 0x1db   : > { %v2295_v55 = vadd.f32 1.0, %v2231_v33  ;;  %v1782_v11 = vmul.f32 %v4087_v0, %v1718_v53  ;;  %v1937_v1 = vmul.f32 %v1873_v44, %v977_v27  ;;  %v1042_v22 = vmul.f32 0.3275911, %v978_v62  ;;  %v4475_v27 = vpop.f32.mrb[47].mxu0 }
 0x1dc   : > { %5748 = vst [vmem:[#allocation97_spill] sm:$0xff] %v4464_v61  ;;  %v1464_v32 = vadd.f32 1.4214138, %v1400_v50  ;;  %v4467_v20 = vmul.f32 0.70710677, %v4456_v7  ;;  %v4471_v34 = vpop.eup %3344  ;;  %3352 = vrcp.f32 %v1105_v4  ;;  %v1938_v0 = vmul.f32 %v1874_v46, %v978_v62 }
 0x1dd   : > { %v2359_v19 = vmul.f32 %v2295_v55, %v4040_v54  ;;  %v2102_v40 = vmul.f32 %v4099_v3, %v1782_v11  ;;  %v1721_v47 = vadd.f32 0.2548296, %v1657_v14  ;;  %v1339_v38 = vadd.f32 -1.4531521, %v1275_v26 }
 0x1de   : > { %v1528_v33 = vmul.f32 %v4124_v48, %v1464_v32  ;;  %v979_v2 = vand.u32 2147483647, %v4467_v20  ;;  %vm850_vm13 = vcmp.ge.f32.partialorder %v4434_v42, 0.0  ;;  %v4480_v3 = vpop.eup %3346  ;;  %v2030_v31 = vmul.f32 1.442695, %v1937_v1 }
 0x1df   : > { %2553 = vmatprep.mubr.f32.mxu0 %v2359_v19  ;;  %v2166_v44 = vsub.f32 1.0, %v2102_v40  ;;  %v1785_v53 = vmul.f32 %v4129_v56, %v1721_v47  ;;  %v1403_v54 = vmul.f32 %v4168_v59, %v1339_v38  ;;  %v1106_v50 = vadd.f32 1.0, %v1042_v22 }
 0x1e0   : > { %v1592_v4 = vadd.f32 -0.28449672, %v1528_v33  ;;  %v598_v62 = vadd.f32 %v4246_v15, %v4018_v9  ;;  %v4484_v46 = vpop.eup %3348  ;;  %v1274_v56 = vmul.f32 1.0614054, %v4153_v60  ;;  %v4492_v38 = vsel %vm850_vm13, 1.0, %v5671_v8 }
 0x1e1   : > { %v2230_v26 = vmul.f32 %v2166_v44, %v4043_v57  ;;  %v2105_v55 = vmul.f32 %v4144_v6, %v1785_v53  ;;  %v1467_v11 = vadd.f32 1.4214138, %v1403_v54  ;;  %v4489_v42 = vpop.eup %3350  ;;  %5750 = vst [vmem:[#allocation99_spill] sm:$0xff] %v4492_v38  ;;  %v2032_v14 = vmul.f32 1.442695, %v1938_v0 }
 0x1e2   : > { %5749 = vst [vmem:[#allocation98_spill] sm:$0xff] %v4489_v42  ;;  %v1656_v1 = vmul.f32 %v4124_v48, %v1592_v4  ;;  %v1875_v22 = vsub.f32 0.0, %v979_v2  ;;  %v788_v40 = vmul.f32 0.70710677, %v598_v62  ;;  %3354 = vpow2.f32 %v2030_v31 }
 0x1e3   : > { %v2294_v32 = vadd.f32 1.0, %v2230_v26  ;;  %v2169_v15 = vsub.f32 1.0, %v2105_v55  ;;  %v1531_v19 = vmul.f32 %v4168_v59, %v1467_v11  ;;  %v1043_v6 = vmul.f32 0.3275911, %v979_v2 }
 0x1e4   : > { %v1720_v57 = vadd.f32 0.2548296, %v1656_v1  ;;  %v1338_v47 = vadd.f32 -1.4531521, %v1274_v56  ;;  %3356 = vrcp.f32 %v1106_v50  ;;  %vm851_vm14 = vcmp.ge.f32.partialorder %v4467_v20, 0.0 }
 0x1e5   : > { %v2358_v33 = vmul.f32 %v2294_v32, %v4038_v51  ;;  %v2233_v44 = vmul.f32 %v2169_v15, %v4068_v30  ;;  %v1595_v53 = vadd.f32 -0.28449672, %v1531_v19  ;;  %v1939_v54 = vmul.f32 %v1875_v22, %v979_v2  ;;  %v4504_v51 = vpop.f32.mrb[48].mxu0 }
 0x1e6   : > { %v1784_v0 = vmul.f32 %v4124_v48, %v1720_v57  ;;  %v980_v4 = vand.u32 2147483647, %v788_v40  ;;  %v1402_v31 = vmul.f32 %v4153_v60, %v1338_v47  ;;  %v600_v11 = vadd.f32 %v4251_v29, %v4020_v10  ;;  %v4506_v30 = vpop.eup %3352 }
 0x1e7   : > { %2554 = vmatmul.mubr.f32.gmra.mrb[66].mxu0 %v2358_v33  ;;  %v2297_v26 = vadd.f32 1.0, %v2233_v44  ;;  %v1659_v55 = vmul.f32 %v4168_v59, %v1595_v53  ;;  %3358 = vpow2.f32 %v2032_v14  ;;  %v4510_v50 = vmul.f32 0.5, %v4456_v7  ;;  %v5754_v33 = vld [vmem:[#allocation29_spill] sm:$0xff] }
 0x1e8   : > { %v2104_v48 = vmul.f32 %v4133_v35, %v1784_v0  ;;  %v1107_v2 = vadd.f32 1.0, %v1043_v6  ;;  %v1876_v22 = vsub.f32 0.0, %v980_v4  ;;  %v1466_v32 = vadd.f32 1.4214138, %v1402_v31 }
 0x1e9   : > { %5751 = vst [vmem:[#allocation100_spill] sm:$0xff] %v4510_v50  ;;  %v2361_v56 = vmul.f32 %v2297_v26, %v4060_v17  ;;  %v1723_v1 = vadd.f32 0.2548296, %v1659_v55  ;;  %v4516_v29 = vsel %vm851_vm14, 1.0, %v5671_v8  ;;  %v2034_v19 = vmul.f32 1.442695, %v1939_v54 }
 0x1ea   : > { %v2168_v15 = vsub.f32 1.0, %v2104_v48  ;;  %5752 = vst [vmem:[#allocation101_spill] sm:$0xff] %v4516_v29  ;;  %v789_v57 = vmul.f32 0.70710677, %v600_v11  ;;  %vm852_vm15 = vcmp.ge.f32.partialorder %v788_v40, 0.0  ;;  %v1530_v7 = vmul.f32 %v4153_v60, %v1466_v32  ;;  %v4530_v55 = vpop.f32.mrb[49].mxu0 }
 0x1eb   : > { %2558 = vmatprep.mubr.f32.mxu0 %v2361_v56  ;;  %v1787_v35 = vmul.f32 %v4168_v59, %v1723_v1  ;;  %v1277_v14 = vmul.f32 1.0614054, %v4194_v58  ;;  %3360 = vrcp.f32 %v1107_v2  ;;  %v4522_v6 = vmul.f32 0.5, %v598_v62  ;;  %v5756_v2 = vld [vmem:[#allocation15_spill] sm:$0xff]  ;;  %v5757_v56 = vld [vmem:[#allocation13_spill] sm:$0xff] }
 0x1ec   : > { %v2232_v17 = vmul.f32 %v2168_v15, %v4063_v21  ;;  %v1044_v47 = vmul.f32 0.3275911, %v980_v4  ;;  %v1940_v44 = vmul.f32 %v1876_v22, %v980_v4  ;;  %v1594_v53 = vadd.f32 -0.28449672, %v1530_v7  ;;  %v4525_v54 = vpop.eup %3354  ;;  %v5758_v15 = vld [vmem:[#allocation30_spill] sm:$0xff] }
 0x1ed   : > { %5753 = vst [vmem:[#allocation102_spill] sm:$0xff] %v4522_v6  ;;  %v2107_v20 = vmul.f32 %v5754_v33, %v1787_v35  ;;  %v981_v0 = vand.u32 2147483647, %v789_v57  ;;  %3362 = vpow2.f32 %v2034_v19  ;;  %v4528_v59 = vsel %vm852_vm15, 1.0, %v5671_v8  ;;  %v5759_v35 = vld [vmem:[#allocation19_spill] sm:$0xff] }
 0x1ee   : > { %v2296_v26 = vadd.f32 1.0, %v2232_v17  ;;  %5755 = vst [vmem:[#allocation29_spill] sm:$0xff] %v4528_v59  ;;  %v1341_v40 = vadd.f32 -1.4531521, %v1277_v14  ;;  %v4532_v21 = vpop.eup %3356  ;;  %v1658_v31 = vmul.f32 %v4153_v60, %v1594_v53  ;;  %v4536_v4 = vmul.f32 0.5, %v5756_v2  ;;  %v5763_v59 = vld [vmem:[#allocation17_spill] sm:$0xff] }
 0x1ef   : > { %v2171_v62 = vsub.f32 1.0, %v2107_v20  ;;  %v1877_v48 = vsub.f32 0.0, %v981_v0  ;;  %v604_v32 = vadd.f32 %v4265_v43, %v4018_v9  ;;  %v1276_v19 = vmul.f32 1.0614054, %v5758_v15  ;;  %v4544_v20 = vpop.f32.mrb[50].mxu0 }
 0x1f0   : > { %v2360_v1 = vmul.f32 %v2296_v26, %v5757_v56  ;;  %v1405_v22 = vmul.f32 %v4194_v58, %v1341_v40  ;;  %v1108_v14 = vadd.f32 1.0, %v1044_v47  ;;  %v2036_v17 = vmul.f32 1.442695, %v1940_v44  ;;  %v5762_v44 = vld [vmem:[#allocation16_spill] sm:$0xff] }
 0x1f1   : > { %v2235_v7 = vmul.f32 %v2171_v62, %v5759_v35  ;;  %v1722_v33 = vadd.f32 0.2548296, %v1658_v31  ;;  %v4546_v53 = vpop.eup %3358  ;;  %v4548_v2 = vmul.f32 0.5, %v600_v11  ;;  %vm853_vm0 = vcmp.ge.f32.partialorder %v789_v57, 0.0  ;;  %v5764_v11 = vld [vmem:[#allocation26_spill] sm:$0xff] }
 0x1f2   : > { %5760 = vst [vmem:[#allocation15_spill] sm:$0xff] %v4546_v53  ;;  %2559 = vmatmul.mubr.f32.gmra.mrb[68].mxu0 %v2360_v1  ;;  %v1469_v26 = vadd.f32 1.4214138, %v1405_v22  ;;  %v790_v40 = vmul.f32 0.70710677, %v604_v32  ;;  %v606_v62 = vadd.f32 %v4275_v52, %v4020_v10  ;;  %v1941_v47 = vmul.f32 %v1877_v48, %v981_v0 }
 0x1f3   : > { %5761 = vst [vmem:[#allocation13_spill] sm:$0xff] %v4548_v2  ;;  %v2299_v56 = vadd.f32 1.0, %v2235_v7  ;;  %v1786_v43 = vmul.f32 %v4153_v60, %v1722_v33  ;;  %v1045_v6 = vmul.f32 0.3275911, %v981_v0  ;;  %vm829_vm1 = vcmp.ge.f32.partialorder %v5762_v44, 0.0 }
 0x1f4   : > { %v1533_v31 = vmul.f32 %v4194_v58, %v1469_v26  ;;  %v1340_v35 = vadd.f32 -1.4531521, %v1276_v19  ;;  %3364 = vrcp.f32 %v1108_v14  ;;  %v982_v22 = vand.u32 2147483647, %v790_v40 }
 0x1f5   : > { %v2363_v1 = vmul.f32 %v2299_v56, %v5763_v59  ;;  %v2106_v2 = vmul.f32 %v5764_v11, %v1786_v43  ;;  %v4557_v61 = vpop.eup %3360  ;;  %3366 = vpow2.f32 %v2036_v17  ;;  %v4561_v60 = vsel %vm853_vm0, 1.0, %v5671_v8  ;;  %v5766_v59 = vld [vmem:[#allocation42_spill] sm:$0xff]  ;;  %v4573_v43 = vpop.f32.mrb[51].mxu0 }
 0x1f6   : > { %5765 = vst [vmem:[#allocation30_spill] sm:$0xff] %v4561_v60  ;;  %v1597_v52 = vadd.f32 -0.28449672, %v1533_v31  ;;  %v1404_v0 = vmul.f32 %v5758_v15, %v1340_v35  ;;  %v1109_v7 = vadd.f32 1.0, %v1045_v6  ;;  %v4564_v19 = vmul.f32 0.70710677, %v606_v62 }
 0x1f7   : > { %2563 = vmatprep.mubr.f32.mxu0 %v2363_v1  ;;  %v2170_v48 = vsub.f32 1.0, %v2106_v2  ;;  %v1279_v14 = vmul.f32 1.0614054, %v5766_v59  ;;  %v4567_v33 = vpop.eup %3362  ;;  %v2038_v26 = vmul.f32 1.442695, %v1941_v47  ;;  %v893_v17 = vsel %vm829_vm1, 1.0, %v5671_v8 }
 0x1f8   : > { %5767 = vst [vmem:[#allocation19_spill] sm:$0xff] %v4567_v33  ;;  %v1661_v57 = vmul.f32 %v4194_v58, %v1597_v52  ;;  %v1468_v56 = vadd.f32 1.4214138, %v1404_v0  ;;  %v5768_v31 = vld [vmem:[#allocation18_spill] sm:$0xff]  ;;  %v1878_v2 = vsub.f32 0.0, %v982_v22  ;;  %v4577_v60 = vmul.f32 0.5, %v604_v32 }
 0x1f9   : > { %v2234_v35 = vmul.f32 %v2170_v48, %v5768_v31  ;;  %v983_v6 = vand.u32 2147483647, %v4564_v19  ;;  %v1343_v1 = vadd.f32 -1.4531521, %v1279_v14  ;;  %vm854_vm2 = vcmp.ge.f32.partialorder %v790_v40, 0.0  ;;  %v5770_v31 = vld [vmem:[#allocation14_spill] sm:$0xff] }
 0x1fa   : > { %v1725_v11 = vadd.f32 0.2548296, %v1661_v57  ;;  %5769 = vst [vmem:[#allocation16_spill] sm:$0xff] %v4577_v60  ;;  %v1532_v47 = vmul.f32 %v5758_v15, %v1468_v56  ;;  %3368 = vrcp.f32 %v1109_v7  ;;  %v1046_v44 = vmul.f32 0.3275911, %v982_v22  ;;  %v5772_v57 = vld [vmem:[#allocation35_spill] sm:$0xff] }
 0x1fb   : > { %v2298_v38 = vadd.f32 1.0, %v2234_v35  ;;  %v1879_v50 = vsub.f32 0.0, %v983_v6  ;;  %3370 = vpow2.f32 %v2038_v26  ;;  %v1407_v48 = vmul.f32 %v5766_v59, %v1343_v1  ;;  %v5773_v26 = vld [vmem:[#allocation37_spill] sm:$0xff]  ;;  %v4600_v29 = vpop.f32.mrb[52].mxu0 }
 0x1fc   : > { %v1789_v52 = vmul.f32 %v4194_v58, %v1725_v11  ;;  %v1596_v0 = vadd.f32 -0.28449672, %v1532_v47  ;;  %v4584_v14 = vsel %vm854_vm2, 1.0, %v5671_v8  ;;  %v1942_v32 = vmul.f32 %v1878_v2, %v982_v22 }
 0x1fd   : > { %v2362_v53 = vmul.f32 %v2298_v38, %v5770_v31  ;;  %5771 = vst [vmem:[#allocation17_spill] sm:$0xff] %v4584_v14  ;;  %v610_v40 = vadd.f32 %v4277_v24, %v4018_v9  ;;  %v1471_v35 = vadd.f32 1.4214138, %v1407_v48  ;;  %v1278_v60 = vmul.f32 1.0614054, %v5773_v26 }
 0x1fe   : > { %v2109_v56 = vmul.f32 %v5772_v57, %v1789_v52  ;;  %v1660_v7 = vmul.f32 %v5758_v15, %v1596_v0  ;;  %v4591_v58 = vpop.eup %3364  ;;  %v1110_v1 = vadd.f32 1.0, %v1046_v44  ;;  %v1047_v11 = vmul.f32 0.3275911, %v983_v6 }
 0x1ff   : > { %5774 = vst [vmem:[#allocation26_spill] sm:$0xff] %v4591_v58  ;;  %2564 = vmatmul.mubr.f32.gmra.mrb[70].mxu0 %v2362_v53  ;;  %v1943_v38 = vmul.f32 %v1879_v50, %v983_v6  ;;  %v792_v47 = vmul.f32 0.70710677, %v610_v40  ;;  %v4593_v31 = vpop.eup %3366  ;;  %v1535_v24 = vmul.f32 %v5766_v59, %v1471_v35  ;;  %v1342_v14 = vadd.f32 -1.4531521, %v1278_v60 }
 0x200   : > { %5775 = vst [vmem:[#allocation42_spill] sm:$0xff] %v4593_v31  ;;  %v2173_v22 = vsub.f32 1.0, %v2109_v56  ;;  %v1724_v2 = vadd.f32 0.2548296, %v1660_v7  ;;  %v2040_v52 = vmul.f32 1.442695, %v1942_v32  ;;  %v612_v48 = vadd.f32 %v4281_v12, %v4020_v10 }
 0x201   : > { %v4596_v57 = vmul.f32 0.5, %v606_v62  ;;  %v984_v0 = vand.u32 2147483647, %v792_v47  ;;  %vm855_vm3 = vcmp.ge.f32.partialorder %v4564_v19, 0.0  ;;  %v1599_v6 = vadd.f32 -0.28449672, %v1535_v24 }
 0x202   : > { %v2237_v53 = vmul.f32 %v2173_v22, %v893_v17  ;;  %v1788_v50 = vmul.f32 %v5758_v15, %v1724_v2  ;;  %3372 = vrcp.f32 %v1110_v1  ;;  %v1111_v44 = vadd.f32 1.0, %v1047_v11  ;;  %v5777_v62 = vld [vmem:[#allocation32_spill] sm:$0xff]  ;;  %v5784_v19 = vld [vmem:[#allocation59_spill] sm:$0xff] }
 0x203   : > { %5776 = vst [vmem:[#allocation18_spill] sm:$0xff] %v4596_v57  ;;  %v2042_v56 = vmul.f32 1.442695, %v1943_v38  ;;  %v1406_v60 = vmul.f32 %v5773_v26, %v1342_v14  ;;  %v1663_v35 = vmul.f32 %v5766_v59, %v1599_v6  ;;  %v793_v57 = vmul.f32 0.70710677, %v612_v48  ;;  %v5779_v15 = vld [vmem:[#allocation48_spill] sm:$0xff] }
 0x204   : > { %v2301_v32 = vadd.f32 1.0, %v2237_v53  ;;  %v2108_v7 = vmul.f32 %v5777_v62, %v1788_v50  ;;  %v4607_v12 = vpop.eup %3368  ;;  %3374 = vpow2.f32 %v2040_v52  ;;  %v1048_v17 = vmul.f32 0.3275911, %v984_v0  ;;  %v5783_v50 = vld [vmem:[#allocation21_spill] sm:$0xff] }
 0x205   : > { %5778 = vst [vmem:[#allocation14_spill] sm:$0xff] %v4607_v12  ;;  %v1470_v22 = vadd.f32 1.4214138, %v1406_v60  ;;  %v1281_v2 = vmul.f32 1.0614054, %v5779_v15  ;;  %v4610_v31 = vpop.eup %3370  ;;  %v1880_v14 = vsub.f32 0.0, %v984_v0  ;;  %3376 = vrcp.f32 %v1111_v44 }
 0x206   : > { %5780 = vst [vmem:[#allocation35_spill] sm:$0xff] %v4610_v31  ;;  %v2365_v1 = vmul.f32 %v2301_v32, %v4536_v4  ;;  %v2172_v11 = vsub.f32 1.0, %v2108_v7  ;;  %v1727_v38 = vadd.f32 0.2548296, %v1663_v35  ;;  %v4616_v24 = vsel %vm855_vm3, 1.0, %v5671_v8  ;;  %v4623_v32 = vpop.f32.mrb[53].mxu0 }
 0x207   : > { %5781 = vst [vmem:[#allocation37_spill] sm:$0xff] %v4616_v24  ;;  %v4618_v53 = vmul.f32 0.5, %v610_v40  ;;  %v1534_v52 = vmul.f32 %v5773_v26, %v1470_v22  ;;  %v985_v62 = vand.u32 2147483647, %v793_v57  ;;  %v1345_v4 = vadd.f32 -1.4531521, %v1281_v2 }
 0x208   : > { %2568 = vmatprep.mubr.f32.mxu1 %v2365_v1  ;;  %v2236_v6 = vmul.f32 %v2172_v11, %v5783_v50  ;;  %v1791_v60 = vmul.f32 %v5766_v59, %v1727_v38  ;;  %3378 = vpow2.f32 %v2042_v56  ;;  %vm856_vm4 = vcmp.ge.f32.partialorder %v792_v47, 0.0  ;;  %v5785_v40 = vld [vmem:[#allocation46_spill] sm:$0xff]  ;;  %v5786_v38 = vld [vmem:[#allocation44_spill] sm:$0xff] }
 0x209   : > { %5782 = vst [vmem:[#allocation32_spill] sm:$0xff] %v4618_v53  ;;  %v1598_v7 = vadd.f32 -0.28449672, %v1534_v52  ;;  %v616_v35 = vadd.f32 %v5784_v19, %v4018_v9  ;;  %v1112_v24 = vadd.f32 1.0, %v1048_v17  ;;  %v1944_v22 = vmul.f32 %v1880_v14, %v984_v0  ;;  %v5787_v50 = vld [vmem:[#allocation20_spill] sm:$0xff]  ;;  %v5790_v14 = vld [vmem:[#allocation62_spill] sm:$0xff] }
 0x20a   : > { %v2300_v44 = vadd.f32 1.0, %v2236_v6  ;;  %v2111_v53 = vmul.f32 %v5785_v40, %v1791_v60  ;;  %v1409_v11 = vmul.f32 %v5779_v15, %v1345_v4  ;;  %v1280_v2 = vmul.f32 1.0614054, %v5786_v38  ;;  %v4640_v4 = vpop.f32.mrb[54].mxu0 }
 0x20b   : > { %v1662_v1 = vmul.f32 %v5773_v26, %v1598_v7  ;;  %v794_v59 = vmul.f32 0.70710677, %v616_v35  ;;  %v1049_v33 = vmul.f32 0.3275911, %v985_v62  ;;  %v1881_v52 = vsub.f32 0.0, %v985_v62  ;;  %v5791_v7 = vld [vmem:[#allocation27_spill] sm:$0xff] }
 0x20c   : > { %v2364_v31 = vmul.f32 %v2300_v44, %v5787_v50  ;;  %v2175_v56 = vsub.f32 1.0, %v2111_v53  ;;  %v4632_v58 = vpop.eup %3372  ;;  %v4636_v6 = vsel %vm856_vm4, 1.0, %v5671_v8  ;;  %v1473_v0 = vadd.f32 1.4214138, %v1409_v11 }
 0x20d   : > { %5788 = vst [vmem:[#allocation48_spill] sm:$0xff] %v4632_v58  ;;  %5789 = vst [vmem:[#allocation21_spill] sm:$0xff] %v4636_v6  ;;  %v1726_v17 = vadd.f32 0.2548296, %v1662_v1  ;;  %v618_v60 = vadd.f32 %v5790_v14, %v4020_v10  ;;  %3380 = vrcp.f32 %v1112_v24  ;;  %v4643_v53 = vmul.f32 0.5, %v612_v48 }
 0x20e   : > { %2569 = vmatmul.mubr.f32.vlgmr.msra.gmra.mrb[0].mxu1 %v2364_v31  ;;  %v2239_v19 = vmul.f32 %v2175_v56, %v5791_v7  ;;  %vm857_vm5 = vcmp.ge.f32.partialorder %v793_v57, 0.0  ;;  %v4645_v44 = vpop.eup %3374  ;;  %v1537_v40 = vmul.f32 %v5779_v15, %v1473_v0  ;;  %v986_v1 = vand.u32 2147483647, %v794_v59  ;;  %v5795_v31 = vld [vmem:[#allocation39_spill] sm:$0xff]  ;;  %v5797_v7 = vld [vmem:[#allocation24_spill] sm:$0xff] }
 0x20f   : > { %5792 = vst [vmem:[#allocation59_spill] sm:$0xff] %v4643_v53  ;;  %5793 = vst [vmem:[#allocation46_spill] sm:$0xff] %v4645_v44  ;;  %v1790_v47 = vmul.f32 %v5773_v26, %v1726_v17  ;;  %v1344_v11 = vadd.f32 -1.4531521, %v1280_v2  ;;  %v2044_v6 = vmul.f32 1.442695, %v1944_v22  ;;  %v1945_v14 = vmul.f32 %v1881_v52, %v985_v62  ;;  %v4649_v42 = vpop.eup %3376 }
 0x210   : > { %v2303_v50 = vadd.f32 1.0, %v2239_v19  ;;  %v795_v58 = vmul.f32 0.70710677, %v618_v60  ;;  %5794 = vst [vmem:[#allocation44_spill] sm:$0xff] %v4649_v42  ;;  %v4653_v48 = vsel %vm857_vm5, 1.0, %v5671_v8  ;;  %v1113_v57 = vadd.f32 1.0, %v1049_v33 }
 0x211   : > { %v2110_v56 = vmul.f32 %v5795_v31, %v1790_v47  ;;  %5796 = vst [vmem:[#allocation20_spill] sm:$0xff] %v4653_v48  ;;  %v1601_v24 = vadd.f32 -0.28449672, %v1537_v40  ;;  %vm858_vm6 = vcmp.ge.f32.partialorder %v794_v59, 0.0  ;;  %v1882_v26 = vsub.f32 0.0, %v986_v1  ;;  %v5800_v40 = vld [vmem:[#allocation23_spill] sm:$0xff] }
 0x212   : > { %v2367_v53 = vmul.f32 %v2303_v50, %v5797_v7  ;;  %v1408_v17 = vmul.f32 %v5786_v38, %v1344_v11  ;;  %v4657_v2 = vpop.eup %3378  ;;  %v4660_v52 = vmul.f32 0.5, %v616_v35  ;;  %v1050_v0 = vmul.f32 0.3275911, %v986_v1  ;;  %v5802_v35 = vld [vmem:[#allocation60_spill] sm:$0xff] }
 0x213   : > { %5798 = vst [vmem:[#allocation62_spill] sm:$0xff] %v4657_v2  ;;  %v2174_v22 = vsub.f32 1.0, %v2110_v56  ;;  %v1665_v62 = vmul.f32 %v5779_v15, %v1601_v24  ;;  %3382 = vpow2.f32 %v2044_v6  ;;  %v2046_v19 = vmul.f32 1.442695, %v1945_v14 }
 0x214   : > { %5799 = vst [vmem:[#allocation27_spill] sm:$0xff] %v4660_v52  ;;  %2573 = vmatprep.mubr.f32.mxu1 %v2367_v53  ;;  %v1472_v47 = vadd.f32 1.4214138, %v1408_v17  ;;  %v987_v33 = vand.u32 2147483647, %v795_v58  ;;  %3384 = vrcp.f32 %v1113_v57  ;;  %v4665_v11 = vsel %vm858_vm6, 1.0, %v5671_v8 }
 0x215   : > { %v2238_v31 = vmul.f32 %v2174_v22, %v5800_v40  ;;  %v1729_v50 = vadd.f32 0.2548296, %v1665_v62  ;;  %5801 = vst [vmem:[#allocation39_spill] sm:$0xff] %v4665_v11  ;;  %v1946_v7 = vmul.f32 %v1882_v26, %v986_v1  ;;  %vm859_vm7 = vcmp.ge.f32.partialorder %v795_v58, 0.0  ;;  %v4669_v52 = vpop.f32.mrb[55].mxu0  ;;  %v5803_v17 = vld [vmem:[#allocation67_spill] sm:$0xff] }
 0x216   : > { %v1536_v56 = vmul.f32 %v5786_v38, %v1472_v47  ;;  %v1283_v24 = vmul.f32 1.0614054, %v5802_v35  ;;  %v1114_v14 = vadd.f32 1.0, %v1050_v0  ;;  %v622_v57 = vadd.f32 %v5803_v17, %v4018_v9  ;;  %v5805_v26 = vld [vmem:[#allocation22_spill] sm:$0xff]  ;;  %v5806_v40 = vld [vmem:[#allocation51_spill] sm:$0xff]  ;;  %v5807_v0 = vld [vmem:[#allocation53_spill] sm:$0xff] }
 0x217   : > { %v2302_v6 = vadd.f32 1.0, %v2238_v31  ;;  %v1793_v53 = vmul.f32 %v5779_v15, %v1729_v50  ;;  %v4674_v22 = vpop.eup %3380  ;;  %3386 = vpow2.f32 %v2046_v19  ;;  %v1051_v62 = vmul.f32 0.3275911, %v987_v33 }
 0x218   : > { %5804 = vst [vmem:[#allocation24_spill] sm:$0xff] %v4674_v22  ;;  %v1600_v59 = vadd.f32 -0.28449672, %v1536_v56  ;;  %v1347_v1 = vadd.f32 -1.4531521, %v1283_v24  ;;  %v1883_v48 = vsub.f32 0.0, %v987_v33  ;;  %3388 = vrcp.f32 %v1114_v14 }
 0x219   : > { %v2366_v47 = vmul.f32 %v2302_v6, %v5805_v26  ;;  %v2113_v11 = vmul.f32 %v5806_v40, %v1793_v53  ;;  %v796_v44 = vmul.f32 0.70710677, %v622_v57  ;;  %v2048_v2 = vmul.f32 1.442695, %v1946_v7  ;;  %v5809_v56 = vld [vmem:[#allocation71_spill] sm:$0xff] }
 0x21a   : > { %v1664_v31 = vmul.f32 %v5786_v38, %v1600_v59  ;;  %v1411_v15 = vmul.f32 %v5802_v35, %v1347_v1  ;;  %v1282_v50 = vmul.f32 1.0614054, %v5807_v0  ;;  %v4681_v22 = vmul.f32 0.5, %v618_v60  ;;  %v5811_v59 = vld [vmem:[#allocation33_spill] sm:$0xff]  ;;  %v5814_v14 = vld [vmem:[#allocation47_spill] sm:$0xff] }
 0x21b   : > { %2574 = vmatmul.mubr.f32.gmra.mrb[2].mxu1 %v2366_v47  ;;  %v2177_v17 = vsub.f32 1.0, %v2113_v11  ;;  %v988_v19 = vand.u32 2147483647, %v796_v44  ;;  %v624_v24 = vadd.f32 %v5809_v56, %v4020_v10  ;;  %v4687_v53 = vsel %vm859_vm7, 1.0, %v5671_v8  ;;  %v4690_v47 = vpop.f32.mrb[56].mxu0 }
 0x21c   : > { %5808 = vst [vmem:[#allocation23_spill] sm:$0xff] %v4681_v22  ;;  %v1728_v6 = vadd.f32 0.2548296, %v1664_v31  ;;  %5810 = vst [vmem:[#allocation60_spill] sm:$0xff] %v4687_v53  ;;  %v1115_v7 = vadd.f32 1.0, %v1051_v62  ;;  %v1947_v1 = vmul.f32 %v1883_v48, %v987_v33  ;;  %3390 = vpow2.f32 %v2048_v2 }
 0x21d   : > { %v1475_v26 = vadd.f32 1.4214138, %v1411_v15  ;;  %v2241_v40 = vmul.f32 %v2177_v17, %v5811_v59  ;;  %v1346_v42 = vadd.f32 -1.4531521, %v1282_v50  ;;  %v4692_v60 = vpop.eup %3382  ;;  %vm860_vm8 = vcmp.ge.f32.partialorder %v796_v44, 0.0  ;;  %v5815_v59 = vld [vmem:[#allocation31_spill] sm:$0xff] }
 0x21e   : > { %5812 = vst [vmem:[#allocation67_spill] sm:$0xff] %v4692_v60  ;;  %v1792_v11 = vmul.f32 %v5786_v38, %v1728_v6  ;;  %v4696_v58 = vpop.eup %3384  ;;  %v1884_v62 = vsub.f32 0.0, %v988_v19  ;;  %v797_v17 = vmul.f32 0.70710677, %v624_v24  ;;  %3392 = vrcp.f32 %v1115_v7 }
 0x21f   : > { %v1539_v31 = vmul.f32 %v5802_v35, %v1475_v26  ;;  %5813 = vst [vmem:[#allocation22_spill] sm:$0xff] %v4696_v58  ;;  %v2305_v56 = vadd.f32 1.0, %v2241_v40  ;;  %v1410_v15 = vmul.f32 %v5807_v0, %v1346_v42  ;;  %v1052_v50 = vmul.f32 0.3275911, %v988_v19 }
 0x220   : > { %v2112_v48 = vmul.f32 %v5814_v14, %v1792_v11  ;;  %v2050_v2 = vmul.f32 1.442695, %v1947_v1  ;;  %v4703_v38 = vadd.f32 %v4355_v13, %v4018_v9  ;;  %v4708_v42 = vmul.f32 0.5, %v622_v57  ;;  %v4714_v11 = vpop.f32.mrb[57].mxu0  ;;  %v5820_v13 = vld [vmem:[#allocation68_spill] sm:$0xff] }
 0x221   : > { %v1603_v33 = vadd.f32 -0.28449672, %v1539_v31  ;;  %v2369_v22 = vmul.f32 %v2305_v56, %v5815_v59  ;;  %v1474_v53 = vadd.f32 1.4214138, %v1410_v15  ;;  %v4705_v6 = vpop.eup %3386  ;;  %v4712_v7 = vsel %vm860_vm8, 1.0, %v5671_v8  ;;  %5819 = vst [vmem:[#allocation33_spill] sm:$0xff] %v4714_v11 }
 0x222   : > { %5816 = vst [vmem:[#allocation51_spill] sm:$0xff] %v4705_v6  ;;  %v2176_v26 = vsub.f32 1.0, %v2112_v48  ;;  %5817 = vst [vmem:[#allocation53_spill] sm:$0xff] %v4708_v42  ;;  %v1948_v1 = vmul.f32 %v1884_v62, %v988_v19  ;;  %v989_v56 = vand.u32 2147483647, %v797_v17  ;;  %v5821_v14 = vld [vmem:[#allocation28_spill] sm:$0xff]  ;;  %3394 = vpow2.f32 %v2050_v2  ;;  %v4726_v62 = vpop.eup %3388 }
 0x223   : > { %v1667_v40 = vmul.f32 %v5802_v35, %v1603_v33  ;;  %5818 = vst [vmem:[#allocation71_spill] sm:$0xff] %v4712_v7  ;;  %2578 = vmatprep.mubr.f32.mxu1 %v2369_v22  ;;  %v1538_v31 = vmul.f32 %v5807_v0, %v1474_v53  ;;  %v1285_v15 = vmul.f32 1.0614054, %v5820_v13  ;;  %v1116_v60 = vadd.f32 1.0, %v1052_v50  ;;  %v5823_v19 = vld [vmem:[#allocation64_spill] sm:$0xff]  ;;  %5824 = vst [vmem:[#allocation31_spill] sm:$0xff] %v4726_v62 }
 0x224   : > { %v2240_v59 = vmul.f32 %v2176_v26, %v5821_v14  ;;  %v4719_v33 = vmul.f32 0.5, %v624_v24  ;;  %v4722_v42 = vmul.f32 0.70710677, %v4703_v38  ;;  %vm861_vm9 = vcmp.ge.f32.partialorder %v797_v17, 0.0  ;;  %v4730_v2 = vpop.f32.mrb[58].mxu0  ;;  %v5828_v14 = vld [vmem:[#allocation63_spill] sm:$0xff] }
 0x225   : > { %v1731_v48 = vadd.f32 0.2548296, %v1667_v40  ;;  %v1602_v57 = vadd.f32 -0.28449672, %v1538_v31  ;;  %v1349_v44 = vadd.f32 -1.4531521, %v1285_v15  ;;  %3396 = vrcp.f32 %v1116_v60 }
 0x226   : > { %5822 = vst [vmem:[#allocation47_spill] sm:$0xff] %v4719_v33  ;;  %v2304_v7 = vadd.f32 1.0, %v2240_v59  ;;  %v1284_v53 = vmul.f32 1.0614054, %v5823_v19  ;;  %v2052_v6 = vmul.f32 1.442695, %v1948_v1  ;;  %v4732_v40 = vpop.eup %3390 }
 0x227   : > { %v1795_v22 = vmul.f32 %v5802_v35, %v1731_v48  ;;  %v1666_v26 = vmul.f32 %v5807_v0, %v1602_v57  ;;  %v1053_v50 = vmul.f32 0.3275911, %v989_v56  ;;  %v1413_v24 = vmul.f32 %v5820_v13, %v1349_v44  ;;  %5825 = vst [vmem:[#allocation68_spill] sm:$0xff] %v4730_v2  ;;  %5826 = vst [vmem:[#allocation28_spill] sm:$0xff] %v4732_v40  ;;  %v5827_v31 = vld [vmem:[#allocation25_spill] sm:$0xff] }
 0x228   : > { %v2368_v15 = vmul.f32 %v2304_v7, %v5827_v31  ;;  %v1885_v35 = vsub.f32 0.0, %v989_v56  ;;  %v990_v48 = vand.u32 2147483647, %v4722_v42  ;;  %v1348_v1 = vadd.f32 -1.4531521, %v1284_v53  ;;  %v4737_v58 = vpop.eup %3392  ;;  %v5832_v17 = vld [vmem:[#allocation57_spill] sm:$0xff] }
 0x229   : > { %v2115_v59 = vmul.f32 %v5828_v14, %v1795_v22  ;;  %v1730_v33 = vadd.f32 0.2548296, %v1666_v26  ;;  %v1477_v62 = vadd.f32 1.4214138, %v1413_v24  ;;  %5829 = vst [vmem:[#allocation64_spill] sm:$0xff] %v4737_v58  ;;  %v4741_v44 = vsel %vm861_vm9, 1.0, %v5671_v8 }
 0x22a   : > { %2579 = vmatmul.mubr.f32.gmra.mrb[4].mxu1 %v2368_v15  ;;  %5830 = vst [vmem:[#allocation25_spill] sm:$0xff] %v4741_v44  ;;  %v1886_v40 = vsub.f32 0.0, %v990_v48  ;;  %v630_v7 = vadd.f32 %v4367_v23, %v4020_v10  ;;  %v1412_v60 = vmul.f32 %v5823_v19, %v1348_v1  ;;  %v1287_v53 = vmul.f32 1.0614054, %v4348_v63  ;;  %v5831_v26 = vld [vmem:[#allocation41_spill] sm:$0xff] }
 0x22b   : > { %v2179_v57 = vsub.f32 1.0, %v2115_v59  ;;  %v1794_v22 = vmul.f32 %v5807_v0, %v1730_v33  ;;  %v1541_v31 = vmul.f32 %v5820_v13, %v1477_v62  ;;  %3398 = vpow2.f32 %v2052_v6 }
 0x22c   : > { %v1117_v15 = vadd.f32 1.0, %v1053_v50  ;;  %v1949_v14 = vmul.f32 %v1885_v35, %v989_v56  ;;  %v1476_v58 = vadd.f32 1.4214138, %v1412_v60  ;;  %v799_v2 = vmul.f32 0.70710677, %v630_v7  ;;  %v4751_v33 = vpop.eup %3394  ;;  %v5834_v56 = vld [vmem:[#allocation36_spill] sm:$0xff] }
 0x22d   : > { %v2243_v24 = vmul.f32 %v2179_v57, %v5831_v26  ;;  %v2114_v59 = vmul.f32 %v5832_v17, %v1794_v22  ;;  %v1605_v44 = vadd.f32 -0.28449672, %v1541_v31  ;;  %v1054_v23 = vmul.f32 0.3275911, %v990_v48  ;;  %v4759_v22 = vpop.f32.mrb[59].mxu0  ;;  %v5835_v31 = vld [vmem:[#allocation38_spill] sm:$0xff] }
 0x22e   : > { %v1950_v11 = vmul.f32 %v1886_v40, %v990_v48  ;;  %v1351_v0 = vadd.f32 -1.4531521, %v1287_v53  ;;  %v4755_v25 = vmul.f32 0.5, %v4703_v38  ;;  %v1540_v6 = vmul.f32 %v5823_v19, %v1476_v58 }
 0x22f   : > { %v2307_v12 = vadd.f32 1.0, %v2243_v24  ;;  %v2178_v62 = vsub.f32 1.0, %v2114_v59  ;;  %v1669_v1 = vmul.f32 %v5820_v13, %v1605_v44  ;;  %3400 = vrcp.f32 %v1117_v15 }
 0x230   : > { %5833 = vst [vmem:[#allocation63_spill] sm:$0xff] %v4755_v25  ;;  %v2054_v35 = vmul.f32 1.442695, %v1949_v14  ;;  %v991_v57 = vand.u32 2147483647, %v799_v2  ;;  %v1415_v53 = vmul.f32 %v4348_v63, %v1351_v0  ;;  %vm862_vm10 = vcmp.ge.f32.partialorder %v4722_v42, 0.0 }
 0x231   : > { %v2371_v50 = vmul.f32 %v2307_v12, %v5834_v56  ;;  %v2242_v40 = vmul.f32 %v2178_v62, %v5835_v31  ;;  %v1733_v48 = vadd.f32 0.2548296, %v1669_v1  ;;  %v1604_v60 = vadd.f32 -0.28449672, %v1540_v6  ;;  %v4766_v12 = vpop.eup %3396  ;;  %v5836_v0 = vld [vmem:[#allocation74_spill] sm:$0xff]  ;;  %v5842_v42 = vld [vmem:[#allocation49_spill] sm:$0xff] }
 0x232   : > { %v1118_v38 = vadd.f32 1.0, %v1054_v23  ;;  %v2056_v44 = vmul.f32 1.442695, %v1950_v11  ;;  %v634_v58 = vadd.f32 %v4389_v28, %v4018_v9  ;;  %v1479_v14 = vadd.f32 1.4214138, %v1415_v53  ;;  %v5837_v1 = vld [vmem:[#allocation34_spill] sm:$0xff] }
 0x233   : > { %2583 = vmatprep.mubr.f32.mxu1 %v2371_v50  ;;  %v2306_v26 = vadd.f32 1.0, %v2242_v40  ;;  %v1797_v24 = vmul.f32 %v5820_v13, %v1733_v48  ;;  %v1668_v15 = vmul.f32 %v5823_v19, %v1604_v60  ;;  %3402 = vpow2.f32 %v2054_v35  ;;  %v5838_v11 = vld [vmem:[#allocation72_spill] sm:$0xff]  ;;  %v4786_v53 = vpop.f32.mrb[60].mxu0 }
 0x234   : > { %v1055_v17 = vmul.f32 0.3275911, %v991_v57  ;;  %v4770_v59 = vmul.f32 0.70710677, %v634_v58  ;;  %v1286_v62 = vmul.f32 1.0614054, %v5836_v0  ;;  %v1543_v28 = vmul.f32 %v4348_v63, %v1479_v14 }
 0x235   : > { %v2370_v23 = vmul.f32 %v2306_v26, %v5837_v1  ;;  %v2117_v6 = vmul.f32 %v5838_v11, %v1797_v24  ;;  %v1732_v56 = vadd.f32 0.2548296, %v1668_v15  ;;  %v4776_v50 = vpop.eup %3398  ;;  %v4781_v13 = vsel %vm862_vm10, 1.0, %v5671_v8  ;;  %v5843_v1 = vld [vmem:[#allocation65_spill] sm:$0xff] }
 0x236   : > { %5839 = vst [vmem:[#allocation41_spill] sm:$0xff] %v4776_v50  ;;  %5840 = vst [vmem:[#allocation57_spill] sm:$0xff] %v4781_v13  ;;  %3404 = vrcp.f32 %v1118_v38  ;;  %v4783_v35 = vmul.f32 0.5, %v630_v7  ;;  %v1887_v31 = vsub.f32 0.0, %v991_v57  ;;  %vm863_vm11 = vcmp.ge.f32.partialorder %v799_v2, 0.0 }
 0x237   : > { %2584 = vmatmul.mubr.f32.gmra.mrb[6].mxu1 %v2370_v23  ;;  %v2181_v40 = vsub.f32 1.0, %v2117_v6  ;;  %v1796_v48 = vmul.f32 %v5823_v19, %v1732_v56  ;;  %v1607_v60 = vadd.f32 -0.28449672, %v1543_v28  ;;  %3406 = vpow2.f32 %v2056_v44 }
 0x238   : > { %5841 = vst [vmem:[#allocation36_spill] sm:$0xff] %v4783_v35  ;;  %v1119_v26 = vadd.f32 1.0, %v1055_v17  ;;  %v992_v24 = vand.u32 2147483647, %v4770_v59  ;;  %v1350_v15 = vadd.f32 -1.4531521, %v1286_v62  ;;  %v636_v23 = vadd.f32 %v4427_v39, %v4020_v10 }
 0x239   : > { %v2245_v14 = vmul.f32 %v2181_v40, %v5842_v42  ;;  %v2116_v38 = vmul.f32 %v5843_v1, %v1796_v48  ;;  %v1671_v7 = vmul.f32 %v4348_v63, %v1607_v60  ;;  %v4794_v11 = vpop.eup %3400  ;;  %v4797_v19 = vsel %vm863_vm11, 1.0, %v5671_v8  ;;  %v5846_v39 = vld [vmem:[#allocation43_spill] sm:$0xff]  ;;  %v5847_v1 = vld [vmem:[#allocation45_spill] sm:$0xff] }
 0x23a   : > { %5844 = vst [vmem:[#allocation38_spill] sm:$0xff] %v4797_v19  ;;  %v1951_v2 = vmul.f32 %v1887_v31, %v991_v57  ;;  %v1414_v44 = vmul.f32 %v5836_v0, %v1350_v15  ;;  %v1289_v17 = vmul.f32 1.0614054, %v4372_v18  ;;  %v4801_v28 = vmul.f32 0.5, %v634_v58  ;;  %v4808_v15 = vpop.f32.mrb[61].mxu0 }
 0x23b   : > { %v2309_v62 = vadd.f32 1.0, %v2245_v14  ;;  %v2180_v6 = vsub.f32 1.0, %v2116_v38  ;;  %v1735_v56 = vadd.f32 0.2548296, %v1671_v7  ;;  %3408 = vrcp.f32 %v1119_v26 }
 0x23c   : > { %5845 = vst [vmem:[#allocation74_spill] sm:$0xff] %v4801_v28  ;;  %v1888_v40 = vsub.f32 0.0, %v992_v24  ;;  %v1478_v48 = vadd.f32 1.4214138, %v1414_v44  ;;  %v4803_v60 = vmul.f32 0.70710677, %v636_v23 }
 0x23d   : > { %v2373_v42 = vmul.f32 %v2309_v62, %v5846_v39  ;;  %v2244_v25 = vmul.f32 %v2180_v6, %v5847_v1  ;;  %v1799_v57 = vmul.f32 %v4348_v63, %v1735_v56  ;;  %v1353_v31 = vadd.f32 -1.4531521, %v1289_v17  ;;  %v4810_v35 = vpop.eup %3402  ;;  %v5848_v44 = vld [vmem:[#allocation78_spill] sm:$0xff]  ;;  %v5849_v39 = vld [vmem:[#allocation40_spill] sm:$0xff] }
 0x23e   : > { %v2058_v14 = vmul.f32 1.442695, %v1951_v2  ;;  %v1056_v38 = vmul.f32 0.3275911, %v992_v24  ;;  %v1542_v58 = vmul.f32 %v5836_v0, %v1478_v48  ;;  %v993_v26 = vand.u32 2147483647, %v4803_v60 }
 0x23f   : > { %2588 = vmatprep.mubr.f32.mxu1 %v2373_v42  ;;  %v2308_v7 = vadd.f32 1.0, %v2244_v25  ;;  %v2119_v28 = vmul.f32 %v5848_v44, %v1799_v57  ;;  %vm864_vm12 = vcmp.ge.f32.partialorder %v4770_v59, 0.0  ;;  %v1417_v62 = vmul.f32 %v4372_v18, %v1353_v31  ;;  %v5850_v42 = vld [vmem:[#allocation80_spill] sm:$0xff] }
 0x240   : > { %v4817_v63 = vpop.eup %3404  ;;  %v1952_v17 = vmul.f32 %v1888_v40, %v992_v24  ;;  %v1606_v6 = vadd.f32 -0.28449672, %v1542_v58  ;;  %v1889_v56 = vsub.f32 0.0, %v993_v26  ;;  %v640_v2 = vadd.f32 %v4444_v36, %v4018_v9  ;;  %v5853_v40 = vld [vmem:[#allocation56_spill] sm:$0xff] }
 0x241   : > { %v2372_v48 = vmul.f32 %v2308_v7, %v5849_v39  ;;  %v2183_v1 = vsub.f32 1.0, %v2119_v28  ;;  %v1481_v13 = vadd.f32 1.4214138, %v1417_v62  ;;  %v1288_v25 = vmul.f32 1.0614054, %v5850_v42  ;;  %v4823_v19 = vpop.eup %3406  ;;  %v4831_v28 = vpop.f32.mrb[62].mxu0 }
 0x242   : > { %5851 = vst [vmem:[#allocation34_spill] sm:$0xff] %v4823_v19  ;;  %v4826_v59 = vsel %vm864_vm12, 1.0, %v5671_v8  ;;  %v1120_v57 = vadd.f32 1.0, %v1056_v38  ;;  %v1670_v31 = vmul.f32 %v5836_v0, %v1606_v6  ;;  %v1057_v24 = vmul.f32 0.3275911, %v993_v26 }
 0x243   : > { %5852 = vst [vmem:[#allocation72_spill] sm:$0xff] %v4826_v59  ;;  %2589 = vmatmul.mubr.f32.gmra.mrb[8].mxu1 %v2372_v48  ;;  %v2247_v58 = vmul.f32 %v2183_v1, %v5853_v40  ;;  %v1545_v36 = vmul.f32 %v4372_v18, %v1481_v13  ;;  %v802_v44 = vmul.f32 0.70710677, %v640_v2  ;;  %v1352_v7 = vadd.f32 -1.4531521, %v1288_v25  ;;  %v5855_v40 = vld [vmem:[#allocation54_spill] sm:$0xff] }
 0x244   : > { %3410 = vpow2.f32 %v2058_v14  ;;  %v1734_v62 = vadd.f32 0.2548296, %v1670_v31  ;;  %v1953_v39 = vmul.f32 %v1889_v56, %v993_v26  ;;  %v642_v19 = vadd.f32 %v4475_v27, %v4020_v10  ;;  %v5856_v56 = vld [vmem:[#allocation76_spill] sm:$0xff] }
 0x245   : > { %v2311_v59 = vadd.f32 1.0, %v2247_v58  ;;  %v2060_v38 = vmul.f32 1.442695, %v1952_v17  ;;  %v4835_v50 = vmul.f32 0.5, %v636_v23  ;;  %v1609_v6 = vadd.f32 -0.28449672, %v1545_v36  ;;  %v4837_v48 = vpop.eup %3408 }
 0x246   : > { %3412 = vrcp.f32 %v1120_v57  ;;  %v1798_v13 = vmul.f32 %v5836_v0, %v1734_v62  ;;  %v994_v1 = vand.u32 2147483647, %v802_v44  ;;  %v1416_v25 = vmul.f32 %v5850_v42, %v1352_v7  ;;  %v5857_v0 = vld [vmem:[#allocation90_spill] sm:$0xff] }
 0x247   : > { %5854 = vst [vmem:[#allocation49_spill] sm:$0xff] %v4835_v50  ;;  %v2375_v14 = vmul.f32 %v2311_v59, %v5855_v40  ;;  %vm865_vm13 = vcmp.ge.f32.partialorder %v4803_v60, 0.0  ;;  %v1121_v26 = vadd.f32 1.0, %v1057_v24  ;;  %v1673_v27 = vmul.f32 %v4372_v18, %v1609_v6  ;;  %v5861_v40 = vld [vmem:[#allocation85_spill] sm:$0xff] }
 0x248   : > { %v2118_v17 = vmul.f32 %v5856_v56, %v1798_v13  ;;  %v2062_v23 = vmul.f32 1.442695, %v1953_v39  ;;  %v1480_v31 = vadd.f32 1.4214138, %v1416_v25  ;;  %v803_v58 = vmul.f32 0.70710677, %v642_v19 }
 0x249   : > { %2593 = vmatprep.mubr.f32.mxu1 %v2375_v14  ;;  %3414 = vpow2.f32 %v2060_v38  ;;  %v1737_v57 = vadd.f32 0.2548296, %v1673_v27  ;;  %vm866_vm14 = vcmp.ge.f32.partialorder %v802_v44, 0.0  ;;  %v1291_v36 = vmul.f32 1.0614054, %v5857_v0  ;;  %v5859_v13 = vld [vmem:[#allocation52_spill] sm:$0xff] }
 0x24a   : > { %v2182_v62 = vsub.f32 1.0, %v2118_v17  ;;  %v1058_v7 = vmul.f32 0.3275911, %v994_v1  ;;  %v1890_v50 = vsub.f32 0.0, %v994_v1  ;;  %v1544_v59 = vmul.f32 %v5850_v42, %v1480_v31 }
 0x24b   : > { %v4850_v24 = vsel %vm865_vm13, 1.0, %v5671_v8  ;;  %3416 = vrcp.f32 %v1121_v26  ;;  %v1801_v39 = vmul.f32 %v4372_v18, %v1737_v57  ;;  %v995_v6 = vand.u32 2147483647, %v803_v58 }
 0x24c   : > { %5858 = vst [vmem:[#allocation65_spill] sm:$0xff] %v4850_v24  ;;  %v2246_v38 = vmul.f32 %v2182_v62, %v5859_v13  ;;  %3418 = vpow2.f32 %v2062_v23  ;;  %v4854_v44 = vmul.f32 0.5, %v640_v2  ;;  %v1608_v25 = vadd.f32 -0.28449672, %v1544_v59  ;;  %v4865_v23 = vpop.f32.mrb[63].mxu0 }
 0x24d   : > { %v2121_v14 = vmul.f32 %v5861_v40, %v1801_v39  ;;  %v4858_v27 = vsel %vm866_vm14, 1.0, %v5671_v8  ;;  %v1355_v56 = vadd.f32 -1.4531521, %v1291_v36  ;;  %v646_v60 = vadd.f32 %v4504_v51, %v4018_v9  ;;  %v5864_v36 = vld [vmem:[#allocation50_spill] sm:$0xff] }
 0x24e   : > { %5860 = vst [vmem:[#allocation43_spill] sm:$0xff] %v4854_v44  ;;  %5862 = vst [vmem:[#allocation45_spill] sm:$0xff] %v4858_v27  ;;  %v4862_v17 = vpop.eup %3410  ;;  %v2310_v26 = vadd.f32 1.0, %v2246_v38  ;;  %v1122_v18 = vadd.f32 1.0, %v1058_v7  ;;  %v1954_v31 = vmul.f32 %v1890_v50, %v994_v1  ;;  %v1672_v57 = vmul.f32 %v5850_v42, %v1608_v25  ;;  %v5866_v7 = vld [vmem:[#allocation69_spill] sm:$0xff]  ;;  %v5867_v27 = vld [vmem:[#allocation86_spill] sm:$0xff] }
 0x24f   : > { %5863 = vst [vmem:[#allocation78_spill] sm:$0xff] %v4862_v17  ;;  %v2185_v2 = vsub.f32 1.0, %v2121_v14  ;;  %v1891_v62 = vsub.f32 0.0, %v995_v6  ;;  %v1419_v59 = vmul.f32 %v5857_v0, %v1355_v56  ;;  %v4868_v39 = vmul.f32 0.70710677, %v646_v60 }
 0x250   : > { %v4870_v13 = vpop.eup %3412  ;;  %v2374_v40 = vmul.f32 %v2310_v26, %v5864_v36  ;;  %v1736_v51 = vadd.f32 0.2548296, %v1672_v57  ;;  %v4873_v44 = vmul.f32 0.5, %v642_v19  ;;  %vm867_vm15 = vcmp.ge.f32.partialorder %v803_v58, 0.0 }
 0x251   : > { %v2249_v50 = vmul.f32 %v2185_v2, %v5866_v7  ;;  %v1059_v1 = vmul.f32 0.3275911, %v995_v6  ;;  %v1483_v38 = vadd.f32 1.4214138, %v1419_v59  ;;  %v996_v25 = vand.u32 2147483647, %v4868_v39 }
 0x252   : > { %5865 = vst [vmem:[#allocation40_spill] sm:$0xff] %v4873_v44  ;;  %2594 = vmatmul.mubr.f32.gmra.mrb[10].mxu1 %v2374_v40  ;;  %3420 = vrcp.f32 %v1122_v18  ;;  %v2064_v14 = vmul.f32 1.442695, %v1954_v31  ;;  %v1800_v56 = vmul.f32 %v5850_v42, %v1736_v51  ;;  %v1290_v24 = vmul.f32 1.0614054, %v5867_v27  ;;  %v5870_v2 = vld [vmem:[#allocation81_spill] sm:$0xff] }
 0x253   : > { %v4879_v17 = vpop.eup %3414  ;;  %v2313_v26 = vadd.f32 1.0, %v2249_v50  ;;  %v4882_v19 = vsel %vm867_vm15, 1.0, %v5671_v8  ;;  %v1955_v58 = vmul.f32 %v1891_v62, %v995_v6  ;;  %v1547_v57 = vmul.f32 %v5857_v0, %v1483_v38  ;;  %v5871_v40 = vld [vmem:[#allocation61_spill] sm:$0xff] }
 0x254   : > { %5868 = vst [vmem:[#allocation80_spill] sm:$0xff] %v4879_v17  ;;  %5869 = vst [vmem:[#allocation56_spill] sm:$0xff] %v4882_v19  ;;  %v2120_v59 = vmul.f32 %v5870_v2, %v1800_v56  ;;  %v1354_v36 = vadd.f32 -1.4531521, %v1290_v24  ;;  %v648_v18 = vadd.f32 %v4530_v55, %v4020_v10  ;;  %v1293_v31 = vmul.f32 1.0614054, %v4414_v45 }
 0x255   : > { %v4889_v42 = vpop.eup %3416  ;;  %v2377_v51 = vmul.f32 %v2313_v26, %v5871_v40  ;;  %v1123_v7 = vadd.f32 1.0, %v1059_v1  ;;  %v1611_v50 = vadd.f32 -0.28449672, %v1547_v57  ;;  %v1892_v44 = vsub.f32 0.0, %v996_v25  ;;  %v5874_v19 = vld [vmem:[#allocation58_spill] sm:$0xff] }
 0x256   : > { %v4892_v17 = vpop.eup %3418  ;;  %3422 = vpow2.f32 %v2064_v14  ;;  %v2184_v6 = vsub.f32 1.0, %v2120_v59  ;;  %v1418_v62 = vmul.f32 %v5867_v27, %v1354_v36  ;;  %v4895_v38 = vmul.f32 0.70710677, %v648_v18 }
 0x257   : > { %5872 = vst [vmem:[#allocation54_spill] sm:$0xff] %v4892_v17  ;;  %2598 = vmatprep.mubr.f32.mxu1 %v2377_v51  ;;  %v2066_v24 = vmul.f32 1.442695, %v1955_v58  ;;  %v1675_v55 = vmul.f32 %v5857_v0, %v1611_v50  ;;  %v4898_v56 = vmul.f32 0.5, %v646_v60  ;;  %v1357_v2 = vadd.f32 -1.4531521, %v1293_v31 }
 0x258   : > { %v2248_v26 = vmul.f32 %v2184_v6, %v5874_v19  ;;  %v1060_v1 = vmul.f32 0.3275911, %v996_v25  ;;  %v1482_v57 = vadd.f32 1.4214138, %v1418_v62  ;;  %v997_v40 = vand.u32 2147483647, %v4895_v38 }
 0x259   : > { %5873 = vst [vmem:[#allocation76_spill] sm:$0xff] %v4898_v56  ;;  %3424 = vrcp.f32 %v1123_v7  ;;  %v1739_v14 = vadd.f32 0.2548296, %v1675_v55  ;;  %v1956_v59 = vmul.f32 %v1892_v44, %v996_v25  ;;  %v1421_v36 = vmul.f32 %v4414_v45, %v1357_v2  ;;  %v5875_v7 = vld [vmem:[#allocation55_spill] sm:$0xff]  ;;  %v5876_v55 = vld [vmem:[#allocation92_spill] sm:$0xff] }
 0x25a   : > { %v2312_v17 = vadd.f32 1.0, %v2248_v26  ;;  %vm868_vm0 = vcmp.ge.f32.partialorder %v4868_v39, 0.0  ;;  %v1546_v58 = vmul.f32 %v5867_v27, %v1482_v57  ;;  %v1893_v51 = vsub.f32 0.0, %v997_v40  ;;  %v5879_v39 = vld [vmem:[#allocation75_spill] sm:$0xff] }
 0x25b   : > { %v1803_v60 = vmul.f32 %v5857_v0, %v1739_v14  ;;  %v1485_v31 = vadd.f32 1.4214138, %v1421_v36  ;;  %v652_v19 = vadd.f32 %v4544_v20, %v4018_v9  ;;  %v1292_v50 = vmul.f32 1.0614054, %v4411_v49 }
 0x25c   : > { %v4909_v6 = vpop.eup %3420  ;;  %v2376_v44 = vmul.f32 %v2312_v17, %v5875_v7  ;;  %3426 = vpow2.f32 %v2066_v24  ;;  %v1124_v25 = vadd.f32 1.0, %v1060_v1  ;;  %v1610_v62 = vadd.f32 -0.28449672, %v1546_v58 }
 0x25d   : > { %v2123_v2 = vmul.f32 %v5876_v55, %v1803_v60  ;;  %v2068_v26 = vmul.f32 1.442695, %v1956_v59  ;;  %v1549_v57 = vmul.f32 %v4414_v45, %v1485_v31  ;;  %v4914_v56 = vmul.f32 0.70710677, %v652_v19 }
 0x25e   : > { %2599 = vmatmul.mubr.f32.gmra.mrb[12].mxu1 %v2376_v44  ;;  %v4919_v20 = vsel %vm868_vm0, 1.0, %v5671_v8  ;;  %v1674_v0 = vmul.f32 %v5867_v27, %v1610_v62  ;;  %v1957_v14 = vmul.f32 %v1893_v51, %v997_v40  ;;  %v1356_v17 = vadd.f32 -1.4531521, %v1292_v50 }
 0x25f   : > { %5877 = vst [vmem:[#allocation90_spill] sm:$0xff] %v4919_v20  ;;  %v2187_v24 = vsub.f32 1.0, %v2123_v2  ;;  %v4922_v1 = vmul.f32 0.5, %v648_v18  ;;  %v1061_v36 = vmul.f32 0.3275911, %v997_v40  ;;  %3428 = vrcp.f32 %v1124_v25 }
 0x260   : > { %v1613_v58 = vadd.f32 -0.28449672, %v1549_v57  ;;  %v4924_v59 = vpop.eup %3422  ;;  %v1738_v60 = vadd.f32 0.2548296, %v1674_v0  ;;  %v998_v31 = vand.u32 2147483647, %v4914_v56  ;;  %v1420_v7 = vmul.f32 %v4411_v49, %v1356_v17 }
 0x261   : > { %5878 = vst [vmem:[#allocation52_spill] sm:$0xff] %v4922_v1  ;;  %v2251_v44 = vmul.f32 %v2187_v24, %v5879_v39  ;;  %3430 = vpow2.f32 %v2068_v26  ;;  %vm869_vm1 = vcmp.ge.f32.partialorder %v4895_v38, 0.0  ;;  %v2070_v50 = vmul.f32 1.442695, %v1957_v14  ;;  %v5880_v26 = vld [vmem:[#allocation88_spill] sm:$0xff]  ;;  %v5881_v14 = vld [vmem:[#allocation73_spill] sm:$0xff] }
 0x262   : > { %v1677_v51 = vmul.f32 %v4414_v45, %v1613_v58  ;;  %v1802_v18 = vmul.f32 %v5867_v27, %v1738_v60  ;;  %v1484_v40 = vadd.f32 1.4214138, %v1420_v7  ;;  %v4934_v62 = vadd.f32 %v4573_v43, %v4020_v10  ;;  %v5884_v38 = vld [vmem:[#allocation70_spill] sm:$0xff] }
 0x263   : > { %v4936_v25 = vpop.eup %3424  ;;  %v2315_v55 = vadd.f32 1.0, %v2251_v44  ;;  %v1125_v2 = vadd.f32 1.0, %v1061_v36  ;;  %v1295_v0 = vmul.f32 1.0614054, %v4471_v34  ;;  %v1062_v24 = vmul.f32 0.3275911, %v998_v31 }
 0x264   : > { %v1741_v57 = vadd.f32 0.2548296, %v1677_v51  ;;  %v2122_v17 = vmul.f32 %v5880_v26, %v1802_v18  ;;  %v1548_v58 = vmul.f32 %v4411_v49, %v1484_v40  ;;  %v807_v27 = vmul.f32 0.70710677, %v4934_v62 }
 0x265   : > { %v2379_v60 = vmul.f32 %v2315_v55, %v5881_v14  ;;  %v4946_v43 = vsel %vm869_vm1, 1.0, %v5671_v8  ;;  %v1894_v36 = vsub.f32 0.0, %v998_v31  ;;  %v4951_v51 = vmul.f32 0.5, %v652_v19 }
 0x266   : > { %5882 = vst [vmem:[#allocation85_spill] sm:$0xff] %v4946_v43  ;;  %v1805_v7 = vmul.f32 %v4414_v45, %v1741_v57  ;;  %v4949_v39 = vpop.eup %3426  ;;  %v2186_v44 = vsub.f32 1.0, %v2122_v17  ;;  %v1612_v18 = vadd.f32 -0.28449672, %v1548_v58  ;;  %v999_v26 = vand.u32 2147483647, %v807_v27 }
 0x267   : > { %5883 = vst [vmem:[#allocation50_spill] sm:$0xff] %v4951_v51  ;;  %2603 = vmatprep.mubr.f32.mxu1 %v2379_v60  ;;  %3432 = vrcp.f32 %v1125_v2  ;;  %vm870_vm2 = vcmp.ge.f32.partialorder %v4914_v56, 0.0  ;;  %v1359_v55 = vadd.f32 -1.4531521, %v1295_v0  ;;  %v1126_v1 = vadd.f32 1.0, %v1062_v24 }
 0x268   : > { %v2125_v40 = vmul.f32 %v4429_v5, %v1805_v7  ;;  %v2250_v14 = vmul.f32 %v2186_v44, %v5884_v38  ;;  %3434 = vpow2.f32 %v2070_v50  ;;  %v1676_v45 = vmul.f32 %v4411_v49, %v1612_v18  ;;  %v5886_v50 = vld [vmem:[#allocation83_spill] sm:$0xff] }
 0x269   : > { %v1958_v20 = vmul.f32 %v1894_v36, %v998_v31  ;;  %v1423_v19 = vmul.f32 %v4471_v34, %v1359_v55  ;;  %v658_v17 = vadd.f32 %v4600_v29, %v4018_v9  ;;  %v4960_v58 = vpop.eup %3428  ;;  %v1895_v60 = vsub.f32 0.0, %v999_v26  ;;  %v5887_v31 = vld [vmem:[#allocation66_spill] sm:$0xff] }
 0x26a   : > { %v2189_v57 = vsub.f32 1.0, %v2125_v40  ;;  %v2314_v2 = vadd.f32 1.0, %v2250_v14  ;;  %v1740_v5 = vadd.f32 0.2548296, %v1676_v45  ;;  %v1294_v0 = vmul.f32 1.0614054, %v4446_v37 }
 0x26b   : > { %v4963_v7 = vpop.eup %3430  ;;  %v1063_v44 = vmul.f32 0.3275911, %v999_v26  ;;  %v1487_v18 = vadd.f32 1.4214138, %v1423_v19  ;;  %v808_v40 = vmul.f32 0.70710677, %v658_v17  ;;  %3436 = vrcp.f32 %v1126_v1 }
 0x26c   : > { %5885 = vst [vmem:[#allocation69_spill] sm:$0xff] %v4963_v7  ;;  %v2253_v24 = vmul.f32 %v2189_v57, %v5886_v50  ;;  %v2378_v36 = vmul.f32 %v2314_v2, %v5887_v31  ;;  %v4970_v29 = vsel %vm870_vm2, 1.0, %v5671_v8  ;;  %v1804_v55 = vmul.f32 %v4411_v49, %v1740_v5  ;;  %v5889_v2 = vld [vmem:[#allocation79_spill] sm:$0xff] }
 0x26d   : > { %5888 = vst [vmem:[#allocation86_spill] sm:$0xff] %v4970_v29  ;;  %v2072_v14 = vmul.f32 1.442695, %v1958_v20  ;;  %v1551_v45 = vmul.f32 %v4471_v34, %v1487_v18  ;;  %v1000_v51 = vand.u32 2147483647, %v808_v40  ;;  %vm871_vm3 = vcmp.ge.f32.partialorder %v807_v27, 0.0 }
 0x26e   : > { %v2317_v38 = vadd.f32 1.0, %v2253_v24  ;;  %2604 = vmatmul.mubr.f32.gmra.mrb[14].mxu1 %v2378_v36  ;;  %v2124_v57 = vmul.f32 %v4419_v16, %v1804_v55  ;;  %v1959_v19 = vmul.f32 %v1895_v60, %v999_v26  ;;  %v1358_v50 = vadd.f32 -1.4531521, %v1294_v0  ;;  %v5890_v0 = vld [vmem:[#allocation82_spill] sm:$0xff] }
 0x26f   : > { %v1127_v43 = vadd.f32 1.0, %v1063_v44  ;;  %v1615_v56 = vadd.f32 -0.28449672, %v1551_v45  ;;  %v1896_v7 = vsub.f32 0.0, %v1000_v51  ;;  %v660_v49 = vadd.f32 %v4623_v32, %v4020_v10 }
 0x270   : > { %v2381_v31 = vmul.f32 %v2317_v38, %v5889_v2  ;;  %v2188_v29 = vsub.f32 1.0, %v2124_v57  ;;  %v1422_v1 = vmul.f32 %v4446_v37, %v1358_v50  ;;  %v1297_v20 = vmul.f32 1.0614054, %v4506_v30 }
 0x271   : > { %v4980_v5 = vpop.eup %3432  ;;  %3438 = vpow2.f32 %v2072_v14  ;;  %v4983_v16 = vmul.f32 0.5, %v4934_v62  ;;  %v4986_v27 = vsel %vm871_vm3, 1.0, %v5671_v8  ;;  %v1679_v26 = vmul.f32 %v4471_v34, %v1615_v56 }
 0x272   : > { %2608 = vmatprep.mubr.f32.mxu1 %v2381_v31  ;;  %v4989_v60 = vpop.eup %3434  ;;  %v2252_v24 = vmul.f32 %v2188_v29, %v5890_v0  ;;  %v2074_v44 = vmul.f32 1.442695, %v1959_v19  ;;  %v1486_v32 = vadd.f32 1.4214138, %v1422_v1  ;;  %v809_v18 = vmul.f32 0.70710677, %v660_v49 }
 0x273   : > { %v1743_v36 = vadd.f32 0.2548296, %v1679_v26  ;;  %v1064_v55 = vmul.f32 0.3275911, %v1000_v51  ;;  %v1361_v38 = vadd.f32 -1.4531521, %v1297_v20  ;;  %v664_v14 = vadd.f32 %v4640_v4, %v4018_v9 }
 0x274   : > { %v2316_v62 = vadd.f32 1.0, %v2252_v24  ;;  %3440 = vrcp.f32 %v1127_v43  ;;  %v1960_v45 = vmul.f32 %v1896_v7, %v1000_v51  ;;  %v1550_v57 = vmul.f32 %v4446_v37, %v1486_v32  ;;  %v5891_v31 = vld [vmem:[#allocation77_spill] sm:$0xff] }
 0x275   : > { %v1807_v50 = vmul.f32 %v4471_v34, %v1743_v36  ;;  %vm872_vm4 = vcmp.ge.f32.partialorder %v808_v40, 0.0  ;;  %v1001_v2 = vand.u32 2147483647, %v809_v18  ;;  %v1425_v29 = vmul.f32 %v4506_v30, %v1361_v38  ;;  %v4997_v19 = vpop.eup %3436 }
 0x276   : > { %v2380_v56 = vmul.f32 %v2316_v62, %v5891_v31  ;;  %3442 = vpow2.f32 %v2074_v44  ;;  %v5000_v1 = vmul.f32 0.5, %v658_v17  ;;  %v1614_v20 = vadd.f32 -0.28449672, %v1550_v57  ;;  %v5895_v62 = vld [vmem:[#allocation91_spill] sm:$0xff] }
 0x277   : > { %v2127_v4 = vmul.f32 %v4480_v3, %v1807_v50  ;;  %v1128_v43 = vadd.f32 1.0, %v1064_v55  ;;  %v1489_v51 = vadd.f32 1.4214138, %v1425_v29  ;;  %v810_v7 = vmul.f32 0.70710677, %v664_v14 }
 0x278   : > { %5892 = vst [vmem:[#allocation81_spill] sm:$0xff] %v5000_v1  ;;  %2609 = vmatmul.mubr.f32.gmra.mrb[16].mxu1 %v2380_v56  ;;  %v5004_v34 = vsel %vm872_vm4, 1.0, %v5671_v8  ;;  %v2076_v40 = vmul.f32 1.442695, %v1960_v45  ;;  %v1678_v26 = vmul.f32 %v4446_v37, %v1614_v20  ;;  %v1296_v0 = vmul.f32 1.0614054, %v4484_v46 }
 0x279   : > { %5893 = vst [vmem:[#allocation61_spill] sm:$0xff] %v5004_v34  ;;  %v2191_v24 = vsub.f32 1.0, %v2127_v4  ;;  %v1065_v32 = vmul.f32 0.3275911, %v1001_v2  ;;  %v1553_v17 = vmul.f32 %v4506_v30, %v1489_v51  ;;  %v1002_v44 = vand.u32 2147483647, %v810_v7 }
 0x27a   : > { %v1742_v36 = vadd.f32 0.2548296, %v1678_v26  ;;  %v5009_v38 = vmul.f32 0.5, %v660_v49  ;;  %vm873_vm5 = vcmp.ge.f32.partialorder %v809_v18, 0.0  ;;  %v1897_v3 = vsub.f32 0.0, %v1001_v2 }
 0x27b   : > { %v5011_v55 = vpop.eup %3438  ;;  %v2255_v57 = vmul.f32 %v2191_v24, %v5895_v62  ;;  %3444 = vrcp.f32 %v1128_v43  ;;  %v1617_v45 = vadd.f32 -0.28449672, %v1553_v17  ;;  %v1898_v50 = vsub.f32 0.0, %v1002_v44 }
 0x27c   : > { %5894 = vst [vmem:[#allocation58_spill] sm:$0xff] %v5009_v38  ;;  %3446 = vpow2.f32 %v2076_v40  ;;  %v1806_v29 = vmul.f32 %v4446_v37, %v1742_v36  ;;  %v1360_v31 = vadd.f32 -1.4531521, %v1296_v0  ;;  %v666_v56 = vadd.f32 %v4669_v52, %v4020_v10  ;;  %v5896_v37 = vld [vmem:[#allocation87_spill] sm:$0xff] }
 0x27d   : > { %v2319_v20 = vadd.f32 1.0, %v2255_v57  ;;  %v5018_v49 = vsel %vm873_vm5, 1.0, %v5671_v8  ;;  %v1129_v18 = vadd.f32 1.0, %v1065_v32  ;;  %v1681_v4 = vmul.f32 %v4506_v30, %v1617_v45 }
 0x27e   : > { %v5021_v51 = vpop.eup %3440  ;;  %v2126_v43 = vmul.f32 %v4458_v41, %v1806_v29  ;;  %v1961_v26 = vmul.f32 %v1897_v3, %v1001_v2  ;;  %v1424_v40 = vmul.f32 %v4484_v46, %v1360_v31  ;;  %v811_v24 = vmul.f32 0.70710677, %v666_v56  ;;  %v5898_v29 = vld [vmem:[#allocation89_spill] sm:$0xff] }
 0x27f   : > { %v2383_v0 = vmul.f32 %v2319_v20, %v5896_v37  ;;  %v1745_v17 = vadd.f32 0.2548296, %v1681_v4  ;;  %vm874_vm6 = vcmp.ge.f32.partialorder %v810_v7, 0.0  ;;  %v1962_v52 = vmul.f32 %v1898_v50, %v1002_v44 }
 0x280   : > { %v5026_v36 = vpop.eup %3442  ;;  %v2190_v62 = vsub.f32 1.0, %v2126_v43  ;;  %v5028_v57 = vmul.f32 0.5, %v664_v14  ;;  %v1066_v32 = vmul.f32 0.3275911, %v1002_v44  ;;  %v1488_v45 = vadd.f32 1.4214138, %v1424_v40 }
 0x281   : > { %2613 = vmatprep.mubr.f32.mxu1 %v2383_v0  ;;  %3448 = vrcp.f32 %v1129_v18  ;;  %v1809_v41 = vmul.f32 %v4506_v30, %v1745_v17  ;;  %v1003_v2 = vand.u32 2147483647, %v811_v24  ;;  %v1299_v3 = vmul.f32 1.0614054, %v4557_v61 }
 0x282   : > { %5897 = vst [vmem:[#allocation55_spill] sm:$0xff] %v5028_v57  ;;  %v2254_v31 = vmul.f32 %v2190_v62, %v5898_v29  ;;  %v2078_v20 = vmul.f32 1.442695, %v1961_v26  ;;  %v5034_v7 = vsel %vm874_vm6, 1.0, %v5671_v8  ;;  %v1552_v50 = vmul.f32 %v4484_v46, %v1488_v45 }
 0x283   : > { %5899 = vst [vmem:[#allocation92_spill] sm:$0xff] %v5034_v7  ;;  %v2129_v14 = vmul.f32 %v4525_v54, %v1809_v41  ;;  %v2080_v4 = vmul.f32 1.442695, %v1962_v52  ;;  %v1363_v44 = vadd.f32 -1.4531521, %v1299_v3  ;;  %v670_v18 = vadd.f32 %v4690_v47, %v4018_v9  ;;  %v5901_v54 = vld [vmem:[#allocation84_spill] sm:$0xff] }
 0x284   : > { %v2318_v43 = vadd.f32 1.0, %v2254_v31  ;;  %v1130_v30 = vadd.f32 1.0, %v1066_v32  ;;  %v1616_v40 = vadd.f32 -0.28449672, %v1552_v50  ;;  %v1298_v37 = vmul.f32 1.0614054, %v4532_v21 }
 0x285   : > { %v5041_v0 = vpop.eup %3444  ;;  %v2193_v26 = vsub.f32 1.0, %v2129_v14  ;;  %v1899_v17 = vsub.f32 0.0, %v1003_v2  ;;  %v1427_v62 = vmul.f32 %v4557_v61, %v1363_v44  ;;  %v5044_v29 = vmul.f32 0.70710677, %v670_v18  ;;  %v5903_v32 = vld [vmem:[#allocation96_spill] sm:$0xff] }
 0x286   : > { %v5046_v45 = vpop.eup %3446  ;;  %v2382_v52 = vmul.f32 %v2318_v43, %v5901_v54  ;;  %3450 = vpow2.f32 %v2078_v20  ;;  %v1680_v47 = vmul.f32 %v4484_v46, %v1616_v40  ;;  %v5050_v41 = vmul.f32 0.5, %v666_v56  ;;  %v5904_v40 = vld [vmem:[#allocation33_spill] sm:$0xff] }
 0x287   : > { %5900 = vst [vmem:[#allocation75_spill] sm:$0xff] %v5046_v45  ;;  %v2257_v3 = vmul.f32 %v2193_v26, %v5903_v32  ;;  %v1067_v31 = vmul.f32 0.3275911, %v1003_v2  ;;  %v1491_v50 = vadd.f32 1.4214138, %v1427_v62  ;;  %3452 = vrcp.f32 %v1130_v30  ;;  %v5905_v62 = vld [vmem:[#allocation14_spill] sm:$0xff] }
 0x288   : > { %5902 = vst [vmem:[#allocation88_spill] sm:$0xff] %v5050_v41  ;;  %v1004_v14 = vand.u32 2147483647, %v5044_v29  ;;  %2614 = vmatmul.mubr.f32.gmra.mrb[18].mxu1 %v2382_v52  ;;  %v1744_v44 = vadd.f32 0.2548296, %v1680_v47  ;;  %vm875_vm7 = vcmp.ge.f32.partialorder %v811_v24, 0.0  ;;  %3454 = vpow2.f32 %v2080_v4 }
 0x289   : > { %v1362_v57 = vadd.f32 -1.4531521, %v1298_v37  ;;  %v2321_v7 = vadd.f32 1.0, %v2257_v3  ;;  %v1963_v1 = vmul.f32 %v1899_v17, %v1003_v2  ;;  %v1555_v20 = vmul.f32 %v4557_v61, %v1491_v50  ;;  %v5906_v30 = vld [vmem:[#allocation95_spill] sm:$0xff]  ;;  %v5907_v4 = vld [vmem:[#allocation98_spill] sm:$0xff] }
 0x28a   : > { %v1808_v43 = vmul.f32 %v4484_v46, %v1744_v44  ;;  %v672_v26 = vadd.f32 %v5904_v40, %v4020_v10  ;;  %v1301_v54 = vmul.f32 1.0614054, %v5905_v62  ;;  %v1131_v47 = vadd.f32 1.0, %v1067_v31 }
 0x28b   : > { %v1426_v56 = vmul.f32 %v4532_v21, %v1362_v57  ;;  %v5060_v32 = vpop.eup %3448  ;;  %v2385_v52 = vmul.f32 %v2321_v7, %v5906_v30  ;;  %v1619_v37 = vadd.f32 -0.28449672, %v1555_v20  ;;  %v1900_v3 = vsub.f32 0.0, %v1004_v14 }
 0x28c   : > { %v2128_v2 = vmul.f32 %v5907_v4, %v1808_v43  ;;  %v5066_v17 = vsel %vm875_vm7, 1.0, %v5671_v8  ;;  %v5068_v57 = vmul.f32 0.70710677, %v672_v26  ;;  %v2082_v50 = vmul.f32 1.442695, %v1963_v1 }
 0x28d   : > { %5908 = vst [vmem:[#allocation73_spill] sm:$0xff] %v5066_v17  ;;  %v1490_v46 = vadd.f32 1.4214138, %v1426_v56  ;;  %2618 = vmatprep.mubr.f32.mxu1 %v2385_v52  ;;  %v1683_v44 = vmul.f32 %v4557_v61, %v1619_v37  ;;  %v5071_v40 = vmul.f32 0.5, %v670_v18  ;;  %v1365_v41 = vadd.f32 -1.4531521, %v1301_v54 }
 0x28e   : > { %v2192_v7 = vsub.f32 1.0, %v2128_v2  ;;  %v1068_v31 = vmul.f32 0.3275911, %v1004_v14  ;;  %v1005_v43 = vand.u32 2147483647, %v5068_v57  ;;  %3456 = vrcp.f32 %v1131_v47  ;;  %v5910_v52 = vld [vmem:[#allocation94_spill] sm:$0xff] }
 0x28f   : > { %5909 = vst [vmem:[#allocation70_spill] sm:$0xff] %v5071_v40  ;;  %v1554_v20 = vmul.f32 %v4532_v21, %v1490_v46  ;;  %v1747_v24 = vadd.f32 0.2548296, %v1683_v44  ;;  %v1964_v30 = vmul.f32 %v1900_v3, %v1004_v14  ;;  %v1429_v56 = vmul.f32 %v5905_v62, %v1365_v41  ;;  %v5911_v46 = vld [vmem:[#allocation68_spill] sm:$0xff]  ;;  %v5912_v44 = vld [vmem:[#allocation26_spill] sm:$0xff] }
 0x290   : > { %v5076_v4 = vpop.eup %3450  ;;  %v2256_v1 = vmul.f32 %v2192_v7, %v5910_v52  ;;  %vm876_vm8 = vcmp.ge.f32.partialorder %v5044_v29, 0.0  ;;  %v1901_v37 = vsub.f32 0.0, %v1005_v43  ;;  %3458 = vpow2.f32 %v2082_v50  ;;  %v5914_v52 = vld [vmem:[#allocation19_spill] sm:$0xff] }
 0x291   : > { %v1618_v18 = vadd.f32 -0.28449672, %v1554_v20  ;;  %v1811_v54 = vmul.f32 %v4557_v61, %v1747_v24  ;;  %v1493_v2 = vadd.f32 1.4214138, %v1429_v56  ;;  %v676_v40 = vadd.f32 %v5911_v46, %v4018_v9  ;;  %v5083_v47 = vpop.eup %3452  ;;  %v5915_v24 = vld [vmem:[#allocation93_spill] sm:$0xff] }
 0x292   : > { %v2320_v14 = vadd.f32 1.0, %v2256_v1  ;;  %v1132_v3 = vadd.f32 1.0, %v1068_v31  ;;  %v1300_v17 = vmul.f32 1.0614054, %v5912_v44  ;;  %v5087_v7 = vpop.eup %3454  ;;  %v2084_v34 = vmul.f32 1.442695, %v1964_v30 }
 0x293   : > { %v1682_v41 = vmul.f32 %v4532_v21, %v1618_v18  ;;  %5913 = vst [vmem:[#allocation83_spill] sm:$0xff] %v5087_v7  ;;  %v2131_v20 = vmul.f32 %v5914_v52, %v1811_v54  ;;  %v1557_v50 = vmul.f32 %v5905_v62, %v1493_v2  ;;  %v5091_v61 = vmul.f32 0.70710677, %v676_v40 }
 0x294   : > { %v2384_v56 = vmul.f32 %v2320_v14, %v5915_v24  ;;  %v5097_v1 = vsel %vm876_vm8, 1.0, %v5671_v8  ;;  %v1965_v18 = vmul.f32 %v1901_v37, %v1005_v43  ;;  %v5099_v45 = vmul.f32 0.5, %v672_v26  ;;  %v5918_v14 = vld [vmem:[#allocation101_spill] sm:$0xff]  ;;  %v5919_v37 = vld [vmem:[#allocation15_spill] sm:$0xff]  ;;  %v5920_v24 = vld [vmem:[#allocation44_spill] sm:$0xff] }
 0x295   : > { %5916 = vst [vmem:[#allocation66_spill] sm:$0xff] %v5097_v1  ;;  %v1746_v31 = vadd.f32 0.2548296, %v1682_v41  ;;  %v2195_v46 = vsub.f32 1.0, %v2131_v20  ;;  %v1069_v7 = vmul.f32 0.3275911, %v1005_v43  ;;  %3460 = vrcp.f32 %v1132_v3 }
 0x296   : > { %5917 = vst [vmem:[#allocation79_spill] sm:$0xff] %v5099_v45  ;;  %v1621_v38 = vadd.f32 -0.28449672, %v1557_v50  ;;  %2619 = vmatmul.mubr.f32.gmra.mrb[20].mxu1 %v2384_v56  ;;  %v1006_v54 = vand.u32 2147483647, %v5091_v61  ;;  %3462 = vpow2.f32 %v2084_v34  ;;  %vm877_vm9 = vcmp.ge.f32.partialorder %v5068_v57, 0.0 }
 0x297   : > { %v1810_v30 = vmul.f32 %v4532_v21, %v1746_v31  ;;  %v1364_v2 = vadd.f32 -1.4531521, %v1300_v17  ;;  %v2259_v52 = vmul.f32 %v2195_v46, %v5918_v14  ;;  %v2086_v26 = vmul.f32 1.442695, %v1965_v18  ;;  %v5921_v18 = vld [vmem:[#allocation100_spill] sm:$0xff]  ;;  %v5925_v45 = vld [vmem:[#allocation35_spill] sm:$0xff] }
 0x298   : > { %v1685_v29 = vmul.f32 %v5905_v62, %v1621_v38  ;;  %v678_v3 = vadd.f32 %v4759_v22, %v4020_v10  ;;  %v5110_v20 = vpop.eup %3456  ;;  %v1133_v50 = vadd.f32 1.0, %v1069_v7  ;;  %v1303_v56 = vmul.f32 1.0614054, %v5920_v24 }
 0x299   : > { %v2130_v41 = vmul.f32 %v5919_v37, %v1810_v30  ;;  %v1428_v43 = vmul.f32 %v5912_v44, %v1364_v2  ;;  %v2323_v21 = vadd.f32 1.0, %v2259_v52  ;;  %v1902_v31 = vsub.f32 0.0, %v1006_v54  ;;  %v5924_v52 = vld [vmem:[#allocation99_spill] sm:$0xff] }
 0x29a   : > { %v1749_v17 = vadd.f32 0.2548296, %v1685_v29  ;;  %v5113_v14 = vmul.f32 0.70710677, %v678_v3  ;;  %v5115_v38 = vpop.eup %3458  ;;  %v5121_v22 = vsel %vm877_vm9, 1.0, %v5671_v8  ;;  %v5124_v7 = vmul.f32 0.5, %v676_v40 }
 0x29b   : > { %v2194_v34 = vsub.f32 1.0, %v2130_v41  ;;  %v1492_v46 = vadd.f32 1.4214138, %v1428_v43  ;;  %v2387_v30 = vmul.f32 %v2323_v21, %v5921_v18  ;;  %5922 = vst [vmem:[#allocation82_spill] sm:$0xff] %v5121_v22  ;;  %v1070_v37 = vmul.f32 0.3275911, %v1006_v54 }
 0x29c   : > { %v1813_v2 = vmul.f32 %v5905_v62, %v1749_v17  ;;  %5923 = vst [vmem:[#allocation77_spill] sm:$0xff] %v5124_v7  ;;  %v1007_v43 = vand.u32 2147483647, %v5113_v14  ;;  %3464 = vrcp.f32 %v1133_v50  ;;  %vm878_vm10 = vcmp.ge.f32.partialorder %v5091_v61, 0.0  ;;  %v5928_v50 = vld [vmem:[#allocation97_spill] sm:$0xff] }
 0x29d   : > { %v2258_v29 = vmul.f32 %v2194_v34, %v5924_v52  ;;  %v1556_v41 = vmul.f32 %v5912_v44, %v1492_v46  ;;  %2623 = vmatprep.mubr.f32.mxu1 %v2387_v30  ;;  %v1367_v57 = vadd.f32 -1.4531521, %v1303_v56  ;;  %3466 = vpow2.f32 %v2086_v26  ;;  %v5927_v46 = vld [vmem:[#allocation48_spill] sm:$0xff]  ;;  %v5934_v61 = vld [vmem:[#allocation13_spill] sm:$0xff] }
 0x29e   : > { %v2133_v21 = vmul.f32 %v5925_v45, %v1813_v2  ;;  %v1966_v1 = vmul.f32 %v1902_v31, %v1006_v54  ;;  %v5134_v34 = vadd.f32 %v4786_v53, %v4018_v9  ;;  %v1302_v52 = vmul.f32 1.0614054, %v5927_v46  ;;  %v5930_v54 = vld [vmem:[#allocation30_spill] sm:$0xff] }
 0x29f   : > { %v2322_v18 = vadd.f32 1.0, %v2258_v29  ;;  %v1620_v62 = vadd.f32 -0.28449672, %v1556_v41  ;;  %v1431_v17 = vmul.f32 %v5920_v24, %v1367_v57  ;;  %v5137_v30 = vpop.eup %3460  ;;  %v1134_v2 = vadd.f32 1.0, %v1070_v37 }
 0x2a0   : > { %v2197_v40 = vsub.f32 1.0, %v2133_v21  ;;  %5926 = vst [vmem:[#allocation91_spill] sm:$0xff] %v5134_v34  ;;  %v1071_v29 = vmul.f32 0.3275911, %v1007_v43  ;;  %v5141_v26 = vpop.eup %3462  ;;  %v1903_v41 = vsub.f32 0.0, %v1007_v43  ;;  %v5150_v53 = vsel %vm878_vm10, 1.0, %v5671_v8 }
 0x2a1   : > { %v2386_v45 = vmul.f32 %v2322_v18, %v5928_v50  ;;  %v1684_v56 = vmul.f32 %v5912_v44, %v1620_v62  ;;  %5929 = vst [vmem:[#allocation87_spill] sm:$0xff] %v5141_v26  ;;  %v1495_v21 = vadd.f32 1.4214138, %v1431_v17  ;;  %v5145_v57 = vmul.f32 0.70710677, %v5134_v34  ;;  %5932 = vst [vmem:[#allocation84_spill] sm:$0xff] %v5150_v53 }
 0x2a2   : > { %v2261_v31 = vmul.f32 %v2197_v40, %v5930_v54  ;;  %v5152_v37 = vmul.f32 0.5, %v678_v3  ;;  %v1366_v62 = vadd.f32 -1.4531521, %v1302_v52  ;;  %v2088_v7 = vmul.f32 1.442695, %v1966_v1 }
 0x2a3   : > { %5931 = vst [vmem:[#allocation89_spill] sm:$0xff] %v5145_v57  ;;  %2624 = vmatmul.mubr.f32.gmra.mrb[22].mxu1 %v2386_v45  ;;  %v1748_v18 = vadd.f32 0.2548296, %v1684_v56  ;;  %v1559_v22 = vmul.f32 %v5920_v24, %v1495_v21  ;;  %v1008_v40 = vand.u32 2147483647, %v5145_v57  ;;  %3468 = vrcp.f32 %v1134_v2  ;;  %v5936_v21 = vld [vmem:[#allocation22_spill] sm:$0xff] }
 0x2a4   : > { %5933 = vst [vmem:[#allocation96_spill] sm:$0xff] %v5152_v37  ;;  %v2325_v50 = vadd.f32 1.0, %v2261_v31  ;;  %vm879_vm11 = vcmp.ge.f32.partialorder %v5113_v14, 0.0  ;;  %v1430_v45 = vmul.f32 %v5927_v46, %v1366_v62  ;;  %v1135_v34 = vadd.f32 1.0, %v1071_v29  ;;  %v5935_v37 = vld [vmem:[#allocation42_spill] sm:$0xff] }
 0x2a5   : > { %v1812_v17 = vmul.f32 %v5912_v44, %v1748_v18  ;;  %v1967_v56 = vmul.f32 %v1903_v41, %v1007_v43  ;;  %v1623_v3 = vadd.f32 -0.28449672, %v1559_v22  ;;  %v684_v1 = vadd.f32 %v4808_v15, %v4020_v10 }
 0x2a6   : > { %v2389_v54 = vmul.f32 %v2325_v50, %v5934_v61  ;;  %v1494_v31 = vadd.f32 1.4214138, %v1430_v45  ;;  %v1305_v57 = vmul.f32 1.0614054, %v5936_v21  ;;  %v5164_v2 = vpop.eup %3464  ;;  %3470 = vpow2.f32 %v2088_v7  ;;  %v5939_v45 = vld [vmem:[#allocation29_spill] sm:$0xff] }
 0x2a7   : > { %v2132_v52 = vmul.f32 %v5935_v37, %v1812_v17  ;;  %v1687_v44 = vmul.f32 %v5920_v24, %v1623_v3  ;;  %v1072_v18 = vmul.f32 0.3275911, %v1008_v40  ;;  %v1904_v62 = vsub.f32 0.0, %v1008_v40  ;;  %v5167_v50 = vpop.eup %3466 }
 0x2a8   : > { %2628 = vmatprep.mubr.f32.mxu1 %v2389_v54  ;;  %v5172_v22 = vsel %vm879_vm11, 1.0, %v5671_v8  ;;  %v1558_v15 = vmul.f32 %v5927_v46, %v1494_v31  ;;  %v817_v29 = vmul.f32 0.70710677, %v684_v1  ;;  %v2090_v41 = vmul.f32 1.442695, %v1967_v56 }
 0x2a9   : > { %v2196_v43 = vsub.f32 1.0, %v2132_v52  ;;  %5937 = vst [vmem:[#allocation33_spill] sm:$0xff] %v5172_v22  ;;  %v1751_v37 = vadd.f32 0.2548296, %v1687_v44  ;;  %v1369_v17 = vadd.f32 -1.4531521, %v1305_v57  ;;  %v5177_v7 = vadd.f32 %v4831_v28, %v4018_v9 }
 0x2aa   : > { %3472 = vrcp.f32 %v1135_v34  ;;  %v1622_v54 = vadd.f32 -0.28449672, %v1558_v15  ;;  %v1009_v3 = vand.u32 2147483647, %v817_v29  ;;  %v1136_v14 = vadd.f32 1.0, %v1072_v18  ;;  %v5941_v28 = vld [vmem:[#allocation62_spill] sm:$0xff] }
 0x2ab   : > { %5938 = vst [vmem:[#allocation14_spill] sm:$0xff] %v5177_v7  ;;  %v2260_v61 = vmul.f32 %v2196_v43, %v5939_v45  ;;  %v1815_v52 = vmul.f32 %v5920_v24, %v1751_v37  ;;  %v1968_v53 = vmul.f32 %v1904_v62, %v1008_v40  ;;  %v1433_v22 = vmul.f32 %v5936_v21, %v1369_v17  ;;  %v5182_v31 = vpop.f32.mrb[64].mxu0  ;;  %v5943_v40 = vld [vmem:[#allocation102_spill] sm:$0xff] }
 0x2ac   : > { %5940 = vst [vmem:[#allocation95_spill] sm:$0xff] %v5182_v31  ;;  %v1686_v57 = vmul.f32 %v5927_v46, %v1622_v54  ;;  %v1073_v44 = vmul.f32 0.3275911, %v1009_v3  ;;  %v1905_v26 = vsub.f32 0.0, %v1009_v3  ;;  %v2552_v9 = vpop.f32.mrb[65].mxu0  ;;  %3474 = vpow2.f32 %v2090_v41  ;;  %v5962_v31 = vld [vmem:[#allocation67_spill] sm:$0xff] }
 0x2ad   : > { %v2324_v56 = vadd.f32 1.0, %v2260_v61  ;;  %v2135_v43 = vmul.f32 %v5941_v28, %v1815_v52  ;;  %v1497_v34 = vadd.f32 1.4214138, %v1433_v22  ;;  %v5187_v15 = vmul.f32 0.70710677, %v5177_v7  ;;  %v5189_v24 = vpop.eup %3468  ;;  %v5945_v28 = vld [vmem:[#allocation37_spill] sm:$0xff] }
 0x2ae   : > { %v1750_v62 = vadd.f32 0.2548296, %v1686_v57  ;;  %v5192_v37 = vmul.f32 0.5, %v684_v1  ;;  %v1969_v17 = vmul.f32 %v1905_v26, %v1009_v3  ;;  %3476 = vrcp.f32 %v1136_v14  ;;  %v5946_v26 = vld [vmem:[#allocation46_spill] sm:$0xff] }
 0x2af   : > { %5942 = vst [vmem:[#allocation98_spill] sm:$0xff] %v5187_v15  ;;  %v2388_v18 = vmul.f32 %v2324_v56, %v5943_v40  ;;  %v2199_v45 = vsub.f32 1.0, %v2135_v43  ;;  %v1561_v61 = vmul.f32 %v5936_v21, %v1497_v34  ;;  %v1010_v41 = vand.u32 2147483647, %v5187_v15  ;;  %v5947_v43 = vld [vmem:[#allocation24_spill] sm:$0xff] }
 0x2b0   : > { %5944 = vst [vmem:[#allocation94_spill] sm:$0xff] %v5192_v37  ;;  %v2092_v54 = vmul.f32 1.442695, %v1968_v53  ;;  %v1814_v22 = vmul.f32 %v5927_v46, %v1750_v62  ;;  %vm881_vm12 = vcmp.ge.f32.partialorder %v817_v29, 0.0  ;;  %v1137_v52 = vadd.f32 1.0, %v1073_v44  ;;  %v5197_v9 = vpop.eup %3470  ;;  %v5954_v29 = vld [vmem:[#allocation64_spill] sm:$0xff] }
 0x2b1   : > { %2629 = vmatmul.mubr.f32.gmra.mrb[24].mxu1 %v2388_v18  ;;  %v2263_v56 = vmul.f32 %v2199_v45, %v5945_v28  ;;  %v1625_v57 = vadd.f32 -0.28449672, %v1561_v61  ;;  %v1074_v1 = vmul.f32 0.3275911, %v1010_v41  ;;  %v1906_v40 = vsub.f32 0.0, %v1010_v41  ;;  %v5957_v15 = vld [vmem:[#allocation16_spill] sm:$0xff] }
 0x2b2   : > { %v2134_v3 = vmul.f32 %v5946_v26, %v1814_v22  ;;  %v2094_v14 = vmul.f32 1.442695, %v1969_v17  ;;  %v1304_v34 = vmul.f32 1.0614054, %v5947_v43  ;;  %v5204_v18 = vadd.f32 %v4865_v23, %v4020_v10  ;;  %v5950_v17 = vld [vmem:[#allocation18_spill] sm:$0xff]  ;;  %v5952_v23 = vld [vmem:[#allocation17_spill] sm:$0xff] }
 0x2b3   : > { %v2327_v53 = vadd.f32 1.0, %v2263_v56  ;;  %v1689_v46 = vmul.f32 %v5936_v21, %v1625_v57  ;;  %v1138_v44 = vadd.f32 1.0, %v1074_v1  ;;  %v1970_v62 = vmul.f32 %v1906_v40, %v1010_v41 }
 0x2b4   : > { %5948 = vst [vmem:[#allocation68_spill] sm:$0xff] %v5204_v18  ;;  %v5207_v7 = vpop.eup %3472  ;;  %3478 = vpow2.f32 %v2092_v54  ;;  %v2198_v45 = vsub.f32 1.0, %v2134_v3  ;;  %v1368_v61 = vadd.f32 -1.4531521, %v1304_v34  ;;  %v5210_v28 = vmul.f32 0.70710677, %v5204_v18 }
 0x2b5   : > { %v2391_v22 = vmul.f32 %v2327_v53, %v5950_v17  ;;  %v5215_v26 = vsel %vm881_vm12, 1.0, %v5671_v8  ;;  %3480 = vrcp.f32 %v1137_v52  ;;  %v1753_v10 = vadd.f32 0.2548296, %v1689_v46 }
 0x2b6   : > { %5949 = vst [vmem:[#allocation26_spill] sm:$0xff] %v5210_v28  ;;  %5951 = vst [vmem:[#allocation19_spill] sm:$0xff] %v5215_v26  ;;  %v2262_v56 = vmul.f32 %v2198_v45, %v5952_v23  ;;  %3482 = vpow2.f32 %v2094_v14  ;;  %v1432_v41 = vmul.f32 %v5947_v43, %v1368_v61  ;;  %v1011_v54 = vand.u32 2147483647, %v5210_v28  ;;  %v5220_v57 = vpop.eup %3474  ;;  %v5955_v14 = vld [vmem:[#allocation51_spill] sm:$0xff]  ;;  %v5959_v26 = vld [vmem:[#allocation20_spill] sm:$0xff] }
 0x2b7   : > { %2633 = vmatprep.mubr.f32.mxu1 %v2391_v22  ;;  %v1817_v1 = vmul.f32 %v5936_v21, %v1753_v10  ;;  %3484 = vrcp.f32 %v1138_v44  ;;  %v5223_v40 = vmul.f32 1.442695, %v1970_v62  ;;  %v1307_v3 = vmul.f32 1.0614054, %v5954_v29  ;;  %v5956_v23 = vld [vmem:[#allocation31_spill] sm:$0xff] }
 0x2b8   : > { %v2326_v34 = vadd.f32 1.0, %v2262_v56  ;;  %v1496_v52 = vadd.f32 1.4214138, %v1432_v41  ;;  %v1075_v53 = vmul.f32 0.3275911, %v1011_v54  ;;  %v1907_v46 = vsub.f32 0.0, %v1011_v54  ;;  %v5226_v45 = vpop.eup %3476 }
 0x2b9   : > { %5953 = vst [vmem:[#allocation93_spill] sm:$0xff] %v5223_v40  ;;  %v2137_v61 = vmul.f32 %v5955_v14, %v1817_v1  ;;  %v1371_v17 = vadd.f32 -1.4531521, %v1307_v3  ;;  %v1306_v18 = vmul.f32 1.0614054, %v5956_v23 }
 0x2ba   : > { %v1309_v22 = vmul.f32 1.0614054, %v4794_v11  ;;  %v2390_v21 = vmul.f32 %v2326_v34, %v5957_v15  ;;  %v1560_v44 = vmul.f32 %v5947_v43, %v1496_v52  ;;  %v1139_v62 = vadd.f32 1.0, %v1075_v53  ;;  %v5233_v28 = vpop.f32.mrb[66].mxu0 }
 0x2bb   : > { %v1971_v10 = vmul.f32 %v1907_v46, %v1011_v54  ;;  %5958 = vst [vmem:[#allocation101_spill] sm:$0xff] %v5233_v28  ;;  %v2201_v56 = vsub.f32 1.0, %v2137_v61  ;;  %v1435_v41 = vmul.f32 %v5954_v29, %v1371_v17  ;;  %v1370_v8 = vadd.f32 -1.4531521, %v1306_v18  ;;  %v2557_v40 = vpop.f32.mrb[67].mxu0 }
 0x2bc   : > { %v1373_v37 = vadd.f32 -1.4531521, %v1309_v22  ;;  %2634 = vmatmul.mubr.f32.gmra.mrb[26].mxu1 %v2390_v21  ;;  %v1624_v1 = vadd.f32 -0.28449672, %v1560_v44  ;;  %3486 = vrcp.f32 %v1139_v62  ;;  %v1308_v14 = vmul.f32 1.0614054, %v4766_v12 }
 0x2bd   : > { %v2098_v3 = vmul.f32 1.442695, %v1971_v10  ;;  %v2265_v15 = vmul.f32 %v2201_v56, %v5959_v26  ;;  %v1499_v34 = vadd.f32 1.4214138, %v1435_v41  ;;  %v1434_v52 = vmul.f32 %v5956_v23, %v1370_v8  ;;  %v5961_v41 = vld [vmem:[#allocation59_spill] sm:$0xff] }
 0x2be   : > { %v1437_v54 = vmul.f32 %v4794_v11, %v1373_v37  ;;  %v5240_v53 = vpop.eup %3478  ;;  %v1688_v46 = vmul.f32 %v5947_v43, %v1624_v1  ;;  %v1372_v18 = vadd.f32 -1.4531521, %v1308_v14  ;;  %v1311_v40 = vmul.f32 1.0614054, %v4837_v48 }
 0x2bf   : > { %5960 = vst [vmem:[#allocation15_spill] sm:$0xff] %v5240_v53  ;;  %3488 = vpow2.f32 %v2098_v3  ;;  %v5244_v61 = vpop.eup %3480  ;;  %v2329_v17 = vadd.f32 1.0, %v2265_v15  ;;  %v1563_v22 = vmul.f32 %v5954_v29, %v1499_v34  ;;  %v1498_v21 = vadd.f32 1.4214138, %v1434_v52 }
 0x2c0   : > { %v1501_v26 = vadd.f32 1.4214138, %v1437_v54  ;;  %v5247_v44 = vpop.eup %3482  ;;  %v1752_v8 = vadd.f32 0.2548296, %v1688_v46  ;;  %v1436_v37 = vmul.f32 %v4766_v12, %v1372_v18  ;;  %v1375_v62 = vadd.f32 -1.4531521, %v1311_v40 }
 0x2c1   : > { %v1310_v10 = vmul.f32 1.0614054, %v4817_v63  ;;  %v5251_v56 = vpop.eup %3484  ;;  %v2393_v1 = vmul.f32 %v2329_v17, %v5961_v41  ;;  %v1627_v3 = vadd.f32 -0.28449672, %v1563_v22  ;;  %v1562_v14 = vmul.f32 %v5956_v23, %v1498_v21 }
 0x2c2   : > { %v1565_v15 = vmul.f32 %v4794_v11, %v1501_v26  ;;  %v1816_v34 = vmul.f32 %v5947_v43, %v1752_v8  ;;  %v1500_v52 = vadd.f32 1.4214138, %v1436_v37  ;;  %v1439_v54 = vmul.f32 %v4837_v48, %v1375_v62 }
 0x2c3   : > { %v1374_v46 = vadd.f32 -1.4531521, %v1310_v10  ;;  %2638 = vmatprep.mubr.f32.mxu1 %v2393_v1  ;;  %v1691_v18 = vmul.f32 %v5954_v29, %v1627_v3  ;;  %v1626_v40 = vadd.f32 -0.28449672, %v1562_v14  ;;  %v1313_v28 = vmul.f32 1.0614054, %v4889_v42 }
 0x2c4   : > { %v1629_v53 = vadd.f32 -0.28449672, %v1565_v15  ;;  %v2136_v17 = vmul.f32 %v5962_v31, %v1816_v34  ;;  %v1564_v22 = vmul.f32 %v4766_v12, %v1500_v52  ;;  %v1503_v21 = vadd.f32 1.4214138, %v1439_v54 }
 0x2c5   : > { %v1438_v26 = vmul.f32 %v4817_v63, %v1374_v46  ;;  %v1755_v41 = vadd.f32 0.2548296, %v1691_v18  ;;  %v1690_v43 = vmul.f32 %v5956_v23, %v1626_v40  ;;  %v1377_v37 = vadd.f32 -1.4531521, %v1313_v28  ;;  %v5265_v62 = vpop.f32.mrb[68].mxu0 }
 0x2c6   : > { %v1693_v8 = vmul.f32 %v4794_v11, %v1629_v53  ;;  %5963 = vst [vmem:[#allocation44_spill] sm:$0xff] %v5265_v62  ;;  %v5267_v10 = vpop.eup %3486  ;;  %v2200_v1 = vsub.f32 1.0, %v2136_v17  ;;  %v1628_v3 = vadd.f32 -0.28449672, %v1564_v22  ;;  %v1567_v14 = vmul.f32 %v4837_v48, %v1503_v21  ;;  %v2562_v15 = vpop.f32.mrb[69].mxu0  ;;  %v5965_v53 = vld [vmem:[#allocation21_spill] sm:$0xff] }
 0x2c7   : > { %v1502_v31 = vadd.f32 1.4214138, %v1438_v26  ;;  %v1819_v34 = vmul.f32 %v5954_v29, %v1755_v41  ;;  %v1754_v52 = vadd.f32 0.2548296, %v1690_v43  ;;  %v1441_v46 = vmul.f32 %v4889_v42, %v1377_v37 }
 0x2c8   : > { %v1757_v54 = vadd.f32 0.2548296, %v1693_v8  ;;  %v2264_v28 = vmul.f32 %v2200_v1, %v5965_v53  ;;  %v1692_v40 = vmul.f32 %v4766_v12, %v1628_v3  ;;  %v1631_v62 = vadd.f32 -0.28449672, %v1567_v14 }
 0x2c9   : > { %v5272_v18 = vpop.eup %3488  ;;  %v1566_v17 = vmul.f32 %v4817_v63, %v1502_v31  ;;  %v2139_v22 = vmul.f32 %v4751_v33, %v1819_v34  ;;  %v1818_v21 = vmul.f32 %v5956_v23, %v1754_v52  ;;  %v1505_v29 = vadd.f32 1.4214138, %v1441_v46  ;;  %v5967_v31 = vld [vmem:[#allocation32_spill] sm:$0xff] }
 0x2ca   : > { %5964 = vst [vmem:[#allocation100_spill] sm:$0xff] %v5272_v18  ;;  %v1821_v26 = vmul.f32 %v4794_v11, %v1757_v54  ;;  %v2328_v41 = vadd.f32 1.0, %v2264_v28  ;;  %v1756_v43 = vadd.f32 0.2548296, %v1692_v40  ;;  %v1695_v8 = vmul.f32 %v4837_v48, %v1631_v62  ;;  %v5966_v18 = vld [vmem:[#allocation28_spill] sm:$0xff]  ;;  %v5969_v28 = vld [vmem:[#allocation41_spill] sm:$0xff] }
 0x2cb   : > { %v1630_v37 = vadd.f32 -0.28449672, %v1566_v17  ;;  %v2203_v15 = vsub.f32 1.0, %v2139_v22  ;;  %v2138_v1 = vmul.f32 %v5966_v18, %v1818_v21  ;;  %v1569_v14 = vmul.f32 %v4889_v42, %v1505_v29  ;;  %v5968_v34 = vld [vmem:[#allocation60_spill] sm:$0xff]  ;;  %v5970_v21 = vld [vmem:[#allocation39_spill] sm:$0xff] }
 0x2cc   : > { %v2141_v3 = vmul.f32 %v4810_v35, %v1821_v26  ;;  %v2392_v53 = vmul.f32 %v2328_v41, %v5967_v31  ;;  %v1820_v33 = vmul.f32 %v4766_v12, %v1756_v43  ;;  %v1759_v23 = vadd.f32 0.2548296, %v1695_v8  ;;  %v5971_v12 = vld [vmem:[#allocation25_spill] sm:$0xff]  ;;  %v5972_v8 = vld [vmem:[#allocation78_spill] sm:$0xff] }
 0x2cd   : > { %v1694_v11 = vmul.f32 %v4817_v63, %v1630_v37  ;;  %v2267_v52 = vmul.f32 %v2203_v15, %v5968_v34  ;;  %v2202_v54 = vsub.f32 1.0, %v2138_v1  ;;  %v1633_v62 = vadd.f32 -0.28449672, %v1569_v14  ;;  %v5975_v34 = vld [vmem:[#allocation34_spill] sm:$0xff] }
 0x2ce   : > { %v2205_v46 = vsub.f32 1.0, %v2141_v3  ;;  %2639 = vmatmul.mubr.f32.gmra.mrb[28].mxu1 %v2392_v53  ;;  %v2140_v40 = vmul.f32 %v5969_v28, %v1820_v33  ;;  %v1823_v18 = vmul.f32 %v4837_v48, %v1759_v23  ;;  %v1312_v17 = vmul.f32 1.0614054, %v4870_v13  ;;  %v5973_v3 = vld [vmem:[#allocation23_spill] sm:$0xff] }
 0x2cf   : > { %v1758_v35 = vadd.f32 0.2548296, %v1694_v11  ;;  %v2331_v22 = vadd.f32 1.0, %v2267_v52  ;;  %v2266_v26 = vmul.f32 %v2202_v54, %v5970_v21  ;;  %v1697_v41 = vmul.f32 %v4889_v42, %v1633_v62  ;;  %v5974_v33 = vld [vmem:[#allocation71_spill] sm:$0xff]  ;;  %v5978_v21 = vld [vmem:[#allocation38_spill] sm:$0xff] }
 0x2d0   : > { %v2269_v29 = vmul.f32 %v2205_v46, %v5971_v12  ;;  %v2204_v43 = vsub.f32 1.0, %v2140_v40  ;;  %v2143_v37 = vmul.f32 %v5972_v8, %v1823_v18  ;;  %v1376_v1 = vadd.f32 -1.4531521, %v1312_v17  ;;  %v5976_v62 = vld [vmem:[#allocation27_spill] sm:$0xff] }
 0x2d1   : > { %v1822_v15 = vmul.f32 %v4817_v63, %v1758_v35  ;;  %v2395_v14 = vmul.f32 %v2331_v22, %v5973_v3  ;;  %v2330_v31 = vadd.f32 1.0, %v2266_v26  ;;  %v1761_v53 = vadd.f32 0.2548296, %v1697_v41  ;;  %v5977_v40 = vld [vmem:[#allocation47_spill] sm:$0xff]  ;;  %v5979_v41 = vld [vmem:[#allocation54_spill] sm:$0xff] }
 0x2d2   : > { %v2333_v48 = vadd.f32 1.0, %v2269_v29  ;;  %v2268_v23 = vmul.f32 %v2204_v43, %v5974_v33  ;;  %v2207_v11 = vsub.f32 1.0, %v2143_v37  ;;  %v1440_v54 = vmul.f32 %v4870_v13, %v1376_v1  ;;  %v5300_v46 = vpop.f32.mrb[70].mxu0  ;;  %v5980_v1 = vld [vmem:[#allocation53_spill] sm:$0xff] }
 0x2d3   : > { %v2142_v52 = vmul.f32 %v5975_v34, %v1822_v15  ;;  %2643 = vmatprep.mubr.f32.mxu1 %v2395_v14  ;;  %v2394_v28 = vmul.f32 %v2330_v31, %v5976_v62  ;;  %v1825_v18 = vmul.f32 %v4889_v42, %v1761_v53  ;;  %v1315_v35 = vmul.f32 1.0614054, %v4936_v25  ;;  %v2567_v17 = vpop.f32.mrb[71].mxu0  ;;  %v5981_v14 = vld [vmem:[#allocation57_spill] sm:$0xff]  ;;  %v5982_v34 = vld [vmem:[#allocation36_spill] sm:$0xff] }
 0x2d4   : > { %v2397_v63 = vmul.f32 %v2333_v48, %v5977_v40  ;;  %v2332_v22 = vadd.f32 1.0, %v2268_v23  ;;  %v2271_v26 = vmul.f32 %v2207_v11, %v5978_v21  ;;  %v1504_v29 = vadd.f32 1.4214138, %v1440_v54  ;;  %v5983_v40 = vld [vmem:[#allocation65_spill] sm:$0xff] }
 0x2d5   : > { %v2206_v12 = vsub.f32 1.0, %v2142_v52  ;;  %2644 = vmatmul.mubr.f32.gmra.mrb[30].mxu1 %v2394_v28  ;;  %v2145_v43 = vmul.f32 %v5979_v41, %v1825_v18  ;;  %v1379_v8 = vadd.f32 -1.4531521, %v1315_v35  ;;  %v1314_v37 = vmul.f32 1.0614054, %v4909_v6 }
 0x2d6   : > { %v1317_v15 = vmul.f32 1.0614054, %v4980_v5  ;;  %2648 = vmatprep.mubr.f32.mxu1 %v2397_v63  ;;  %v2396_v3 = vmul.f32 %v2332_v22, %v5980_v1  ;;  %v2335_v42 = vadd.f32 1.0, %v2271_v26  ;;  %v1568_v48 = vmul.f32 %v4870_v13, %v1504_v29  ;;  %v5984_v22 = vld [vmem:[#allocation63_spill] sm:$0xff] }
 0x2d7   : > { %v2270_v31 = vmul.f32 %v2206_v12, %v5981_v14  ;;  %v2209_v53 = vsub.f32 1.0, %v2145_v43  ;;  %v1443_v33 = vmul.f32 %v4936_v25, %v1379_v8  ;;  %v1378_v23 = vadd.f32 -1.4531521, %v1314_v37  ;;  %v5985_v14 = vld [vmem:[#allocation49_spill] sm:$0xff] }
 0x2d8   : > { %v1381_v11 = vadd.f32 -1.4531521, %v1317_v15  ;;  %v2399_v52 = vmul.f32 %v2335_v42, %v5982_v34  ;;  %v1632_v62 = vadd.f32 -0.28449672, %v1568_v48  ;;  %v1316_v28 = vmul.f32 1.0614054, %v4960_v58 }
 0x2d9   : > { %v2334_v54 = vadd.f32 1.0, %v2270_v31  ;;  %2649 = vmatmul.mubr.f32.gmra.mrb[32].mxu1 %v2396_v3  ;;  %v2273_v63 = vmul.f32 %v2209_v53, %v5983_v40  ;;  %v1507_v18 = vadd.f32 1.4214138, %v1443_v33  ;;  %v1442_v35 = vmul.f32 %v4909_v6, %v1378_v23 }
 0x2da   : > { %v1445_v17 = vmul.f32 %v4980_v5, %v1381_v11  ;;  %2653 = vmatprep.mubr.f32.mxu1 %v2399_v52  ;;  %v1696_v26 = vmul.f32 %v4870_v13, %v1632_v62  ;;  %v1380_v12 = vadd.f32 -1.4531521, %v1316_v28  ;;  %v1319_v29 = vmul.f32 1.0614054, %v5021_v51 }
 0x2db   : > { %v2398_v21 = vmul.f32 %v2334_v54, %v5984_v22  ;;  %v2337_v41 = vadd.f32 1.0, %v2273_v63  ;;  %v1571_v43 = vmul.f32 %v4936_v25, %v1507_v18  ;;  %v1506_v8 = vadd.f32 1.4214138, %v1442_v35  ;;  %v5986_v63 = vld [vmem:[#allocation80_spill] sm:$0xff] }
 0x2dc   : > { %v1509_v37 = vadd.f32 1.4214138, %v1445_v17  ;;  %v1760_v15 = vadd.f32 0.2548296, %v1696_v26  ;;  %v1444_v1 = vmul.f32 %v4960_v58, %v1380_v12  ;;  %v1383_v3 = vadd.f32 -1.4531521, %v1319_v29 }
 0x2dd   : > { %v1318_v42 = vmul.f32 1.0614054, %v4997_v19  ;;  %2654 = vmatmul.mubr.f32.gmra.mrb[34].mxu1 %v2398_v21  ;;  %v2401_v31 = vmul.f32 %v2337_v41, %v5985_v14  ;;  %v1635_v48 = vadd.f32 -0.28449672, %v1571_v43  ;;  %v1570_v53 = vmul.f32 %v4909_v6, %v1506_v8 }
 0x2de   : > { %v1573_v33 = vmul.f32 %v4980_v5, %v1509_v37  ;;  %v1824_v23 = vmul.f32 %v4870_v13, %v1760_v15  ;;  %v1508_v11 = vadd.f32 1.4214138, %v1444_v1  ;;  %v1447_v34 = vmul.f32 %v5021_v51, %v1383_v3 }
 0x2df   : > { %v1382_v52 = vadd.f32 -1.4531521, %v1318_v42  ;;  %2658 = vmatprep.mubr.f32.mxu1 %v2401_v31  ;;  %v1699_v54 = vmul.f32 %v4936_v25, %v1635_v48  ;;  %v1634_v62 = vadd.f32 -0.28449672, %v1570_v53  ;;  %v1321_v40 = vmul.f32 1.0614054, %v5060_v32 }
 0x2e0   : > { %v1637_v28 = vadd.f32 -0.28449672, %v1573_v33  ;;  %v2144_v18 = vmul.f32 %v5986_v63, %v1824_v23  ;;  %v1572_v35 = vmul.f32 %v4960_v58, %v1508_v11  ;;  %v1511_v17 = vadd.f32 1.4214138, %v1447_v34  ;;  %v5987_v31 = vld [vmem:[#allocation72_spill] sm:$0xff] }
 0x2e1   : > { %v1446_v22 = vmul.f32 %v4997_v19, %v1382_v52  ;;  %v1763_v21 = vadd.f32 0.2548296, %v1699_v54  ;;  %v1698_v13 = vmul.f32 %v4909_v6, %v1634_v62  ;;  %v1385_v12 = vadd.f32 -1.4531521, %v1321_v40  ;;  %v5337_v29 = vpop.f32.mrb[0].mxu1 }
 0x2e2   : > { %v1701_v26 = vmul.f32 %v4980_v5, %v1637_v28  ;;  %v2208_v41 = vsub.f32 1.0, %v2144_v18  ;;  %v1636_v43 = vadd.f32 -0.28449672, %v1572_v35  ;;  %v1575_v8 = vmul.f32 %v5021_v51, %v1511_v17  ;;  %v2572_v15 = vpop.f32.mrb[1].mxu1 }
 0x2e3   : > { %v1510_v37 = vadd.f32 1.4214138, %v1446_v22  ;;  %v1827_v1 = vmul.f32 %v4936_v25, %v1763_v21  ;;  %v1762_v3 = vadd.f32 0.2548296, %v1698_v13  ;;  %v1449_v14 = vmul.f32 %v5060_v32, %v1385_v12  ;;  %v5988_v22 = vld [vmem:[#allocation74_spill] sm:$0xff]  ;;  %v5989_v13 = vld [vmem:[#allocation56_spill] sm:$0xff] }
 0x2e4   : > { %v1765_v42 = vadd.f32 0.2548296, %v1701_v26  ;;  %v2272_v48 = vmul.f32 %v2208_v41, %v5987_v31  ;;  %v1700_v53 = vmul.f32 %v4960_v58, %v1636_v43  ;;  %v1639_v33 = vadd.f32 -0.28449672, %v1575_v8  ;;  %v5990_v8 = vld [vmem:[#allocation69_spill] sm:$0xff] }
 0x2e5   : > { %v1574_v23 = vmul.f32 %v4997_v19, %v1510_v37  ;;  %v2147_v11 = vmul.f32 %v4949_v39, %v1827_v1  ;;  %v1826_v34 = vmul.f32 %v4909_v6, %v1762_v3  ;;  %v1513_v54 = vadd.f32 1.4214138, %v1449_v14  ;;  %v5991_v3 = vld [vmem:[#allocation45_spill] sm:$0xff] }
 0x2e6   : > { %v1829_v52 = vmul.f32 %v4980_v5, %v1765_v42  ;;  %v2336_v62 = vadd.f32 1.0, %v2272_v48  ;;  %v1764_v25 = vadd.f32 0.2548296, %v1700_v53  ;;  %v1703_v28 = vmul.f32 %v5021_v51, %v1639_v33 }
 0x2e7   : > { %v1638_v40 = vadd.f32 -0.28449672, %v1574_v23  ;;  %v2211_v63 = vsub.f32 1.0, %v2147_v11  ;;  %v2146_v18 = vmul.f32 %v4924_v59, %v1826_v34  ;;  %v1577_v17 = vmul.f32 %v5060_v32, %v1513_v54  ;;  %v5993_v11 = vld [vmem:[#allocation40_spill] sm:$0xff] }
 0x2e8   : > { %v2149_v35 = vmul.f32 %v4989_v60, %v1829_v52  ;;  %v2400_v21 = vmul.f32 %v2336_v62, %v5988_v22  ;;  %v1828_v39 = vmul.f32 %v4960_v58, %v1764_v25  ;;  %v1767_v6 = vadd.f32 0.2548296, %v1703_v28  ;;  %v5992_v58 = vld [vmem:[#allocation85_spill] sm:$0xff]  ;;  %v5994_v62 = vld [vmem:[#allocation90_spill] sm:$0xff] }
 0x2e9   : > { %v1702_v5 = vmul.f32 %v4997_v19, %v1638_v40  ;;  %v2275_v26 = vmul.f32 %v2211_v63, %v5989_v13  ;;  %v2210_v12 = vsub.f32 1.0, %v2146_v18  ;;  %v1641_v43 = vadd.f32 -0.28449672, %v1577_v17  ;;  %v5996_v17 = vld [vmem:[#allocation52_spill] sm:$0xff] }
 0x2ea   : > { %v2213_v41 = vsub.f32 1.0, %v2149_v35  ;;  %2659 = vmatmul.mubr.f32.gmra.mrb[36].mxu1 %v2400_v21  ;;  %v2148_v37 = vmul.f32 %v5990_v8, %v1828_v39  ;;  %v1831_v59 = vmul.f32 %v5021_v51, %v1767_v6  ;;  %v1320_v15 = vmul.f32 1.0614054, %v5041_v0  ;;  %v5995_v35 = vld [vmem:[#allocation43_spill] sm:$0xff]  ;;  %v5997_v8 = vld [vmem:[#allocation76_spill] sm:$0xff] }
 0x2eb   : > { %v1766_v60 = vadd.f32 0.2548296, %v1702_v5  ;;  %v2339_v1 = vadd.f32 1.0, %v2275_v26  ;;  %v2274_v42 = vmul.f32 %v2210_v12, %v5991_v3  ;;  %v1705_v31 = vmul.f32 %v5060_v32, %v1641_v43 }
 0x2ec   : > { %v2277_v14 = vmul.f32 %v2213_v41, %v5992_v58  ;;  %v2212_v48 = vsub.f32 1.0, %v2148_v37  ;;  %v2151_v53 = vmul.f32 %v5026_v36, %v1831_v59  ;;  %v1384_v23 = vadd.f32 -1.4531521, %v1320_v15  ;;  %v5998_v59 = vld [vmem:[#allocation86_spill] sm:$0xff] }
 0x2ed   : > { %v1830_v33 = vmul.f32 %v4997_v19, %v1766_v60  ;;  %v2403_v34 = vmul.f32 %v2339_v1, %v5993_v11  ;;  %v2338_v52 = vadd.f32 1.0, %v2274_v42  ;;  %v1769_v54 = vadd.f32 0.2548296, %v1705_v31  ;;  %v5999_v11 = vld [vmem:[#allocation50_spill] sm:$0xff] }
 0x2ee   : > { %v2341_v51 = vadd.f32 1.0, %v2277_v14  ;;  %v2276_v25 = vmul.f32 %v2212_v48, %v5994_v62  ;;  %v2215_v28 = vsub.f32 1.0, %v2151_v53  ;;  %v1448_v63 = vmul.f32 %v5041_v0, %v1384_v23  ;;  %v5368_v18 = vpop.f32.mrb[2].mxu1 }
 0x2ef   : > { %v2150_v40 = vmul.f32 %v5011_v55, %v1830_v33  ;;  %2663 = vmatprep.mubr.f32.mxu1 %v2403_v34  ;;  %v2402_v36 = vmul.f32 %v2338_v52, %v5995_v35  ;;  %v1833_v22 = vmul.f32 %v5060_v32, %v1769_v54  ;;  %v1323_v21 = vmul.f32 1.0614054, %v5110_v20  ;;  %v2577_v39 = vpop.f32.mrb[3].mxu1 }
 0x2f0   : > { %v2405_v19 = vmul.f32 %v2341_v51, %v5996_v17  ;;  %v2340_v6 = vadd.f32 1.0, %v2276_v25  ;;  %v2279_v5 = vmul.f32 %v2215_v28, %v4986_v27  ;;  %v1512_v26 = vadd.f32 1.4214138, %v1448_v63 }
 0x2f1   : > { %v2214_v13 = vsub.f32 1.0, %v2150_v40  ;;  %2664 = vmatmul.mubr.f32.gmra.mrb[38].mxu1 %v2402_v36  ;;  %v2153_v55 = vmul.f32 %v5076_v4, %v1833_v22  ;;  %v1387_v12 = vadd.f32 -1.4531521, %v1323_v21  ;;  %v1322_v41 = vmul.f32 1.0614054, %v5083_v47  ;;  %v6000_v36 = vld [vmem:[#allocation58_spill] sm:$0xff] }
 0x2f2   : > { %v1325_v43 = vmul.f32 1.0614054, %v5164_v2  ;;  %2668 = vmatprep.mubr.f32.mxu1 %v2405_v19  ;;  %v2404_v37 = vmul.f32 %v2340_v6, %v5997_v8  ;;  %v2343_v32 = vadd.f32 1.0, %v2279_v5  ;;  %v1576_v15 = vmul.f32 %v5041_v0, %v1512_v26 }
 0x2f3   : > { %v2278_v60 = vmul.f32 %v2214_v13, %v5998_v59  ;;  %v2217_v1 = vsub.f32 1.0, %v2153_v55  ;;  %v1451_v27 = vmul.f32 %v5110_v20, %v1387_v12  ;;  %v1386_v3 = vadd.f32 -1.4531521, %v1322_v41 }
 0x2f4   : > { %v1389_v42 = vadd.f32 -1.4531521, %v1325_v43  ;;  %v2407_v4 = vmul.f32 %v2343_v32, %v4983_v16  ;;  %v1640_v14 = vadd.f32 -0.28449672, %v1576_v15  ;;  %v1324_v31 = vmul.f32 1.0614054, %v5137_v30 }
 0x2f5   : > { %v2342_v58 = vadd.f32 1.0, %v2278_v60  ;;  %2669 = vmatmul.mubr.f32.gmra.mrb[40].mxu1 %v2404_v37  ;;  %v2281_v48 = vmul.f32 %v2217_v1, %v5018_v49  ;;  %v1515_v53 = vadd.f32 1.4214138, %v1451_v27  ;;  %v1450_v33 = vmul.f32 %v5083_v47, %v1386_v3  ;;  %v6001_v43 = vld [vmem:[#allocation75_spill] sm:$0xff] }
 0x2f6   : > { %v1453_v23 = vmul.f32 %v5164_v2, %v1389_v42  ;;  %2673 = vmatprep.mubr.f32.mxu1 %v2407_v4  ;;  %v1704_v52 = vmul.f32 %v5041_v0, %v1640_v14  ;;  %v1388_v51 = vadd.f32 -1.4531521, %v1324_v31  ;;  %v1327_v16 = vmul.f32 1.0614054, %v5207_v7 }
 0x2f7   : > { %v2406_v34 = vmul.f32 %v2342_v58, %v5999_v11  ;;  %v2345_v54 = vadd.f32 1.0, %v2281_v48  ;;  %v1579_v62 = vmul.f32 %v5110_v20, %v1515_v53  ;;  %v1514_v25 = vadd.f32 1.4214138, %v1450_v33 }
 0x2f8   : > { %v1517_v28 = vadd.f32 1.4214138, %v1453_v23  ;;  %v1768_v40 = vadd.f32 0.2548296, %v1704_v52  ;;  %v1452_v49 = vmul.f32 %v5137_v30, %v1388_v51  ;;  %v1391_v63 = vadd.f32 -1.4531521, %v1327_v16 }
 0x2f9   : > { %v1326_v35 = vmul.f32 1.0614054, %v5189_v24  ;;  %2674 = vmatmul.mubr.f32.gmra.mrb[42].mxu1 %v2406_v34  ;;  %v2409_v17 = vmul.f32 %v2345_v54, %v6000_v36  ;;  %v1643_v19 = vadd.f32 -0.28449672, %v1579_v62  ;;  %v1578_v22 = vmul.f32 %v5083_v47, %v1514_v25  ;;  %v6002_v23 = vld [vmem:[#allocation61_spill] sm:$0xff] }
 0x2fa   : > { %v1581_v21 = vmul.f32 %v5164_v2, %v1517_v28  ;;  %v1832_v39 = vmul.f32 %v5041_v0, %v1768_v40  ;;  %v1516_v6 = vadd.f32 1.4214138, %v1452_v49  ;;  %v1455_v5 = vmul.f32 %v5207_v7, %v1391_v63 }
 0x2fb   : > { %v1390_v13 = vadd.f32 -1.4531521, %v1326_v35  ;;  %2678 = vmatprep.mubr.f32.mxu1 %v2409_v17  ;;  %v1707_v26 = vmul.f32 %v5110_v20, %v1643_v19  ;;  %v1642_v55 = vadd.f32 -0.28449672, %v1578_v22  ;;  %v1329_v41 = vmul.f32 1.0614054, %v5244_v61 }
 0x2fc   : > { %v1645_v12 = vadd.f32 -0.28449672, %v1581_v21  ;;  %v2152_v8 = vmul.f32 %v6001_v43, %v1832_v39  ;;  %v1580_v37 = vmul.f32 %v5137_v30, %v1516_v6  ;;  %v1519_v32 = vadd.f32 1.4214138, %v1455_v5  ;;  %v6003_v35 = vld [vmem:[#allocation83_spill] sm:$0xff]  ;;  %v6004_v22 = vld [vmem:[#allocation81_spill] sm:$0xff] }
 0x2fd   : > { %v1454_v59 = vmul.f32 %v5189_v24, %v1390_v13  ;;  %v1771_v60 = vadd.f32 0.2548296, %v1707_v26  ;;  %v1706_v0 = vmul.f32 %v5083_v47, %v1642_v55  ;;  %v1393_v1 = vadd.f32 -1.4531521, %v1329_v41  ;;  %v5405_v27 = vpop.f32.mrb[4].mxu1  ;;  %v6005_v39 = vld [vmem:[#allocation73_spill] sm:$0xff] }
 0x2fe   : > { %v1709_v15 = vmul.f32 %v5164_v2, %v1645_v12  ;;  %v2216_v3 = vsub.f32 1.0, %v2152_v8  ;;  %v1644_v42 = vadd.f32 -0.28449672, %v1580_v37  ;;  %v1583_v4 = vmul.f32 %v5207_v7, %v1519_v32  ;;  %v2582_v14 = vpop.f32.mrb[5].mxu1  ;;  %v6006_v55 = vld [vmem:[#allocation87_spill] sm:$0xff]  ;;  %v6007_v37 = vld [vmem:[#allocation92_spill] sm:$0xff] }
 0x2ff   : > { %v1518_v58 = vadd.f32 1.4214138, %v1454_v59  ;;  %v1835_v31 = vmul.f32 %v5110_v20, %v1771_v60  ;;  %v1770_v48 = vadd.f32 0.2548296, %v1706_v0  ;;  %v1457_v33 = vmul.f32 %v5244_v61, %v1393_v1 }
 0x300   : > { %v1773_v53 = vadd.f32 0.2548296, %v1709_v15  ;;  %v2280_v11 = vmul.f32 %v2216_v3, %v6002_v23  ;;  %v1708_v34 = vmul.f32 %v5137_v30, %v1644_v42  ;;  %v1647_v52 = vadd.f32 -0.28449672, %v1583_v4  ;;  %v6009_v42 = vld [vmem:[#allocation88_spill] sm:$0xff] }
 0x301   : > { %v1582_v51 = vmul.f32 %v5189_v24, %v1518_v58  ;;  %v2155_v16 = vmul.f32 %v5115_v38, %v1835_v31  ;;  %v1834_v54 = vmul.f32 %v5083_v47, %v1770_v48  ;;  %v1521_v25 = vadd.f32 1.4214138, %v1457_v33  ;;  %v6010_v31 = vld [vmem:[#allocation66_spill] sm:$0xff] }
 0x302   : > { %v1837_v62 = vmul.f32 %v5164_v2, %v1773_v53  ;;  %v2344_v28 = vadd.f32 1.0, %v2280_v11  ;;  %v1772_v20 = vadd.f32 0.2548296, %v1708_v34  ;;  %v1711_v40 = vmul.f32 %v5207_v7, %v1647_v52  ;;  %v5439_v11 = vld [vmem:[%s5612_s4] ss:$0 sm:$0xff]  ;;  %v6012_v52 = vld [vmem:[#allocation79_spill] sm:$0xff] }
 0x303   : > { %v1646_v49 = vadd.f32 -0.28449672, %v1582_v51  ;;  %v2219_v63 = vsub.f32 1.0, %v2155_v16  ;;  %v2154_v36 = vmul.f32 %v6003_v35, %v1834_v54  ;;  %v1585_v19 = vmul.f32 %v5244_v61, %v1521_v25 }
 0x304   : > { %v2157_v17 = vmul.f32 %v5167_v50, %v1837_v62  ;;  %v2408_v21 = vmul.f32 %v2344_v28, %v6004_v22  ;;  %v1836_v38 = vmul.f32 %v5137_v30, %v1772_v20  ;;  %v1775_v47 = vadd.f32 0.2548296, %v1711_v40  ;;  %v6008_v30 = vld [vmem:[#allocation82_spill] sm:$0xff] }
 0x305   : > { %v1710_v2 = vmul.f32 %v5189_v24, %v1646_v49  ;;  %v2283_v6 = vmul.f32 %v2219_v63, %v6005_v39  ;;  %v2218_v5 = vsub.f32 1.0, %v2154_v36  ;;  %v1649_v26 = vadd.f32 -0.28449672, %v1585_v19  ;;  %v6014_v36 = vld [vmem:[#allocation95_spill] sm:$0xff] }
 0x306   : > { %v2221_v13 = vsub.f32 1.0, %v2157_v17  ;;  %2679 = vmatmul.mubr.f32.gmra.mrb[44].mxu1 %v2408_v21  ;;  %v2156_v12 = vmul.f32 %v6006_v55, %v1836_v38  ;;  %v1839_v41 = vmul.f32 %v5207_v7, %v1775_v47  ;;  %v1328_v43 = vmul.f32 1.0614054, %v5226_v45  ;;  %v6016_v21 = vld [vmem:[#allocation84_spill] sm:$0xff] }
 0x307   : > { %v1774_v50 = vadd.f32 0.2548296, %v1710_v2  ;;  %v2347_v8 = vadd.f32 1.0, %v2283_v6  ;;  %v2282_v32 = vmul.f32 %v2218_v5, %v6007_v37  ;;  %v1713_v60 = vmul.f32 %v5244_v61, %v1649_v26 }
 0x308   : > { %v2285_v59 = vmul.f32 %v2221_v13, %v6008_v30  ;;  %v2220_v0 = vsub.f32 1.0, %v2156_v12  ;;  %v2159_v15 = vmul.f32 %v5220_v57, %v1839_v41  ;;  %v1392_v3 = vadd.f32 -1.4531521, %v1328_v43  ;;  %v6018_v13 = vld [vmem:[#allocation96_spill] sm:$0xff]  ;;  %v6020_v43 = vld [vmem:[#allocation19_spill] sm:$0xff] }
 0x309   : > { %v1838_v1 = vmul.f32 %v5189_v24, %v1774_v50  ;;  %v2411_v4 = vmul.f32 %v2347_v8, %v6009_v42  ;;  %v2346_v58 = vadd.f32 1.0, %v2282_v32  ;;  %v1777_v14 = vadd.f32 0.2548296, %v1713_v60  ;;  %v6011_v24 = vld [vmem:[#allocation55_spill] sm:$0xff]  ;;  %v6019_v41 = vld [vmem:[#allocation44_spill] sm:$0xff] }
 0x30a   : > { %v2349_v7 = vadd.f32 1.0, %v2285_v59  ;;  %v2284_v48 = vmul.f32 %v2220_v0, %v6010_v31  ;;  %v2223_v53 = vsub.f32 1.0, %v2159_v15  ;;  %v1456_v23 = vmul.f32 %v5226_v45, %v1392_v3  ;;  %v2585_v57 = vpop.f32.mrb[6].mxu1  ;;  %v6021_v59 = vld [vmem:[#allocation77_spill] sm:$0xff] }
 0x30b   : > { %v2158_v33 = vmul.f32 %v5197_v9, %v1838_v1  ;;  %2683 = vmatprep.mubr.f32.mxu1 %v2411_v4  ;;  %v2410_v34 = vmul.f32 %v2346_v58, %v6011_v24  ;;  %v1841_v16 = vmul.f32 %v5244_v61, %v1777_v14  ;;  %v1331_v54 = vmul.f32 1.0614054, %v5267_v10  ;;  %v2587_v62 = vpop.f32.mrb[7].mxu1  ;;  %v6013_v9 = vld [vmem:[#allocation33_spill] sm:$0xff]  ;;  %v6015_v61 = vld [vmem:[#allocation70_spill] sm:$0xff] }
 0x30c   : > { %v2413_v51 = vmul.f32 %v2349_v7, %v6012_v52  ;;  %v2348_v25 = vadd.f32 1.0, %v2284_v48  ;;  %v2287_v28 = vmul.f32 %v2223_v53, %v6013_v9  ;;  %v1520_v40 = vadd.f32 1.4214138, %v1456_v23  ;;  %v6022_v58 = vld [vmem:[#allocation93_spill] sm:$0xff]  ;;  %v6023_v14 = vld [vmem:[#allocation94_spill] sm:$0xff]  ;;  %v6025_v52 = vld [vmem:[#allocation15_spill] sm:$0xff] }
 0x30d   : > { %v2222_v20 = vsub.f32 1.0, %v2158_v33  ;;  %2684 = vmatmul.mubr.f32.gmra.mrb[46].mxu1 %v2410_v34  ;;  %v2161_v49 = vmul.f32 %v5247_v44, %v1841_v16  ;;  %v1395_v63 = vadd.f32 -1.4531521, %v1331_v54  ;;  %v1330_v35 = vmul.f32 1.0614054, %v5251_v56  ;;  %v6017_v44 = vld [vmem:[#allocation101_spill] sm:$0xff] }
 0x30e   : > { %v2815_v17 = vadd.f32 %v5439_v11, %v6014_v36  ;;  %2688 = vmatprep.mubr.f32.mxu1 %v2413_v51  ;;  %v2412_v19 = vmul.f32 %v2348_v25, %v6015_v61  ;;  %v2351_v22 = vadd.f32 1.0, %v2287_v28  ;;  %v1584_v47 = vmul.f32 %v5226_v45, %v1520_v40  ;;  %v6027_v40 = vld [vmem:[#allocation26_spill] sm:$0xff] }
 0x30f   : > { %v2286_v38 = vmul.f32 %v2222_v20, %v6016_v21  ;;  %v2225_v2 = vsub.f32 1.0, %v2161_v49  ;;  %v1459_v39 = vmul.f32 %v5267_v10, %v1395_v63  ;;  %v1394_v6 = vadd.f32 -1.4531521, %v1330_v35  ;;  %v6028_v49 = vld [vmem:[#allocation100_spill] sm:$0xff] }
 0x310   : > { %2847 = vst [vmem:[%s5456_s9] sm:$0xff] %v2815_v17  ;;  %v2816_v5 = vadd.f32 %v5439_v11, %v6017_v44  ;;  %v2415_v26 = vmul.f32 %v2351_v22, %v6018_v13  ;;  %v1648_v12 = vadd.f32 -0.28449672, %v1584_v47  ;;  %v2817_v50 = vadd.f32 %v5439_v11, %v6019_v41  ;;  %v6029_v17 = vld [vmem:[#allocation91_spill] sm:$0xff]  ;;  %v6030_v22 = vld [vmem:[#allocation98_spill] sm:$0xff]  ;;  %v6031_v44 = vld [vmem:[#allocation68_spill] sm:$0xff] }
 0x311   : > { %v2350_v55 = vadd.f32 1.0, %v2286_v38  ;;  %2689 = vmatmul.mubr.f32.gmra.mrb[48].mxu1 %v2412_v19  ;;  %v2289_v8 = vmul.f32 %v2225_v2, %v6020_v43  ;;  %v1523_v37 = vadd.f32 1.4214138, %v1459_v39  ;;  %v1458_v32 = vmul.f32 %v5251_v56, %v1394_v6 }
 0x312   : > { %2848 = vst [vmem:[%s5456_s9 + $0x8] sm:$0xff] %v2816_v5  ;;  %v2818_v30 = vadd.f32 %v5439_v11, %v5300_v46  ;;  %2693 = vmatprep.mubr.f32.mxu1 %v2415_v26  ;;  %v1712_v0 = vmul.f32 %v5226_v45, %v1648_v12  ;;  %2849 = vst [vmem:[%s5456_s9 + $0x10] sm:$0xff] %v2817_v50  ;;  %v2819_v15 = vadd.f32 %v5439_v11, %v5337_v29  ;;  %v6026_v25 = vmov -1.0   ;;  %v6032_v26 = vld [vmem:[#allocation14_spill] sm:$0xff] }
 0x313   : > { %v2414_v60 = vmul.f32 %v2350_v55, %v6021_v59  ;;  %v2820_v1 = vadd.f32 %v5439_v11, %v5368_v18  ;;  %v2353_v3 = vadd.f32 1.0, %v2289_v8  ;;  %v1587_v42 = vmul.f32 %v5267_v10, %v1523_v37 }
 0x314   : > { %v1522_v4 = vadd.f32 1.4214138, %v1458_v32  ;;  %2850 = vst [vmem:[%s5456_s9 + $0x18] sm:$0xff] %v2818_v30  ;;  %v2821_v46 = vadd.f32 %v5439_v11, %v5405_v27  ;;  %3490 = vpow2.f32 %v6022_v58  ;;  %v1776_v7 = vadd.f32 0.2548296, %v1712_v0  ;;  %2851 = vst [vmem:[%s5456_s9 + $0x20] sm:$0xff] %v2819_v15 }
 0x315   : > { %2852 = vst [vmem:[%s5456_s9 + $0x28] sm:$0xff] %v2820_v1  ;;  %v2822_v29 = vadd.f32 %v5439_v11, %v2585_v57  ;;  %2694 = vmatmul.mubr.f32.gmra.mrb[50].mxu1 %v2414_v60  ;;  %v2417_v31 = vmul.f32 %v2353_v3, %v6023_v14  ;;  %v1651_v18 = vadd.f32 -0.28449672, %v1587_v42  ;;  %v6024_v57 = vld [vmem:[#allocation89_spill] sm:$0xff]  ;;  %vm883_vm14 = vcmp.ge.f32.partialorder %v6027_v40, 0.0 }
 0x316   : > { %v1586_v48 = vmul.f32 %v5251_v56, %v1522_v4  ;;  %2853 = vst [vmem:[%s5456_s9 + $0x30] sm:$0xff] %v2821_v46  ;;  %v1840_v53 = vmul.f32 %v5226_v45, %v1776_v7  ;;  %v2590_v33 = vpop.f32.mrb[8].mxu1  ;;  %vm880_vm13 = vcmp.ge.f32.partialorder %v6024_v57, 0.0  ;;  %v752_v61 = vmul.f32 0.5, %v6029_v17 }
 0x317   : > { %2854 = vst [vmem:[%s5456_s9 + $0x38] sm:$0xff] %v2822_v29  ;;  %2698 = vmatprep.mubr.f32.mxu1 %v2417_v31  ;;  %v1715_v27 = vmul.f32 %v5267_v10, %v1651_v18  ;;  %v2823_v24 = vadd.f32 %v5439_v11, %v2590_v33  ;;  %v2592_v34 = vpop.f32.mrb[9].mxu1  ;;  %v944_v45 = vsel %vm880_vm13, 1.0, %v6026_v25  ;;  %vm882_vm15 = vcmp.ge.f32.partialorder %v6030_v22, 0.0 }
 0x318   : > { %v1650_v23 = vadd.f32 -0.28449672, %v1586_v48  ;;  %v2160_v51 = vmul.f32 %v6025_v52, %v1840_v53  ;;  %v947_v47 = vsel %vm883_vm14, 1.0, %v6026_v25  ;;  %v946_v6 = vsel %vm882_vm15, 1.0, %v6026_v25 }
 0x319   : > { %v1779_v16 = vadd.f32 0.2548296, %v1715_v27  ;;  %2855 = vst [vmem:[%s5456_s9 + $0x40] sm:$0xff] %v2823_v24  ;;  %v755_v5 = vmul.f32 0.5, %v6031_v44  ;;  %v754_v55 = vmul.f32 0.5, %v6032_v26 }
 0x31a   : > { %v1714_v54 = vmul.f32 %v5251_v56, %v1650_v23  ;;  %v2224_v62 = vsub.f32 1.0, %v2160_v51 }
 0x31b   : > { %v1843_v9 = vmul.f32 %v5267_v10, %v1779_v16 }
 0x31c   : > { %v1778_v28 = vadd.f32 0.2548296, %v1714_v54  ;;  %v2288_v20 = vmul.f32 %v2224_v62, %v944_v45 }
 0x31d   : > { %v2163_v63 = vmul.f32 %v6028_v49, %v1843_v9 }
 0x31e   : > { %v1842_v35 = vmul.f32 %v5251_v56, %v1778_v28  ;;  %v3491_v36 = vpop.eup %3490  ;;  %v2352_v19 = vadd.f32 1.0, %v2288_v20 }
 0x31f   : > { %v2227_v21 = vsub.f32 1.0, %v2163_v63 }
 0x320   : > { %v2162_v38 = vmul.f32 %v3491_v36, %v1842_v35  ;;  %v2416_v2 = vmul.f32 %v2352_v19, %v752_v61 }
 0x321   : > { %v2291_v10 = vmul.f32 %v2227_v21, %v947_v47 }
 0x322   : > { %v2226_v39 = vsub.f32 1.0, %v2162_v38  ;;  %2699 = vmatmul.mubr.f32.gmra.mrb[52].mxu1 %v2416_v2 }
 0x323   : > { %v2355_v56 = vadd.f32 1.0, %v2291_v10 }
 0x324   : > { %v2290_v13 = vmul.f32 %v2226_v39, %v946_v6 }
 0x325   : > { %v2419_v12 = vmul.f32 %v2355_v56, %v755_v5  ;;  %v2595_v50 = vpop.f32.mrb[10].mxu1 }
 0x326   : > { %v2354_v41 = vadd.f32 1.0, %v2290_v13  ;;  %v2824_v43 = vadd.f32 %v5439_v11, %v2595_v50  ;;  %v2597_v8 = vpop.f32.mrb[11].mxu1 }
 0x327   : > { %2703 = vmatprep.mubr.f32.mxu1 %v2419_v12 }
 0x328   : > { %v2418_v37 = vmul.f32 %v2354_v41, %v754_v55  ;;  %2856 = vst [vmem:[%s5456_s9 + $0x48] sm:$0xff] %v2824_v43 }
 0x32a   : > { %2704 = vmatmul.mubr.f32.gmra.mrb[54].mxu1 %v2418_v37 }
 0x331   : > { %v2600_v32 = vpop.f32.mrb[12].mxu1 }
 0x332   : > { %v2825_v30 = vadd.f32 %v5439_v11, %v2600_v32  ;;  %v2602_v59 = vpop.f32.mrb[13].mxu1 }
 0x334   : > { %2857 = vst [vmem:[%s5456_s9 + $0x50] sm:$0xff] %v2825_v30 }
 0x341   : > { %v2605_v60 = vpop.f32.mrb[14].mxu1 }
 0x342   : > { %v2826_v0 = vadd.f32 %v5439_v11, %v2605_v60  ;;  %v2607_v15 = vpop.f32.mrb[15].mxu1 }
 0x344   : > { %2858 = vst [vmem:[%s5456_s9 + $0x58] sm:$0xff] %v2826_v0 }
 0x34b   : > { %v2610_v1 = vpop.f32.mrb[16].mxu1 }
 0x34c   : > { %v2827_v3 = vadd.f32 %v5439_v11, %v2610_v1  ;;  %v2612_v42 = vpop.f32.mrb[17].mxu1 }
 0x34e   : > { %2859 = vst [vmem:[%s5456_s9 + $0x60] sm:$0xff] %v2827_v3 }
 0x35b   : > { %v2615_v4 = vpop.f32.mrb[18].mxu1 }
 0x35c   : > { %v2828_v46 = vadd.f32 %v5439_v11, %v2615_v4  ;;  %v2617_v58 = vpop.f32.mrb[19].mxu1 }
 0x35e   : > { %2860 = vst [vmem:[%s5456_s9 + $0x68] sm:$0xff] %v2828_v46 }
 0x369   : > { %v2620_v7 = vpop.f32.mrb[20].mxu1 }
 0x36a   : > { %v2829_v29 = vadd.f32 %v5439_v11, %v2620_v7  ;;  %v2622_v14 = vpop.f32.mrb[21].mxu1 }
 0x36c   : > { %2861 = vst [vmem:[%s5456_s9 + $0x70] sm:$0xff] %v2829_v29 }
 0x376   : > { %v2625_v31 = vpop.f32.mrb[22].mxu1 }
 0x377   : > { %v2830_v18 = vadd.f32 %v5439_v11, %v2625_v31  ;;  %v2627_v48 = vpop.f32.mrb[23].mxu1 }
 0x379   : > { %2862 = vst [vmem:[%s5456_s9 + $0x78] sm:$0xff] %v2830_v18 }
 0x384   : > { %v2630_v53 = vpop.f32.mrb[24].mxu1 }
 0x385   : > { %v2831_v33 = vadd.f32 %v5439_v11, %v2630_v53  ;;  %v2632_v27 = vpop.f32.mrb[25].mxu1 }
 0x387   : > { %2863 = vst [vmem:[%s5456_s9 + $0x80] sm:$0xff] %v2831_v33 }
 0x38f   : > { %v2635_v23 = vpop.f32.mrb[26].mxu1 }
 0x390   : > { %v2832_v24 = vadd.f32 %v5439_v11, %v2635_v23  ;;  %v2637_v34 = vpop.f32.mrb[27].mxu1 }
 0x392   : > { %2864 = vst [vmem:[%s5456_s9 + $0x88] sm:$0xff] %v2832_v24 }
 0x3a1   : > { %v2640_v57 = vpop.f32.mrb[28].mxu1 }
 0x3a2   : > { %v2833_v52 = vadd.f32 %v5439_v11, %v2640_v57  ;;  %v2642_v51 = vpop.f32.mrb[29].mxu1 }
 0x3a4   : > { %2865 = vst [vmem:[%s5456_s9 + $0x90] sm:$0xff] %v2833_v52 }
 0x3a8   : > { %v2645_v16 = vpop.f32.mrb[30].mxu1 }
 0x3a9   : > { %v2834_v54 = vadd.f32 %v5439_v11, %v2645_v16  ;;  %v2647_v62 = vpop.f32.mrb[31].mxu1 }
 0x3ab   : > { %2866 = vst [vmem:[%s5456_s9 + $0x98] sm:$0xff] %v2834_v54 }
 0x3ac   : > { %v2650_v25 = vpop.f32.mrb[32].mxu1 }
 0x3ad   : > { %v2835_v45 = vadd.f32 %v5439_v11, %v2650_v25  ;;  %v2652_v9 = vpop.f32.mrb[33].mxu1 }
 0x3af   : > { %2867 = vst [vmem:[%s5456_s9 + $0xa0] sm:$0xff] %v2835_v45 }
 0x3b0   : > { %v2655_v28 = vpop.f32.mrb[34].mxu1 }
 0x3b1   : > { %v2836_v20 = vadd.f32 %v5439_v11, %v2655_v28  ;;  %v2657_v40 = vpop.f32.mrb[35].mxu1 }
 0x3b3   : > { %2868 = vst [vmem:[%s5456_s9 + $0xa8] sm:$0xff] %v2836_v20 }
 0x3bd   : > { %v2660_v49 = vpop.f32.mrb[36].mxu1 }
 0x3be   : > { %v2837_v63 = vadd.f32 %v5439_v11, %v2660_v49  ;;  %v2662_v35 = vpop.f32.mrb[37].mxu1 }
 0x3c0   : > { %2869 = vst [vmem:[%s5456_s9 + $0xb0] sm:$0xff] %v2837_v63 }
 0x3c4   : > { %v2665_v36 = vpop.f32.mrb[38].mxu1 }
 0x3c5   : > { %v2838_v17 = vadd.f32 %v5439_v11, %v2665_v36  ;;  %v2667_v61 = vpop.f32.mrb[39].mxu1 }
 0x3c7   : > { %2870 = vst [vmem:[%s5456_s9 + $0xb8] sm:$0xff] %v2838_v17 }
 0x3c8   : > { %v2670_v19 = vpop.f32.mrb[40].mxu1 }
 0x3c9   : > { %v2839_v22 = vadd.f32 %v5439_v11, %v2670_v19  ;;  %v2672_v21 = vpop.f32.mrb[41].mxu1 }
 0x3cb   : > { %2871 = vst [vmem:[%s5456_s9 + $0xc0] sm:$0xff] %v2839_v22 }
 0x3cc   : > { %v2675_v38 = vpop.f32.mrb[42].mxu1 }
 0x3cd   : > { %v2840_v47 = vadd.f32 %v5439_v11, %v2675_v38  ;;  %v2677_v2 = vpop.f32.mrb[43].mxu1 }
 0x3cf   : > { %2872 = vst [vmem:[%s5456_s9 + $0xc8] sm:$0xff] %v2840_v47 }
 0x3d9   : > { %v2680_v10 = vpop.f32.mrb[44].mxu1 }
 0x3da   : > { %v2841_v39 = vadd.f32 %v5439_v11, %v2680_v10  ;;  %v2682_v6 = vpop.f32.mrb[45].mxu1 }
 0x3dc   : > { %2873 = vst [vmem:[%s5456_s9 + $0xd0] sm:$0xff] %v2841_v39 }
 0x3e0   : > { %v2685_v44 = vpop.f32.mrb[46].mxu1 }
 0x3e1   : > { %v2842_v5 = vadd.f32 %v5439_v11, %v2685_v44  ;;  %v2687_v56 = vpop.f32.mrb[47].mxu1 }
 0x3e3   : > { %2874 = vst [vmem:[%s5456_s9 + $0xd8] sm:$0xff] %v2842_v5 }
 0x3e4   : > { %v2690_v13 = vpop.f32.mrb[48].mxu1 }
 0x3e5   : > { %v2843_v26 = vadd.f32 %v5439_v11, %v2690_v13  ;;  %v2692_v55 = vpop.f32.mrb[49].mxu1 }
 0x3e7   : > { %2875 = vst [vmem:[%s5456_s9 + $0xe0] sm:$0xff] %v2843_v26 }
 0x3e8   : > { %v2695_v12 = vpop.f32.mrb[50].mxu1 }
 0x3e9   : > { %v2844_v41 = vadd.f32 %v5439_v11, %v2695_v12  ;;  %v2697_v50 = vpop.f32.mrb[51].mxu1 }
 0x3eb   : > { %2876 = vst [vmem:[%s5456_s9 + $0xe8] sm:$0xff] %v2844_v41 }
 0x3f5   : > { %v2700_v43 = vpop.f32.mrb[52].mxu1 }
 0x3f6   : > { %v2845_v8 = vadd.f32 %v5439_v11, %v2700_v43  ;;  %v2702_v37 = vpop.f32.mrb[53].mxu1 }
 0x3f8   : > { %2877 = vst [vmem:[%s5456_s9 + $0xf0] sm:$0xff] %v2845_v8 }
 0x3fd   : > { %v2705_v32 = vpop.f32.mrb[54].mxu1 }
 0x3fe   : > { %v2846_v30 = vadd.f32 %v5439_v11, %v2705_v32  ;;  %v2707_v59 = vpop.f32.mrb[55].mxu1 }
 0x400   : > { %2878 = vst [vmem:[%s5456_s9 + $0xf8] sm:$0xff] %v2846_v30 }
 0x401   : > { %3591 = shalt.err (!%p3588_p11)
}
 0x402   : > { %s3592_s26 = scalar_lea.hbm %s5555_s7, 4096  ;;  %s3596_s6 = scalar_lea.hbm %s5613_s5, 8192 }
 0x403   : > { %p3593_p0 = scmp.ne.s32.totalorder %s5555_s7, %s3592_s26  ;;  %p3597_p6 = scmp.lt.u32.totalorder %s5555_s7, %s5613_s5 }
 0x404   : > { %p3598_p7 = scmp.lt.u32.totalorder %s3596_s6, %s3592_s26  ;;  %p3600_p8 = scmp.lt.u32.totalorder %s3592_s26, %s5555_s7 }
 0x405   : > { %p3594_p4 = pnand %p3593_p0, %p6033_p12 }
 0x406   : > { %p3599_p2 = por %p3598_p7, %p3597_p6 }
 0x407   : > { %p3595_p13 = pneg %p3594_p4 }
 0x408   : > { %p3601_p1 = por %p3600_p8, %p3599_p2 }
 0x40a   : > { %p3602_p10 = pnand %p3601_p1, %p3595_p13 }
 0x40c   : > { %3605 = shalt.err (!%p3602_p10)
}
 0x40d   : > { %s3677_s10 = smov 128   ;;  %s3678_s16 = smov 8  }
 0x40e   : > { %3154 = dma.vmem_to_hbm [thread:$0]  (%p6033_p12), %s5557_s13, 4096, %s5555_s7, %s2880_s14, %s3677_s10, %s3677_s10, %s3678_s16  }
 0x40f PF: > { %s2908_s27 = sand.u32 1, %s3644_s18   ;;  %p6034_p3 = scmp.ne.s32.totalorder %s5655_s29, 0 }
 0x410   : > { %p6035_p5 = scmp.ge.s32.totalorder %s3664_s23, 2  ;;  %s2909_s21 = scalar_lea.sflag [#allocation5], %s2908_s27 }
 0x412   : > { %p3168_p9 = pnand %p6035_p5, %p6034_p3 }
 0x414   : > { %3639 = dma.done.wait (!%p3168_p9), %s2909_s21, 4096  }
 0x415   : > { %3641 = vsyncadd (!%p3168_p9), %s2909_s21, 4294963200  ;;  %s22_s23 = sadd.s32 1, %s3664_s23   ;;  %s6036_s18 = smov %s3648_s19 }
 0x416   : > { %p19_p11 = scmp.ge.s32.totalorder %s22_s23, 4   ;;  %s6037_s19 = smov %s3652_s20 }
 0x417   : > { %s6038_s20 = smov %s3854_s17  ;;  %s6039_s21 = smov %s3660_s22 }
 0x418   : > { %s6040_s22 = smov %s6042_s12  ;;  %21 = sbr.rel (!%p19_p11) target bundleno = 7 (0x7), region = 106 }
 0x41f   :  { %2914 = vsyncpa [#allocation4], 1 }
 0x420   :  { %2916 = vsyncpa [#allocation4 + $0x1], 1 }
 0x421   :  { %2917 = vsyncpa [#allocation7], 1 }
 0x422   :  { %2918 = vsyncpa [#allocation5], 1 }
 0x423   :  { %2920 = vsyncpa [#allocation5 + $0x1], 1 }

</bundles_post_ra>
